<compile_context>
chip_gen: v7x
topology: tpu7x:2x2x1
jax: 0.10.0
libtpu: 0.0.40
codegen_flags: <defaults>
</compile_context>

<pallas_src>
import functools

import numpy as np
import jax
import jax.numpy as jnp
from jax.experimental import pallas as pl
from jax.experimental.pallas import tpu as pltpu


def _relu(x):
    return jnp.maximum(x, 0.0)


def _trunk(pts, w0_ref, wskip_ref, wmid_ref, bpts_ref, *, D, W, skip):
    """Shared pts_linears stack (D layers, ReLU, one optional skip connection)."""
    b_all = bpts_ref[...]                                        # (D, W) f32
    # First layer in f32 (K = input_ch is tiny; accuracy > speed here).
    h = _relu(jnp.dot(pts, w0_ref[...],
                      preferred_element_type=jnp.float32) + b_all[0:1])
    for i in range(1, D):
        z = (jnp.dot(h.astype(jnp.bfloat16), wmid_ref[i - 1],
                     preferred_element_type=jnp.float32) + b_all[i:i + 1])
        if skip is not None and (i - 1) == skip:
            # torch: h = cat([input_pts, h]) before this layer -> add pts@wskip.
            # Recomputed here (cheap K=input_ch f32 pass) instead of keeping a
            # wide f32 slab live across layers.
            z = z + jnp.dot(pts, wskip_ref[...],
                            preferred_element_type=jnp.float32)
        h = _relu(z)
    return h


def _nerf_kernel(x_ref, w0_ref, wskip_ref, wmid_ref, bpts_ref, wout_ref,
                 bout_ref, out_ref, *, D, W, skip, input_ch):
    pts = x_ref[...][:, :input_ch]
    h = _trunk(pts, w0_ref, wskip_ref, wmid_ref, bpts_ref, D=D, W=W, skip=skip)
    out_ref[...] = (jnp.dot(h.astype(jnp.bfloat16), wout_ref[...],
                            preferred_element_type=jnp.float32) + bout_ref[...])


def _nerf_viewdirs_kernel(x_ref, w0_ref, wskip_ref, wmid_ref, bpts_ref,
                          wfeat_ref, bfeat_ref, walpha_ref, balpha_ref,
                          wvh_ref, wvv_ref, bv_ref, wrgb_t_ref, brgb_ref,
                          out_ref, *, D, W, skip, input_ch, input_ch_views):
    xv = x_ref[...]
    pts = xv[:, :input_ch]
    views = xv[:, input_ch:input_ch + input_ch_views]
    h = _trunk(pts, w0_ref, wskip_ref, wmid_ref, bpts_ref, D=D, W=W, skip=skip)

    # alpha_linear: single output column -> VPU multiply + XLU lane reduction
    # (saves an almost-empty MXU N-pass), kept in f32.
    alpha = (jnp.sum(h * walpha_ref[...], axis=-1, keepdims=True)
             + balpha_ref[...])                                   # (tile_n, 1)

    feature = (jnp.dot(h.astype(jnp.bfloat16), wfeat_ref[...],
                       preferred_element_type=jnp.float32) + bfeat_ref[...])

    # torch: h = cat([feature, input_views]) -> split views_linears[0] weight.
    # The K=input_ch_views half stays in f32 (tiny).
    h2 = _relu(jnp.dot(feature.astype(jnp.bfloat16), wvh_ref[...],
                       preferred_element_type=jnp.float32)
               + jnp.dot(views, wvv_ref[...],
                         preferred_element_type=jnp.float32)
               + bv_ref[...])

    # rgb_linear: 3 output columns -> also VPU/XLU instead of an MXU pass.
    brgb = brgb_ref[...]                                          # (1, 3)
    rgb = jnp.concatenate(
        [jnp.sum(h2 * wrgb_t_ref[c:c + 1, :], axis=-1, keepdims=True)
         + brgb[:, c:c + 1] for c in range(3)],
        axis=-1)                                                  # (tile_n, 3)

    # Single contiguous (tile_n, 4) store.
    out_ref[...] = jnp.concatenate([rgb, alpha], axis=-1)


def nerf_forward(x, params, *, D=8, W=256, input_ch=3, input_ch_views=3,
                 output_ch=4, skips=(4,), use_viewdirs=False, tile_n=1024,
                 vmem_limit_bytes=48 * 1024 * 1024):
    skips = tuple(skips)
    # TODO(synk): kernel supports at most one skip connection (NeRF default);
    # multiple skips would need one wskip slab per skip layer.
    assert len(skips) <= 1, "kernel supports at most one skip connection"
    skip = skips[0] if skips else None
    if skip is not None:
        assert 0 <= skip < D - 1, "skip after the last pts layer is unsupported"
    assert tile_n % 8 == 0

    N = x.shape[0]
    # Guarantee >= 2 row tiles (when N allows) so both v7x TensorCores get work;
    # no padding: the ragged last block is masked by Pallas.
    half_rows = -(-N // 2)
    tile_n = int(min(tile_n, max(8, ((half_rows + 7) // 8) * 8)))
    grid = (int(pl.cdiv(N, tile_n)),)

    wdt = jnp.bfloat16   # MXU-native for the wide (W,W) weights

    # --- Pack pts_linears weights -------------------------------------------
    w0, b0 = params["pts"][0]
    wmid, bpts = [], [b0]
    wskip = jnp.zeros((input_ch, W), jnp.float32)
    for i in range(1, D):
        w, b = params["pts"][i]
        if skip is not None and (i - 1) == skip:
            wskip = w[:input_ch, :]           # multiplies input_pts (cat order)
            wmid.append(w[input_ch:, :])      # multiplies previous activation
        else:
            wmid.append(w)
        bpts.append(b)
    w0 = w0.astype(jnp.float32)                                # (input_ch, W)
    wskip = wskip.astype(jnp.float32)                          # (input_ch, W)
    wmid = jnp.stack(wmid).astype(wdt)                         # (D-1, W, W)
    bpts = jnp.stack(bpts).astype(jnp.float32)                 # (D, W)

    if use_viewdirs:
        out_dim = 4
        wfeat, bfeat = params["feature"]
        walpha, balpha = params["alpha"]
        wviews, bviews = params["views"]
        wrgb, brgb = params["rgb"]
        args = (
            x, w0, wskip, wmid, bpts,
            wfeat.astype(wdt),                                  # (W, W)
            bfeat.reshape(1, -1).astype(jnp.float32),           # (1, W)
            walpha.reshape(1, W).astype(jnp.float32),           # (1, W) row vec
            balpha.reshape(1, 1).astype(jnp.float32),           # (1, 1)
            wviews[:W, :].astype(wdt),                          # (W, W//2)
            wviews[W:, :].astype(jnp.float32),                  # (views, W//2)
            bviews.reshape(1, -1).astype(jnp.float32),          # (1, W//2)
            jnp.transpose(wrgb).astype(jnp.float32),            # (3, W//2)
            brgb.reshape(1, -1).astype(jnp.float32),            # (1, 3)
        )
        kernel = functools.partial(_nerf_viewdirs_kernel, D=D, W=W, skip=skip,
                                   input_ch=input_ch,
                                   input_ch_views=input_ch_views)
        head_flops = (2 * W                                   # alpha (VPU)
                      + 2 * W * W                             # feature
                      + 2 * W * (W // 2)                      # views (feature half)
                      + 2 * input_ch_views * (W // 2)         # views (dir half)
                      + 2 * (W // 2) * 3)                     # rgb (VPU)
    else:
        out_dim = output_ch
        wout, bout = params["output"]
        args = (x, w0, wskip, wmid, bpts, wout.astype(wdt),
                bout.reshape(1, -1).astype(jnp.float32))
        kernel = functools.partial(_nerf_kernel, D=D, W=W, skip=skip,
                                   input_ch=input_ch)
        head_flops = 2 * W * output_ch

    def full_spec(arr):
        nd = arr.ndim
        return pl.BlockSpec(arr.shape, lambda i, _nd=nd: (0,) * _nd)

    x_spec = pl.BlockSpec((tile_n, input_ch + input_ch_views), lambda i: (i, 0))
    in_specs = [x_spec] + [full_spec(a) for a in args[1:]]

    # Advisory cost estimate so XLA schedules/overlaps this compute-heavy call.
    trunk_flops = (2 * input_ch * W                           # first layer
                   + (2 * input_ch * W if skip is not None else 0)
                   + 2 * (D - 1) * W * W)
    flops = N * (trunk_flops + head_flops)
    weight_bytes = sum(int(np.prod(a.shape)) * a.dtype.itemsize
                       for a in args[1:])
    bytes_accessed = (weight_bytes + int(x.size) * x.dtype.itemsize
                      + N * out_dim * 4)

    out = pl.pallas_call(
        kernel,
        out_shape=jax.ShapeDtypeStruct((N, out_dim), jnp.float32),
        grid=grid,
        in_specs=in_specs,
        out_specs=pl.BlockSpec((tile_n, out_dim), lambda i: (i, 0)),
        compiler_params=pltpu.CompilerParams(
            dimension_semantics=("parallel",),
            vmem_limit_bytes=vmem_limit_bytes),
        cost_estimate=pl.CostEstimate(flops=flops, transcendentals=0,
                                      bytes_accessed=bytes_accessed),
    )(*args)
    return out


def init_nerf_params(key, D=8, W=256, input_ch=3, input_ch_views=3,
                     output_ch=4, skips=(4,), use_viewdirs=False):
    """Deterministic init matching nn.Linear default (uniform +-1/sqrt(fan_in))."""
    def linear(k, fan_in, fan_out):
        kw, kb = jax.random.split(k)
        bound = 1.0 / np.sqrt(fan_in)
        w = jax.random.uniform(kw, (fan_in, fan_out), jnp.float32, -bound, bound)
        b = jax.random.uniform(kb, (fan_out,), jnp.float32, -bound, bound)
        return w, b

    keys = jax.random.split(key, D + 6)
    params = {"pts": []}
    in_dims = [input_ch] + [W + input_ch if (j - 1) in skips else W
                            for j in range(1, D)]
    for i in range(D):
        params["pts"].append(linear(keys[i], in_dims[i], W))
    if use_viewdirs:
        params["feature"] = linear(keys[D], W, W)
        params["alpha"] = linear(keys[D + 1], W, 1)
        params["views"] = linear(keys[D + 2], W + input_ch_views, W // 2)
        params["rgb"] = linear(keys[D + 3], W // 2, 3)
    else:
        params["output"] = linear(keys[D], W, output_ch)
    return params


def nerf_reference(x, params, *, D=8, input_ch=3, input_ch_views=3,
                   skips=(4,), use_viewdirs=False):
    """Pure-JAX mirror of the torch forward (with concatenations), for checking."""
    input_pts = x[:, :input_ch]
    input_views = x[:, input_ch:input_ch + input_ch_views]
    h = input_pts
    for i in range(D):
        w, b = params["pts"][i]
        h = jnp.maximum(h @ w + b, 0.0)
        if i in skips:
            h = jnp.concatenate([input_pts, h], axis=-1)
    if use_viewdirs:
        wa, ba = params["alpha"]
        alpha = h @ wa + ba
        wf, bf = params["feature"]
        feature = h @ wf + bf
        h = jnp.concatenate([feature, input_views], axis=-1)
        wv, bv = params["views"]
        h = jnp.maximum(h @ wv + bv, 0.0)
        wr, br = params["rgb"]
        rgb = h @ wr + br
        return jnp.concatenate([rgb, alpha], axis=-1)
    wo, bo = params["output"]
    return h @ wo + bo


if __name__ == "__main__":
    key = jax.random.PRNGKey(0)
    kx, kp0, kp1 = jax.random.split(key, 3)

    N = 256                       # number of sample points (rows)
    x = jax.random.normal(kx, (N, 3 + 3), jnp.float32)   # [N, input_ch + input_ch_views]

    ok = True
    for use_viewdirs, kp in ((False, kp0), (True, kp1)):
        params = init_nerf_params(kp, use_viewdirs=use_viewdirs)
        out = nerf_forward(x, params, use_viewdirs=use_viewdirs)
        out = jax.block_until_ready(out)
        ref = nerf_reference(x, params, use_viewdirs=use_viewdirs)
        if not np.allclose(np.asarray(out), np.asarray(ref), rtol=2e-2, atol=2e-2):
            ok = False
            print("mismatch (use_viewdirs=%s): max abs err %.3e" %
                  (use_viewdirs, float(np.max(np.abs(np.asarray(out) - np.asarray(ref))))))

    if ok:
        print("KERNEL_OK")
    else:
        raise SystemExit(1)
</pallas_src>

<mosaic_0001>
module attributes {stable_mosaic.version = 11 : i64} {
  func.func @_nerf_kernel(%arg0: i32, %arg1: memref<128x6xf32, #tpu.memory_space<vmem>>, %arg2: memref<3x256xf32, #tpu.memory_space<vmem>>, %arg3: memref<3x256xf32, #tpu.memory_space<vmem>>, %arg4: memref<7x256x256xbf16, #tpu.memory_space<vmem>>, %arg5: memref<8x256xf32, #tpu.memory_space<vmem>>, %arg6: memref<256x4xbf16, #tpu.memory_space<vmem>>, %arg7: memref<1x4xf32, #tpu.memory_space<vmem>>, %arg8: memref<128x4xf32, #tpu.memory_space<vmem>>) attributes {dimension_semantics = [#tpu.dimension_semantics<parallel>], iteration_bounds = array<i64: 2>, scalar_prefetch = 0 : i64, scratch_operands = 0 : i64, tpu.core_type = #tpu.core_type<tc>, window_params = [{transform_indices = @transform_0, window_bounds = array<i64: 128, 6>}, {pipeline_mode = #tpu.pipeline_mode<synchronous>, transform_indices = @transform_1, window_bounds = array<i64: 3, 256>}, {pipeline_mode = #tpu.pipeline_mode<synchronous>, transform_indices = @transform_2, window_bounds = array<i64: 3, 256>}, {pipeline_mode = #tpu.pipeline_mode<synchronous>, transform_indices = @transform_3, window_bounds = array<i64: 7, 256, 256>}, {pipeline_mode = #tpu.pipeline_mode<synchronous>, transform_indices = @transform_4, window_bounds = array<i64: 8, 256>}, {pipeline_mode = #tpu.pipeline_mode<synchronous>, transform_indices = @transform_5, window_bounds = array<i64: 256, 4>}, {pipeline_mode = #tpu.pipeline_mode<synchronous>, transform_indices = @transform_6, window_bounds = array<i64: 1, 4>}, {transform_indices = @transform_7, window_bounds = array<i64: 128, 4>}]} {
    %c0 = arith.constant 0 : index
    %c0_0 = arith.constant 0 : index
    %0 = vector.load %arg1[%c0, %c0_0] : memref<128x6xf32, #tpu.memory_space<vmem>>, vector<128x6xf32>
    %1 = vector.extract_strided_slice %0 {offsets = [0, 0], sizes = [128, 3], strides = [1, 1]} : vector<128x6xf32> to vector<128x3xf32>
    %c0_1 = arith.constant 0 : index
    %c0_2 = arith.constant 0 : index
    %2 = vector.load %arg5[%c0_1, %c0_2] : memref<8x256xf32, #tpu.memory_space<vmem>>, vector<8x256xf32>
    %c0_3 = arith.constant 0 : index
    %c0_4 = arith.constant 0 : index
    %3 = vector.load %arg2[%c0_3, %c0_4] : memref<3x256xf32, #tpu.memory_space<vmem>>, vector<3x256xf32>
    %cst = arith.constant dense<0.000000e+00> : vector<128x256xf32>
    %4 = tpu.matmul %1, %3, %cst {dimension_numbers = #tpu.dot_dimension_numbers<[1], [0], [0], [1], [0, 0, 1, 1], [], []>} : vector<128x3xf32>, vector<3x256xf32>, vector<128x256xf32> -> vector<128x256xf32>
    %5 = vector.extract_strided_slice %2 {offsets = [0, 0], sizes = [1, 256], strides = [1, 1]} : vector<8x256xf32> to vector<1x256xf32>
    %6 = vector.broadcast %5 : vector<1x256xf32> to vector<128x256xf32>
    %7 = arith.addf %4, %6 : vector<128x256xf32>
    %cst_5 = arith.constant 0.000000e+00 : f32
    %8 = vector.broadcast %cst_5 : f32 to vector<128x256xf32>
    %9 = arith.maximumf %7, %8 : vector<128x256xf32>
    %10 = arith.truncf %9 : vector<128x256xf32> to vector<128x256xbf16>
    %c0_6 = arith.constant 0 : index
    %c0_7 = arith.constant 0 : index
    %c0_8 = arith.constant 0 : index
    %11 = vector.load %arg4[%c0_6, %c0_7, %c0_8] : memref<7x256x256xbf16, #tpu.memory_space<vmem>>, vector<1x256x256xbf16>
    %12 = vector.shape_cast %11 : vector<1x256x256xbf16> to vector<256x256xbf16>
    %cst_9 = arith.constant dense<0.000000e+00> : vector<128x256xf32>
    %13 = tpu.matmul %10, %12, %cst_9 {dimension_numbers = #tpu.dot_dimension_numbers<[1], [0], [0], [1], [0, 0, 1, 1], [], []>} : vector<128x256xbf16>, vector<256x256xbf16>, vector<128x256xf32> -> vector<128x256xf32>
    %14 = vector.extract_strided_slice %2 {offsets = [1, 0], sizes = [1, 256], strides = [1, 1]} : vector<8x256xf32> to vector<1x256xf32>
    %15 = vector.broadcast %14 : vector<1x256xf32> to vector<128x256xf32>
    %16 = arith.addf %13, %15 : vector<128x256xf32>
    %cst_10 = arith.constant 0.000000e+00 : f32
    %17 = vector.broadcast %cst_10 : f32 to vector<128x256xf32>
    %18 = arith.maximumf %16, %17 : vector<128x256xf32>
    %19 = arith.truncf %18 : vector<128x256xf32> to vector<128x256xbf16>
    %c1 = arith.constant 1 : index
    %c0_11 = arith.constant 0 : index
    %c0_12 = arith.constant 0 : index
    %20 = vector.load %arg4[%c1, %c0_11, %c0_12] : memref<7x256x256xbf16, #tpu.memory_space<vmem>>, vector<1x256x256xbf16>
    %21 = vector.shape_cast %20 : vector<1x256x256xbf16> to vector<256x256xbf16>
    %cst_13 = arith.constant dense<0.000000e+00> : vector<128x256xf32>
    %22 = tpu.matmul %19, %21, %cst_13 {dimension_numbers = #tpu.dot_dimension_numbers<[1], [0], [0], [1], [0, 0, 1, 1], [], []>} : vector<128x256xbf16>, vector<256x256xbf16>, vector<128x256xf32> -> vector<128x256xf32>
    %23 = vector.extract_strided_slice %2 {offsets = [2, 0], sizes = [1, 256], strides = [1, 1]} : vector<8x256xf32> to vector<1x256xf32>
    %24 = vector.broadcast %23 : vector<1x256xf32> to vector<128x256xf32>
    %25 = arith.addf %22, %24 : vector<128x256xf32>
    %cst_14 = arith.constant 0.000000e+00 : f32
    %26 = vector.broadcast %cst_14 : f32 to vector<128x256xf32>
    %27 = arith.maximumf %25, %26 : vector<128x256xf32>
    %28 = arith.truncf %27 : vector<128x256xf32> to vector<128x256xbf16>
    %c2 = arith.constant 2 : index
    %c0_15 = arith.constant 0 : index
    %c0_16 = arith.constant 0 : index
    %29 = vector.load %arg4[%c2, %c0_15, %c0_16] : memref<7x256x256xbf16, #tpu.memory_space<vmem>>, vector<1x256x256xbf16>
    %30 = vector.shape_cast %29 : vector<1x256x256xbf16> to vector<256x256xbf16>
    %cst_17 = arith.constant dense<0.000000e+00> : vector<128x256xf32>
    %31 = tpu.matmul %28, %30, %cst_17 {dimension_numbers = #tpu.dot_dimension_numbers<[1], [0], [0], [1], [0, 0, 1, 1], [], []>} : vector<128x256xbf16>, vector<256x256xbf16>, vector<128x256xf32> -> vector<128x256xf32>
    %32 = vector.extract_strided_slice %2 {offsets = [3, 0], sizes = [1, 256], strides = [1, 1]} : vector<8x256xf32> to vector<1x256xf32>
    %33 = vector.broadcast %32 : vector<1x256xf32> to vector<128x256xf32>
    %34 = arith.addf %31, %33 : vector<128x256xf32>
    %cst_18 = arith.constant 0.000000e+00 : f32
    %35 = vector.broadcast %cst_18 : f32 to vector<128x256xf32>
    %36 = arith.maximumf %34, %35 : vector<128x256xf32>
    %37 = arith.truncf %36 : vector<128x256xf32> to vector<128x256xbf16>
    %c3 = arith.constant 3 : index
    %c0_19 = arith.constant 0 : index
    %c0_20 = arith.constant 0 : index
    %38 = vector.load %arg4[%c3, %c0_19, %c0_20] : memref<7x256x256xbf16, #tpu.memory_space<vmem>>, vector<1x256x256xbf16>
    %39 = vector.shape_cast %38 : vector<1x256x256xbf16> to vector<256x256xbf16>
    %cst_21 = arith.constant dense<0.000000e+00> : vector<128x256xf32>
    %40 = tpu.matmul %37, %39, %cst_21 {dimension_numbers = #tpu.dot_dimension_numbers<[1], [0], [0], [1], [0, 0, 1, 1], [], []>} : vector<128x256xbf16>, vector<256x256xbf16>, vector<128x256xf32> -> vector<128x256xf32>
    %41 = vector.extract_strided_slice %2 {offsets = [4, 0], sizes = [1, 256], strides = [1, 1]} : vector<8x256xf32> to vector<1x256xf32>
    %42 = vector.broadcast %41 : vector<1x256xf32> to vector<128x256xf32>
    %43 = arith.addf %40, %42 : vector<128x256xf32>
    %cst_22 = arith.constant 0.000000e+00 : f32
    %44 = vector.broadcast %cst_22 : f32 to vector<128x256xf32>
    %45 = arith.maximumf %43, %44 : vector<128x256xf32>
    %46 = arith.truncf %45 : vector<128x256xf32> to vector<128x256xbf16>
    %c4 = arith.constant 4 : index
    %c0_23 = arith.constant 0 : index
    %c0_24 = arith.constant 0 : index
    %47 = vector.load %arg4[%c4, %c0_23, %c0_24] : memref<7x256x256xbf16, #tpu.memory_space<vmem>>, vector<1x256x256xbf16>
    %48 = vector.shape_cast %47 : vector<1x256x256xbf16> to vector<256x256xbf16>
    %cst_25 = arith.constant dense<0.000000e+00> : vector<128x256xf32>
    %49 = tpu.matmul %46, %48, %cst_25 {dimension_numbers = #tpu.dot_dimension_numbers<[1], [0], [0], [1], [0, 0, 1, 1], [], []>} : vector<128x256xbf16>, vector<256x256xbf16>, vector<128x256xf32> -> vector<128x256xf32>
    %50 = vector.extract_strided_slice %2 {offsets = [5, 0], sizes = [1, 256], strides = [1, 1]} : vector<8x256xf32> to vector<1x256xf32>
    %51 = vector.broadcast %50 : vector<1x256xf32> to vector<128x256xf32>
    %52 = arith.addf %49, %51 : vector<128x256xf32>
    %c0_26 = arith.constant 0 : index
    %c0_27 = arith.constant 0 : index
    %53 = vector.load %arg3[%c0_26, %c0_27] : memref<3x256xf32, #tpu.memory_space<vmem>>, vector<3x256xf32>
    %cst_28 = arith.constant dense<0.000000e+00> : vector<128x256xf32>
    %54 = tpu.matmul %1, %53, %cst_28 {dimension_numbers = #tpu.dot_dimension_numbers<[1], [0], [0], [1], [0, 0, 1, 1], [], []>} : vector<128x3xf32>, vector<3x256xf32>, vector<128x256xf32> -> vector<128x256xf32>
    %55 = arith.addf %52, %54 : vector<128x256xf32>
    %cst_29 = arith.constant 0.000000e+00 : f32
    %56 = vector.broadcast %cst_29 : f32 to vector<128x256xf32>
    %57 = arith.maximumf %55, %56 : vector<128x256xf32>
    %58 = arith.truncf %57 : vector<128x256xf32> to vector<128x256xbf16>
    %c5 = arith.constant 5 : index
    %c0_30 = arith.constant 0 : index
    %c0_31 = arith.constant 0 : index
    %59 = vector.load %arg4[%c5, %c0_30, %c0_31] : memref<7x256x256xbf16, #tpu.memory_space<vmem>>, vector<1x256x256xbf16>
    %60 = vector.shape_cast %59 : vector<1x256x256xbf16> to vector<256x256xbf16>
    %cst_32 = arith.constant dense<0.000000e+00> : vector<128x256xf32>
    %61 = tpu.matmul %58, %60, %cst_32 {dimension_numbers = #tpu.dot_dimension_numbers<[1], [0], [0], [1], [0, 0, 1, 1], [], []>} : vector<128x256xbf16>, vector<256x256xbf16>, vector<128x256xf32> -> vector<128x256xf32>
    %62 = vector.extract_strided_slice %2 {offsets = [6, 0], sizes = [1, 256], strides = [1, 1]} : vector<8x256xf32> to vector<1x256xf32>
    %63 = vector.broadcast %62 : vector<1x256xf32> to vector<128x256xf32>
    %64 = arith.addf %61, %63 : vector<128x256xf32>
    %cst_33 = arith.constant 0.000000e+00 : f32
    %65 = vector.broadcast %cst_33 : f32 to vector<128x256xf32>
    %66 = arith.maximumf %64, %65 : vector<128x256xf32>
    %67 = arith.truncf %66 : vector<128x256xf32> to vector<128x256xbf16>
    %c6 = arith.constant 6 : index
    %c0_34 = arith.constant 0 : index
    %c0_35 = arith.constant 0 : index
    %68 = vector.load %arg4[%c6, %c0_34, %c0_35] : memref<7x256x256xbf16, #tpu.memory_space<vmem>>, vector<1x256x256xbf16>
    %69 = vector.shape_cast %68 : vector<1x256x256xbf16> to vector<256x256xbf16>
    %cst_36 = arith.constant dense<0.000000e+00> : vector<128x256xf32>
    %70 = tpu.matmul %67, %69, %cst_36 {dimension_numbers = #tpu.dot_dimension_numbers<[1], [0], [0], [1], [0, 0, 1, 1], [], []>} : vector<128x256xbf16>, vector<256x256xbf16>, vector<128x256xf32> -> vector<128x256xf32>
    %71 = vector.extract_strided_slice %2 {offsets = [7, 0], sizes = [1, 256], strides = [1, 1]} : vector<8x256xf32> to vector<1x256xf32>
    %72 = vector.broadcast %71 : vector<1x256xf32> to vector<128x256xf32>
    %73 = arith.addf %70, %72 : vector<128x256xf32>
    %cst_37 = arith.constant 0.000000e+00 : f32
    %74 = vector.broadcast %cst_37 : f32 to vector<128x256xf32>
    %75 = arith.maximumf %73, %74 : vector<128x256xf32>
    %76 = arith.truncf %75 : vector<128x256xf32> to vector<128x256xbf16>
    %c0_38 = arith.constant 0 : index
    %c0_39 = arith.constant 0 : index
    %77 = vector.load %arg6[%c0_38, %c0_39] : memref<256x4xbf16, #tpu.memory_space<vmem>>, vector<256x4xbf16>
    %cst_40 = arith.constant dense<0.000000e+00> : vector<128x4xf32>
    %78 = tpu.matmul %76, %77, %cst_40 {dimension_numbers = #tpu.dot_dimension_numbers<[1], [0], [0], [1], [0, 0, 1, 1], [], []>} : vector<128x256xbf16>, vector<256x4xbf16>, vector<128x4xf32> -> vector<128x4xf32>
    %c0_41 = arith.constant 0 : index
    %c0_42 = arith.constant 0 : index
    %79 = vector.load %arg7[%c0_41, %c0_42] : memref<1x4xf32, #tpu.memory_space<vmem>>, vector<1x4xf32>
    %80 = vector.broadcast %79 : vector<1x4xf32> to vector<128x4xf32>
    %81 = arith.addf %78, %80 : vector<128x4xf32>
    %c0_43 = arith.constant 0 : index
    %c0_44 = arith.constant 0 : index
    %82 = vector.load %arg8[%c0_43, %c0_44] : memref<128x4xf32, #tpu.memory_space<vmem>>, vector<128x4xf32>
    tpu.vector_store %arg8[%c0_43, %c0_44], %81 {strides = array<i32>} : memref<128x4xf32, #tpu.memory_space<vmem>>, vector<128x4xf32>,
    return
  }
  func.func @transform_0(%arg0: i32) -> (i32, i32) {
    %c0_i32 = arith.constant 0 : i32
    %c0_i32_0 = arith.constant 0 : i32
    return %arg0, %c0_i32 : i32, i32
  }
  func.func @transform_1(%arg0: i32) -> (i32, i32) {
    %c0_i32 = arith.constant 0 : i32
    %c0_i32_0 = arith.constant 0 : i32
    %c0_i32_1 = arith.constant 0 : i32
    return %c0_i32, %c0_i32_0 : i32, i32
  }
  func.func @transform_2(%arg0: i32) -> (i32, i32) {
    %c0_i32 = arith.constant 0 : i32
    %c0_i32_0 = arith.constant 0 : i32
    %c0_i32_1 = arith.constant 0 : i32
    return %c0_i32, %c0_i32_0 : i32, i32
  }
  func.func @transform_3(%arg0: i32) -> (i32, i32, i32) {
    %c0_i32 = arith.constant 0 : i32
    %c0_i32_0 = arith.constant 0 : i32
    %c0_i32_1 = arith.constant 0 : i32
    %c0_i32_2 = arith.constant 0 : i32
    return %c0_i32, %c0_i32_0, %c0_i32_1 : i32, i32, i32
  }
  func.func @transform_4(%arg0: i32) -> (i32, i32) {
    %c0_i32 = arith.constant 0 : i32
    %c0_i32_0 = arith.constant 0 : i32
    %c0_i32_1 = arith.constant 0 : i32
    return %c0_i32, %c0_i32_0 : i32, i32
  }
  func.func @transform_5(%arg0: i32) -> (i32, i32) {
    %c0_i32 = arith.constant 0 : i32
    %c0_i32_0 = arith.constant 0 : i32
    %c0_i32_1 = arith.constant 0 : i32
    return %c0_i32, %c0_i32_0 : i32, i32
  }
  func.func @transform_6(%arg0: i32) -> (i32, i32) {
    %c0_i32 = arith.constant 0 : i32
    %c0_i32_0 = arith.constant 0 : i32
    %c0_i32_1 = arith.constant 0 : i32
    return %c0_i32, %c0_i32_0 : i32, i32
  }
  func.func @transform_7(%arg0: i32) -> (i32, i32) {
    %c0_i32 = arith.constant 0 : i32
    %c0_i32_0 = arith.constant 0 : i32
    return %arg0, %c0_i32 : i32, i32
  }
}

</mosaic_0001>

<bundles_post_ra>
// kernel: tpu_custom_call.1
= control target key start
LH: loop header
LB: loop body
LE: loop exit
PB: predicated region body
PF: predicated region fallthrough
CT: control target
= control target key end

     0   :  { %12 = vsyncpa [#allocation3], 0  ;;  %s4490_s24 = smov 0   ;;  %s5228_s0 = inlined_call_operand.vmem [shape: f32[256,6], index: 0, kind: input, shape index: {}]   ;;  %s5229_s1 = inlined_call_operand.vmem [shape: f32[3,256], index: 1, kind: input, shape index: {}]   ;;  %s5230_s2 = inlined_call_operand.vmem [shape: f32[3,256], index: 2, kind: input, shape index: {}]   ;;  %s5231_s3 = inlined_call_operand.hbm [shape: bf16[7,256,256], index: 3, kind: input, shape index: {}]   ;;  %s5232_s4 = inlined_call_operand.vmem [shape: f32[8,256], index: 4, kind: input, shape index: {}]   ;;  %s5233_s5 = inlined_call_operand.vmem [shape: bf16[256,4], index: 5, kind: input, shape index: {}]   ;;  %s5234_s6 = inlined_call_operand.vmem [shape: f32[1,4], index: 6, kind: input, shape index: {}]   ;;  %s5235_s7 = inlined_call_operand.vmem [shape: f32[256,4], index: 7, kind: output, shape index: {}]  }
   0x1 LB: > { %s3640_s25 = sadd.s32 4294967295, %s4444_s24   ;;  %p3642_p0 = scmp.ge.s32.totalorder %s4444_s24, 1  ;;  %s4444_s24 = sphi %s4490_s24, %s18_s24  }
   0x2   : > { %p201_p1 = scmp.lt.s32.totalorder %s4444_s24, 3  ;;  %s4446_s26 = smov [#allocation2]  }
   0x3   : > { %s219_s27 = sshll.u32 %s4446_s26, 4  ;;  %p4504_p3 = scmp.eq.s32.totalorder %s3640_s25, 0  ;;  %s220_s27 = int_to_ptr.vmem [resolvable:$true] %s219_s27 }
   0x4   : > { %p4498_p2 = pnand %p3642_p0, %p201_p1  ;;  %s4406_s10 = scalar_lea.hbm %s5231_s3, 28672 }
   0x5   : > { %s5240_s29 = scalar_select %p4504_p3, 1, 0 }
   0x6   : > { %s5239_s28 = scalar_select %p4498_p2, 1, 0 }
   0x7   : > { %p4014_p4 = pneg %p4498_p2  ;;  %p4407_p6 = scmp.ne.s32.totalorder %s5231_s3, %s4406_s10 }
   0x8   : > { %p4413_p10 = scmp.lt.u32.totalorder %s4406_s10, %s5231_s3 }
   0x9   : > { %p4512_p5 = pnand %p4504_p3, %p4014_p4 }
   0xb   : > { %p4408_p7 = pneg %p4512_p5 }
   0xd   : > { %p4409_p8 = pnand %p4408_p7, %p4407_p6 }
   0xf   : > { %p4410_p9 = pneg %p4409_p8 }
  0x11   : > { %p4415_p11 = pnand %p4413_p10, %p4410_p9 }
  0x13   : > { %4418 = shalt.err (!%p4415_p11)
}
  0x14   : > { %s4419_s15 = scalar_lea.vmem %s220_s27, 28672  ;;  %p4427_p1 = scmp.lt.s32.totalorder %s220_s27, %s220_s27 }
  0x15   : > { %p4420_p12 = scmp.ne.s32.totalorder %s220_s27, %s4419_s15  ;;  %p4428_p4 = scmp.lt.s32.totalorder %s4419_s15, %s4419_s15 }
  0x17   : > { %p4422_p13 = pnand %p4420_p12, %p4408_p7  ;;  %p4429_p3 = por %p4428_p4, %p4427_p1 }
  0x19   : > { %p4423_p0 = pneg %p4422_p13 }
  0x1b   : > { %p4430_p2 = pnand %p4429_p3, %p4423_p0 }
  0x1d   : > { %4433 = shalt.err (!%p4430_p2)
}
  0x1e   : > { %s4447_s16 = smov 128   ;;  %s4448_s17 = smov 8  }
  0x1f   : > { %4017 = dma.hbm_to_vmem [thread:$0]  (!%p4512_p5), %s5231_s3, 28672, %s220_s27, [#allocation3], %s4447_s16, %s4447_s16, %s4448_s17  }
  0x20   : > { %p5242_p6 = scmp.ne.s32.totalorder %s5239_s28, 0 }
  0x21   : > { %p5243_p8 = scmp.ne.s32.totalorder (!%p5242_p6), %s5240_s29, 0 }
  0x22   : > { %253 = sbr.rel (%p5242_p6) target bundleno = 2105 (0x839), region = 48 }
  0x29   : > { %4439 = dma.done.wait (%p5243_p8), [#allocation3], 28672  }
  0x2a   : > { %4441 = vsyncadd (%p5243_p8), [#allocation3], 4294938624  ;;  %s3647_s20 = sshll.u32 %s3640_s25, 4  ;;  %v4449_v0 = vmov 0.0   ;;  %v316_v1 = vld [vmem:[%s5229_s1] sm:$0x77] }
  0x2b   : > { %445 = vmatprep.mubr.f32.mxu0 %v4449_v0  ;;  %p286_p2 = scmp.lt.s32.totalorder %s3647_s20, 31  ;;  %vm376_vm0 = vcmask 1042432   ;;  %v326_v2 = vcombine.high %v316_v1, %v316_v1  ;;  %vm327_vm1 = vcmask 23552   ;;  %v4033_v5 = vld [vmem:[#allocation2 + $0x4] ss:$8 sps:$4 sm:$0xff]   ;;  %vm3555_vm2 = vcmask 31744  }
  0x2c   : > { %v4035_v6 = vld [vmem:[#allocation2] ss:$8 sps:$4 sm:$0xff]   ;;  %v4036_v7 = vld [vmem:[#allocation2 + $0x14] ss:$8 sps:$4 sm:$0xff]   ;;  %790 = vmatprep.subr.bf16.mxu1 %v4033_v5  ;;  %v4038_v8 = vld [vmem:[#allocation2 + $0x10] ss:$8 sps:$4 sm:$0xff]  }
  0x2d   : > { %s5245_s20 = smov (!%p286_p2, %s3647_s20), 31  ;;  %3651 = vmatprep.subr.msk.mxu0 %vm376_vm0, %v326_v2  ;;  %791 = vmatpush1.bf16.msra.mxu1 %v4035_v6  ;;  %v4039_v10 = vld [vmem:[#allocation2 + $0x24] ss:$8 sps:$4 sm:$0xff]   ;;  %v4041_v11 = vld [vmem:[#allocation2 + $0x20] ss:$8 sps:$4 sm:$0xff]  }
  0x2e   : > { %s3648_s21 = sshll.u32 %s5245_s20, 3  ;;  %3652 = vmatpush1.msk.msra.mxu0 %vm376_vm0, %v316_v1  ;;  %792 = vmatprep.subr.bf16.mxu1 %v4036_v7  ;;  %v4042_v13 = vld [vmem:[#allocation2 + $0x34] ss:$8 sps:$4 sm:$0xff]   ;;  %v4044_v14 = vld [vmem:[#allocation2 + $0x30] ss:$8 sps:$4 sm:$0xff]  }
  0x2f   : > { %s4549_s26 = scalar_lea.vmem %s5228_s0, %s3648_s21  ;;  %v4045_v16 = vld [vmem:[#allocation2 + $0x44] ss:$8 sps:$4 sm:$0xff]   ;;  %v4047_v17 = vld [vmem:[#allocation2 + $0x40] ss:$8 sps:$4 sm:$0xff]   ;;  %v4048_v19 = vld [vmem:[#allocation2 + $0x54] ss:$8 sps:$4 sm:$0xff]   ;;  %s5175_s15 = scalar_lea.vmem %s5235_s7, %s3648_s21 }
  0x30   : > { %v298_v3 = vld [vmem:[%s4549_s26] sm:$0xff]  ;;  %v299_v4 = vld [vmem:[%s4549_s26 + $0x8] sm:$0xff]  ;;  %v300_v9 = vld [vmem:[%s4549_s26 + $0x10] sm:$0xff] }
  0x31   : > { %3653 = vmatmul.mubr.msk.f32.vlgmr.msra.gmra.mrb[0].mxu0 %vm327_vm1, %v298_v3  ;;  %793 = vmatpush1.bf16.msra.mxu1 %v4038_v8  ;;  %v301_v12 = vld [vmem:[%s4549_s26 + $0x18] sm:$0xff]  ;;  %v302_v15 = vld [vmem:[%s4549_s26 + $0x20] sm:$0xff]  ;;  %v303_v18 = vld [vmem:[%s4549_s26 + $0x28] sm:$0xff] }
  0x32   : > { %451 = vmatprep.mubr.f32.mxu0 %v4449_v0  ;;  %794 = vmatprep.subr.bf16.mxu1 %v4039_v10  ;;  %v4050_v20 = vld [vmem:[#allocation2 + $0x50] ss:$8 sps:$4 sm:$0xff]   ;;  %v4051_v22 = vld [vmem:[#allocation2 + $0x64] ss:$8 sps:$4 sm:$0xff]   ;;  %v4053_v23 = vld [vmem:[#allocation2 + $0x60] ss:$8 sps:$4 sm:$0xff]  }
  0x33   : > { %v304_v21 = vld [vmem:[%s4549_s26 + $0x30] sm:$0xff]  ;;  %v305_v24 = vld [vmem:[%s4549_s26 + $0x38] sm:$0xff]  ;;  %v306_v27 = vld [vmem:[%s4549_s26 + $0x40] sm:$0xff] }
  0x34   : > { %v4054_v25 = vld [vmem:[#allocation2 + $0x74] ss:$8 sps:$4 sm:$0xff]   ;;  %v4056_v26 = vld [vmem:[#allocation2 + $0x70] ss:$8 sps:$4 sm:$0xff]   ;;  %v4057_v28 = vld [vmem:[#allocation2 + $0x84] ss:$8 sps:$4 sm:$0xff]  }
  0x35   : > { %3654 = vmatmul.mubr.msk.f32.gmra.mrb[2].mxu0 %vm327_vm1, %v299_v4  ;;  %795 = vmatpush1.bf16.msra.mxu1 %v4041_v11  ;;  %v4059_v29 = vld [vmem:[#allocation2 + $0x80] ss:$8 sps:$4 sm:$0xff]   ;;  %v4060_v31 = vld [vmem:[#allocation2 + $0x94] ss:$8 sps:$4 sm:$0xff]   ;;  %v4062_v32 = vld [vmem:[#allocation2 + $0x90] ss:$8 sps:$4 sm:$0xff]  }
  0x36   : > { %457 = vmatprep.mubr.f32.mxu0 %v4449_v0  ;;  %796 = vmatprep.subr.bf16.mxu1 %v4042_v13  ;;  %v307_v30 = vld [vmem:[%s4549_s26 + $0x48] sm:$0xff]  ;;  %v308_v33 = vld [vmem:[%s4549_s26 + $0x50] sm:$0xff]  ;;  %v309_v36 = vld [vmem:[%s4549_s26 + $0x58] sm:$0xff]  ;;  %v317_v13 = vlaneseq }
  0x37   : > { %v4063_v34 = vld [vmem:[#allocation2 + $0xa4] ss:$8 sps:$4 sm:$0xff]   ;;  %v4065_v35 = vld [vmem:[#allocation2 + $0xa0] ss:$8 sps:$4 sm:$0xff]   ;;  %v4066_v37 = vld [vmem:[#allocation2 + $0xb4] ss:$8 sps:$4 sm:$0xff]  }
  0x38   : > { %v4068_v38 = vld [vmem:[#allocation2 + $0xb0] ss:$8 sps:$4 sm:$0xff]   ;;  %v310_v39 = vld [vmem:[%s4549_s26 + $0x60] sm:$0xff]  ;;  %v311_v42 = vld [vmem:[%s4549_s26 + $0x68] sm:$0xff] }
  0x39   : > { %3655 = vmatmul.mubr.msk.f32.gmra.mrb[4].mxu0 %vm327_vm1, %v300_v9  ;;  %797 = vmatpush1.bf16.msra.mxu1 %v4044_v14  ;;  %v4069_v40 = vld [vmem:[#allocation2 + $0xc4] ss:$8 sps:$4 sm:$0xff]   ;;  %v4071_v41 = vld [vmem:[#allocation2 + $0xc0] ss:$8 sps:$4 sm:$0xff]   ;;  %v312_v43 = vld [vmem:[%s4549_s26 + $0x70] sm:$0xff] }
  0x3a   : > { %463 = vmatprep.mubr.f32.mxu0 %v4449_v0  ;;  %798 = vmatprep.subr.bf16.mxu1 %v4045_v16  ;;  %v313_v44 = vld [vmem:[%s4549_s26 + $0x78] sm:$0xff]  ;;  %v4075_v47 = vld [vmem:[#allocation2 + $0xe4] ss:$8 sps:$4 sm:$0xff]   ;;  %v4077_v48 = vld [vmem:[#allocation2 + $0xe0] ss:$8 sps:$4 sm:$0xff]   ;;  %v4603_v16 = vshrl.u32 %v317_v13, 7 }
  0x3b   : > { %v4072_v45 = vld [vmem:[#allocation2 + $0xd4] ss:$8 sps:$4 sm:$0xff]   ;;  %v4074_v46 = vld [vmem:[#allocation2 + $0xd0] ss:$8 sps:$4 sm:$0xff]   ;;  %v4081_v51 = vld [vmem:[#allocation2 + $0x100] ss:$8 sps:$4 sm:$0xff]  }
  0x3c   : > { %v4078_v49 = vld [vmem:[#allocation2 + $0xf4] ss:$8 sps:$4 sm:$0xff]   ;;  %v4080_v50 = vld [vmem:[#allocation2 + $0xf0] ss:$8 sps:$4 sm:$0xff]   ;;  %v4083_v52 = vld [vmem:[#allocation2 + $0x104] ss:$8 sps:$4 sm:$0xff]  }
  0x3d   : > { %3656 = vmatmul.mubr.msk.f32.gmra.mrb[6].mxu0 %vm327_vm1, %v301_v12  ;;  %799 = vmatpush1.bf16.msra.mxu1 %v4047_v17  ;;  %v4086_v53 = vld [vmem:[#allocation2 + $0x114] ss:$8 sps:$4 sm:$0xff]   ;;  %v4084_v54 = vld [vmem:[#allocation2 + $0x110] ss:$8 sps:$4 sm:$0xff]   ;;  %v4089_v55 = vld [vmem:[#allocation2 + $0x124] ss:$8 sps:$4 sm:$0xff]  }
  0x3e   : > { %469 = vmatprep.mubr.f32.mxu0 %v4449_v0  ;;  %800 = vmatprep.subr.bf16.mxu1 %v4048_v19  ;;  %v4087_v56 = vld [vmem:[#allocation2 + $0x120] ss:$8 sps:$4 sm:$0xff]   ;;  %v4092_v57 = vld [vmem:[#allocation2 + $0x134] ss:$8 sps:$4 sm:$0xff]   ;;  %v4090_v58 = vld [vmem:[#allocation2 + $0x130] ss:$8 sps:$4 sm:$0xff]  }
  0x3f   : > { %1152 = vmatprep.subr.bf16.mxu0 %v4083_v52  ;;  %v4095_v59 = vld [vmem:[#allocation2 + $0x144] ss:$8 sps:$4 sm:$0xff]   ;;  %v4093_v60 = vld [vmem:[#allocation2 + $0x140] ss:$8 sps:$4 sm:$0xff]   ;;  %v4098_v61 = vld [vmem:[#allocation2 + $0x154] ss:$8 sps:$4 sm:$0xff]  }
  0x40   : > { %1153 = vmatpush1.bf16.msra.mxu0 %v4081_v51  ;;  %v4096_v62 = vld [vmem:[#allocation2 + $0x150] ss:$8 sps:$4 sm:$0xff]   ;;  %v4101_v63 = vld [vmem:[#allocation2 + $0x164] ss:$8 sps:$4 sm:$0xff]   ;;  %v4099_v1 = vld [vmem:[#allocation2 + $0x160] ss:$8 sps:$4 sm:$0xff]  }
  0x41   : > { %3657 = vmatmul.mubr.msk.f32.gmra.mrb[8].mxu0 %vm327_vm1, %v302_v15  ;;  %801 = vmatpush1.bf16.msra.mxu1 %v4050_v20  ;;  %v4104_v2 = vld [vmem:[#allocation2 + $0x174] ss:$8 sps:$4 sm:$0xff]   ;;  %v4102_v3 = vld [vmem:[#allocation2 + $0x170] ss:$8 sps:$4 sm:$0xff]   ;;  %v4107_v4 = vld [vmem:[#allocation2 + $0x184] ss:$8 sps:$4 sm:$0xff]  }
  0x42   : > { %475 = vmatprep.mubr.f32.mxu0 %v4449_v0  ;;  %802 = vmatprep.subr.bf16.mxu1 %v4051_v22  ;;  %v4105_v5 = vld [vmem:[#allocation2 + $0x180] ss:$8 sps:$4 sm:$0xff]   ;;  %v4110_v6 = vld [vmem:[#allocation2 + $0x194] ss:$8 sps:$4 sm:$0xff]   ;;  %v4108_v7 = vld [vmem:[#allocation2 + $0x190] ss:$8 sps:$4 sm:$0xff]  }
  0x43   : > { %1154 = vmatprep.subr.bf16.mxu0 %v4086_v53  ;;  %v4113_v8 = vld [vmem:[#allocation2 + $0x1a4] ss:$8 sps:$4 sm:$0xff]   ;;  %v4111_v9 = vld [vmem:[#allocation2 + $0x1a0] ss:$8 sps:$4 sm:$0xff]   ;;  %v4116_v10 = vld [vmem:[#allocation2 + $0x1b4] ss:$8 sps:$4 sm:$0xff]  }
  0x44   : > { %1155 = vmatpush1.bf16.msra.mxu0 %v4084_v54  ;;  %v4114_v11 = vld [vmem:[#allocation2 + $0x1b0] ss:$8 sps:$4 sm:$0xff]   ;;  %v4119_v12 = vld [vmem:[#allocation2 + $0x1c4] ss:$8 sps:$4 sm:$0xff]   ;;  %v4117_v14 = vld [vmem:[#allocation2 + $0x1c0] ss:$8 sps:$4 sm:$0xff]  }
  0x45   : > { %3658 = vmatmul.mubr.msk.f32.gmra.mrb[10].mxu0 %vm327_vm1, %v303_v18  ;;  %803 = vmatpush1.bf16.msra.mxu1 %v4053_v23  ;;  %v4122_v15 = vld [vmem:[#allocation2 + $0x1d4] ss:$8 sps:$4 sm:$0xff]   ;;  %v4120_v17 = vld [vmem:[#allocation2 + $0x1d0] ss:$8 sps:$4 sm:$0xff]   ;;  %v319_v18 = vsub.s32 0, %v4603_v16  ;;  %v4609_v19 = vld [vmem:[%s5232_s4] sm:$0xff] }
  0x46   : > { %481 = vmatprep.mubr.f32.mxu0 %v4449_v0  ;;  %804 = vmatprep.subr.bf16.mxu1 %v4054_v25  ;;  %v4614_v20 = vld [vmem:[%s5232_s4 + $0x8] sm:$0xff] }
  0x47   : > { %1156 = vmatprep.subr.bf16.mxu0 %v4089_v55  ;;  %v4620_v23 = vrot.slane %v4614_v20, %v319_v18 }
  0x48   : > { %1157 = vmatpush1.bf16.msra.mxu0 %v4087_v56 }
  0x49   : > { %3659 = vmatmul.mubr.msk.f32.gmra.mrb[12].mxu0 %vm327_vm1, %v304_v21  ;;  %805 = vmatpush1.bf16.msra.mxu1 %v4056_v26  ;;  %v4617_v21 = vrot.slane %v4609_v19, %v319_v18 }
  0x4a   : > { %487 = vmatprep.mubr.f32.mxu0 %v4449_v0  ;;  %806 = vmatprep.subr.bf16.mxu1 %v4057_v28 }
  0x4b   : > { %1158 = vmatprep.subr.bf16.mxu0 %v4092_v57 }
  0x4c   : > { %1159 = vmatpush1.bf16.msra.mxu0 %v4090_v58 }
  0x4d   : > { %3660 = vmatmul.mubr.msk.f32.gmra.mrb[14].mxu0 %vm327_vm1, %v305_v24  ;;  %807 = vmatpush1.bf16.msra.mxu1 %v4059_v29 }
  0x4e   : > { %493 = vmatprep.mubr.f32.mxu0 %v4449_v0  ;;  %808 = vmatprep.subr.bf16.mxu1 %v4060_v31 }
  0x4f   : > { %1160 = vmatprep.subr.bf16.mxu0 %v4095_v59 }
  0x50   : > { %1161 = vmatpush1.bf16.msra.mxu0 %v4093_v60 }
  0x51   : > { %3661 = vmatmul.mubr.msk.f32.gmra.mrb[16].mxu0 %vm327_vm1, %v306_v27  ;;  %809 = vmatpush1.bf16.msra.mxu1 %v4062_v32 }
  0x52   : > { %499 = vmatprep.mubr.f32.mxu0 %v4449_v0  ;;  %810 = vmatprep.subr.bf16.mxu1 %v4063_v34 }
  0x53   : > { %1162 = vmatprep.subr.bf16.mxu0 %v4098_v61 }
  0x54   : > { %1163 = vmatpush1.bf16.msra.mxu0 %v4096_v62 }
  0x55   : > { %3662 = vmatmul.mubr.msk.f32.gmra.mrb[18].mxu0 %vm327_vm1, %v307_v30  ;;  %811 = vmatpush1.bf16.msra.mxu1 %v4065_v35 }
  0x56   : > { %505 = vmatprep.mubr.f32.mxu0 %v4449_v0  ;;  %812 = vmatprep.subr.bf16.mxu1 %v4066_v37 }
  0x57   : > { %1164 = vmatprep.subr.bf16.mxu0 %v4101_v63 }
  0x58   : > { %1165 = vmatpush1.bf16.msra.mxu0 %v4099_v1 }
  0x59   : > { %3663 = vmatmul.mubr.msk.f32.gmra.mrb[20].mxu0 %vm327_vm1, %v308_v33  ;;  %813 = vmatpush1.bf16.msra.mxu1 %v4068_v38 }
  0x5a   : > { %511 = vmatprep.mubr.f32.mxu0 %v4449_v0  ;;  %814 = vmatprep.subr.bf16.mxu1 %v4069_v40 }
  0x5b   : > { %1166 = vmatprep.subr.bf16.mxu0 %v4104_v2 }
  0x5c   : > { %1167 = vmatpush1.bf16.msra.mxu0 %v4102_v3 }
  0x5d   : > { %3664 = vmatmul.mubr.msk.f32.gmra.mrb[22].mxu0 %vm327_vm1, %v309_v36  ;;  %815 = vmatpush1.bf16.msra.mxu1 %v4071_v41 }
  0x5e   : > { %517 = vmatprep.mubr.f32.mxu0 %v4449_v0  ;;  %816 = vmatprep.subr.bf16.mxu1 %v4072_v45 }
  0x5f   : > { %1168 = vmatprep.subr.bf16.mxu0 %v4107_v4 }
  0x60   : > { %1169 = vmatpush1.bf16.msra.mxu0 %v4105_v5 }
  0x61   : > { %3665 = vmatmul.mubr.msk.f32.gmra.mrb[24].mxu0 %vm327_vm1, %v310_v39  ;;  %817 = vmatpush1.bf16.msra.mxu1 %v4074_v46 }
  0x62   : > { %523 = vmatprep.mubr.f32.mxu0 %v4449_v0  ;;  %818 = vmatprep.subr.bf16.mxu1 %v4075_v47 }
  0x63   : > { %1170 = vmatprep.subr.bf16.mxu0 %v4110_v6 }
  0x64   : > { %1171 = vmatpush1.bf16.msra.mxu0 %v4108_v7 }
  0x65   : > { %3666 = vmatmul.mubr.msk.f32.gmra.mrb[26].mxu0 %vm327_vm1, %v311_v42  ;;  %819 = vmatpush1.bf16.msra.mxu1 %v4077_v48 }
  0x66   : > { %529 = vmatprep.mubr.f32.mxu0 %v4449_v0  ;;  %820 = vmatprep.subr.bf16.mxu1 %v4078_v49 }
  0x67   : > { %1172 = vmatprep.subr.bf16.mxu0 %v4113_v8 }
  0x68   : > { %1173 = vmatpush1.bf16.msra.mxu0 %v4111_v9 }
  0x69   : > { %3667 = vmatmul.mubr.msk.f32.gmra.mrb[28].mxu0 %vm327_vm1, %v312_v43  ;;  %821 = vmatpush1.bf16.msra.mxu1 %v4080_v50 }
  0x6a   : > { %535 = vmatprep.mubr.f32.mxu0 %v4449_v0  ;;  %1174 = vmatprep.subr.bf16.mxu0 %v4116_v10 }
  0x6c   : > { %1175 = vmatpush1.bf16.msra.mxu0 %v4114_v11 }
  0x6d   : > { %3668 = vmatmul.mubr.msk.f32.gmra.mrb[30].mxu0 %vm327_vm1, %v313_v44  ;;  %1176 = vmatprep.subr.bf16.mxu0 %v4119_v12 }
  0x70   : > { %1177 = vmatpush1.bf16.msra.mxu0 %v4117_v14 }
  0x71   : > { %1178 = vmatprep.subr.bf16.mxu0 %v4122_v15 }
  0x74   : > { %1179 = vmatpush1.bf16.msra.mxu0 %v4120_v17 }
 0x104   : > { %v447_v22 = vpop.f32.mrb[0].mxu0 }
 0x105   : > { %v449_v24 = vpop.f32.mrb[1].mxu0  ;;  %v448_v25 = vadd.f32 %v447_v22, %v4617_v21 }
 0x106   : > { %v450_v26 = vadd.f32 %v449_v24, %v4620_v23 }
 0x107   : > { %v542_v31 = vmax.f32 %v448_v25, 0.0 }
 0x108   : > { %v453_v27 = vpop.f32.mrb[2].mxu0  ;;  %v543_v33 = vmax.f32 %v450_v26, 0.0 }
 0x109   : > { %v454_v28 = vadd.f32 %v453_v27, %v4617_v21  ;;  %v455_v29 = vpop.f32.mrb[3].mxu0 }
 0x10a   : > { %v456_v30 = vadd.f32 %v455_v29, %v4620_v23 }
 0x10b   : > { %v544_v32 = vmax.f32 %v454_v28, 0.0 }
 0x10c   : > { %v545_v34 = vmax.f32 %v456_v30, 0.0  ;;  %v459_v35 = vpop.f32.mrb[4].mxu0 }
 0x10d   : > { %v574_v36 = vpack.c.bf16 %v544_v32, %v542_v31  ;;  %v461_v37 = vpop.f32.mrb[5].mxu0  ;;  %v460_v39 = vadd.f32 %v459_v35, %v4617_v21 }
 0x10e   : > { %v575_v38 = vpack.c.bf16 %v545_v34, %v543_v33  ;;  %v462_v40 = vadd.f32 %v461_v37, %v4620_v23 }
 0x10f   : > { %v546_v45 = vmax.f32 %v460_v39, 0.0 }
 0x110   : > { %v465_v41 = vpop.f32.mrb[6].mxu0  ;;  %822 = vmatprep.mubr.bf16.mxu1 %v575_v38  ;;  %v547_v47 = vmax.f32 %v462_v40, 0.0 }
 0x111   : > { %v466_v42 = vadd.f32 %v465_v41, %v4617_v21  ;;  %v467_v43 = vpop.f32.mrb[7].mxu0  ;;  %823 = vmatmul.mubr.bf16.vlgmr.msra.gmra.mrb[0].mxu1 %v574_v36 }
 0x112   : > { %v468_v44 = vadd.f32 %v467_v43, %v4620_v23 }
 0x113   : > { %v548_v46 = vmax.f32 %v466_v42, 0.0 }
 0x114   : > { %v549_v48 = vmax.f32 %v468_v44, 0.0  ;;  %v471_v49 = vpop.f32.mrb[8].mxu0 }
 0x115   : > { %v576_v50 = vpack.c.bf16 %v548_v46, %v546_v45  ;;  %v473_v51 = vpop.f32.mrb[9].mxu0  ;;  %v472_v53 = vadd.f32 %v471_v49, %v4617_v21 }
 0x116   : > { %v577_v52 = vpack.c.bf16 %v549_v48, %v547_v47  ;;  %v474_v54 = vadd.f32 %v473_v51, %v4620_v23 }
 0x117   : > { %v550_v59 = vmax.f32 %v472_v53, 0.0 }
 0x118   : > { %v477_v55 = vpop.f32.mrb[10].mxu0  ;;  %832 = vmatprep.mubr.bf16.mxu1 %v577_v52  ;;  %v551_v61 = vmax.f32 %v474_v54, 0.0 }
 0x119   : > { %v478_v56 = vadd.f32 %v477_v55, %v4617_v21  ;;  %v479_v57 = vpop.f32.mrb[11].mxu0  ;;  %833 = vmatmul.mubr.bf16.gmra.mrb[4].mxu1 %v576_v50 }
 0x11a   : > { %v480_v58 = vadd.f32 %v479_v57, %v4620_v23 }
 0x11b   : > { %v552_v60 = vmax.f32 %v478_v56, 0.0 }
 0x11c   : > { %v553_v62 = vmax.f32 %v480_v58, 0.0  ;;  %v483_v63 = vpop.f32.mrb[12].mxu0 }
 0x11d   : > { %v578_v1 = vpack.c.bf16 %v552_v60, %v550_v59  ;;  %v485_v2 = vpop.f32.mrb[13].mxu0  ;;  %v484_v4 = vadd.f32 %v483_v63, %v4617_v21 }
 0x11e   : > { %v579_v3 = vpack.c.bf16 %v553_v62, %v551_v61  ;;  %v486_v5 = vadd.f32 %v485_v2, %v4620_v23 }
 0x11f   : > { %v554_v10 = vmax.f32 %v484_v4, 0.0 }
 0x120   : > { %v489_v6 = vpop.f32.mrb[14].mxu0  ;;  %842 = vmatprep.mubr.bf16.mxu1 %v579_v3  ;;  %v555_v12 = vmax.f32 %v486_v5, 0.0 }
 0x121   : > { %v490_v7 = vadd.f32 %v489_v6, %v4617_v21  ;;  %v491_v8 = vpop.f32.mrb[15].mxu0  ;;  %843 = vmatmul.mubr.bf16.gmra.mrb[8].mxu1 %v578_v1 }
 0x122   : > { %v492_v9 = vadd.f32 %v491_v8, %v4620_v23 }
 0x123   : > { %v556_v11 = vmax.f32 %v490_v7, 0.0 }
 0x124   : > { %v557_v13 = vmax.f32 %v492_v9, 0.0  ;;  %v495_v14 = vpop.f32.mrb[16].mxu0 }
 0x125   : > { %v580_v15 = vpack.c.bf16 %v556_v11, %v554_v10  ;;  %v497_v17 = vpop.f32.mrb[17].mxu0  ;;  %v496_v22 = vadd.f32 %v495_v14, %v4617_v21  ;;  %v4125_v14 = vld [vmem:[#allocation2 + $0x1e4] ss:$8 sps:$4 sm:$0xff]  }
 0x126   : > { %v581_v18 = vpack.c.bf16 %v557_v13, %v555_v12  ;;  %v498_v24 = vadd.f32 %v497_v17, %v4620_v23  ;;  %1180 = vmatprep.subr.bf16.mxu0 %v4125_v14  ;;  %v4128_v17 = vld [vmem:[#allocation2 + $0x1f4] ss:$8 sps:$4 sm:$0xff]  }
 0x127   : > { %v558_v29 = vmax.f32 %v496_v22, 0.0  ;;  %v4131_v22 = vld [vmem:[#allocation2 + $0x204] ss:$8 sps:$4 sm:$0xff]  }
 0x128   : > { %v501_v25 = vpop.f32.mrb[18].mxu0  ;;  %852 = vmatprep.mubr.bf16.mxu1 %v581_v18  ;;  %v559_v31 = vmax.f32 %v498_v24, 0.0  ;;  %v4126_v18 = vld [vmem:[#allocation2 + $0x1f0] ss:$8 sps:$4 sm:$0xff]   ;;  %v4134_v24 = vld [vmem:[#allocation2 + $0x214] ss:$8 sps:$4 sm:$0xff]   ;;  %1514 = vmatprep.subr.bf16.mxu1 %v4131_v22 }
 0x129   : > { %v502_v26 = vadd.f32 %v501_v25, %v4617_v21  ;;  %v503_v27 = vpop.f32.mrb[19].mxu0  ;;  %853 = vmatmul.mubr.bf16.gmra.mrb[12].mxu1 %v580_v15  ;;  %v4123_v15 = vld [vmem:[#allocation2 + $0x1e0] ss:$8 sps:$4 sm:$0xff]   ;;  %v4137_v25 = vld [vmem:[#allocation2 + $0x224] ss:$8 sps:$4 sm:$0xff]  }
 0x12a   : > { %v504_v28 = vadd.f32 %v503_v27, %v4620_v23  ;;  %1181 = vmatpush1.bf16.msra.mxu0 %v4123_v15  ;;  %v4140_v27 = vld [vmem:[#allocation2 + $0x234] ss:$8 sps:$4 sm:$0xff]  }
 0x12b   : > { %v560_v30 = vmax.f32 %v502_v26, 0.0  ;;  %1182 = vmatprep.subr.bf16.mxu0 %v4128_v17  ;;  %v4135_v26 = vld [vmem:[#allocation2 + $0x220] ss:$8 sps:$4 sm:$0xff]  }
 0x12c   : > { %v561_v32 = vmax.f32 %v504_v28, 0.0  ;;  %v507_v33 = vpop.f32.mrb[20].mxu0  ;;  %v4138_v28 = vld [vmem:[#allocation2 + $0x230] ss:$8 sps:$4 sm:$0xff]  }
 0x12d   : > { %v582_v34 = vpack.c.bf16 %v560_v30, %v558_v29  ;;  %v509_v35 = vpop.f32.mrb[21].mxu0  ;;  %v508_v37 = vadd.f32 %v507_v33, %v4617_v21  ;;  %v4143_v29 = vld [vmem:[#allocation2 + $0x244] ss:$8 sps:$4 sm:$0xff]   ;;  %v4141_v30 = vld [vmem:[#allocation2 + $0x240] ss:$8 sps:$4 sm:$0xff]  }
 0x12e   : > { %v583_v36 = vpack.c.bf16 %v561_v32, %v559_v31  ;;  %v510_v38 = vadd.f32 %v509_v35, %v4620_v23  ;;  %1183 = vmatpush1.bf16.msra.mxu0 %v4126_v18  ;;  %v4146_v31 = vld [vmem:[#allocation2 + $0x254] ss:$8 sps:$4 sm:$0xff]   ;;  %v4144_v32 = vld [vmem:[#allocation2 + $0x250] ss:$8 sps:$4 sm:$0xff]   ;;  %v4149_v33 = vld [vmem:[#allocation2 + $0x264] ss:$8 sps:$4 sm:$0xff]  }
 0x12f   : > { %v562_v43 = vmax.f32 %v508_v37, 0.0  ;;  %v4152_v35 = vld [vmem:[#allocation2 + $0x274] ss:$8 sps:$4 sm:$0xff]   ;;  %v4155_v37 = vld [vmem:[#allocation2 + $0x284] ss:$8 sps:$4 sm:$0xff]  }
 0x130   : > { %v513_v39 = vpop.f32.mrb[22].mxu0  ;;  %862 = vmatprep.mubr.bf16.mxu1 %v583_v36  ;;  %v563_v45 = vmax.f32 %v510_v38, 0.0  ;;  %v4150_v36 = vld [vmem:[#allocation2 + $0x270] ss:$8 sps:$4 sm:$0xff]   ;;  %v4153_v38 = vld [vmem:[#allocation2 + $0x280] ss:$8 sps:$4 sm:$0xff]  }
 0x131   : > { %v514_v40 = vadd.f32 %v513_v39, %v4617_v21  ;;  %v515_v41 = vpop.f32.mrb[23].mxu0  ;;  %863 = vmatmul.mubr.bf16.gmra.mrb[16].mxu1 %v582_v34  ;;  %v4147_v34 = vld [vmem:[#allocation2 + $0x260] ss:$8 sps:$4 sm:$0xff]   ;;  %v4158_v39 = vld [vmem:[#allocation2 + $0x294] ss:$8 sps:$4 sm:$0xff]  }
 0x132   : > { %v516_v42 = vadd.f32 %v515_v41, %v4620_v23  ;;  %v4161_v41 = vld [vmem:[#allocation2 + $0x2a4] ss:$8 sps:$4 sm:$0xff]  }
 0x133   : > { %v564_v44 = vmax.f32 %v514_v40, 0.0  ;;  %v4156_v40 = vld [vmem:[#allocation2 + $0x290] ss:$8 sps:$4 sm:$0xff]  }
 0x134   : > { %v565_v46 = vmax.f32 %v516_v42, 0.0  ;;  %v519_v47 = vpop.f32.mrb[24].mxu0  ;;  %v4159_v42 = vld [vmem:[#allocation2 + $0x2a0] ss:$8 sps:$4 sm:$0xff]  }
 0x135   : > { %v584_v48 = vpack.c.bf16 %v564_v44, %v562_v43  ;;  %v521_v49 = vpop.f32.mrb[25].mxu0  ;;  %v520_v51 = vadd.f32 %v519_v47, %v4617_v21  ;;  %v4164_v43 = vld [vmem:[#allocation2 + $0x2b4] ss:$8 sps:$4 sm:$0xff]   ;;  %v4162_v44 = vld [vmem:[#allocation2 + $0x2b0] ss:$8 sps:$4 sm:$0xff]  }
 0x136   : > { %v585_v50 = vpack.c.bf16 %v565_v46, %v563_v45  ;;  %v522_v52 = vadd.f32 %v521_v49, %v4620_v23  ;;  %v4167_v45 = vld [vmem:[#allocation2 + $0x2c4] ss:$8 sps:$4 sm:$0xff]   ;;  %v4165_v46 = vld [vmem:[#allocation2 + $0x2c0] ss:$8 sps:$4 sm:$0xff]   ;;  %v4170_v47 = vld [vmem:[#allocation2 + $0x2d4] ss:$8 sps:$4 sm:$0xff]  }
 0x137   : > { %v566_v57 = vmax.f32 %v520_v51, 0.0  ;;  %v624_v49 = vsub.s32 1, %v4603_v16 }
 0x138   : > { %v525_v53 = vpop.f32.mrb[26].mxu0  ;;  %872 = vmatprep.mubr.bf16.mxu1 %v585_v50  ;;  %v567_v59 = vmax.f32 %v522_v52, 0.0 }
 0x139   : > { %v526_v54 = vadd.f32 %v525_v53, %v4617_v21  ;;  %v527_v55 = vpop.f32.mrb[27].mxu0  ;;  %873 = vmatmul.mubr.bf16.gmra.mrb[20].mxu1 %v584_v48  ;;  %v4168_v48 = vld [vmem:[#allocation2 + $0x2d0] ss:$8 sps:$4 sm:$0xff]   ;;  %v4656_v50 = vrot.slane %v4609_v19, %v624_v49  ;;  %v4659_v51 = vrot.slane %v4614_v20, %v624_v49 }
 0x13a   : > { %v528_v56 = vadd.f32 %v527_v55, %v4620_v23 }
 0x13b   : > { %v568_v58 = vmax.f32 %v526_v54, 0.0 }
 0x13c   : > { %v569_v60 = vmax.f32 %v528_v56, 0.0  ;;  %v531_v61 = vpop.f32.mrb[28].mxu0 }
 0x13d   : > { %v586_v62 = vpack.c.bf16 %v568_v58, %v566_v57  ;;  %v533_v63 = vpop.f32.mrb[29].mxu0  ;;  %v532_v2 = vadd.f32 %v531_v61, %v4617_v21 }
 0x13e   : > { %v587_v1 = vpack.c.bf16 %v569_v60, %v567_v59  ;;  %v534_v3 = vadd.f32 %v533_v63, %v4620_v23 }
 0x13f   : > { %v570_v8 = vmax.f32 %v532_v2, 0.0 }
 0x140   : > { %v537_v4 = vpop.f32.mrb[30].mxu0  ;;  %882 = vmatprep.mubr.bf16.mxu1 %v587_v1  ;;  %v571_v10 = vmax.f32 %v534_v3, 0.0 }
 0x141   : > { %v538_v5 = vadd.f32 %v537_v4, %v4617_v21  ;;  %v539_v6 = vpop.f32.mrb[31].mxu0  ;;  %883 = vmatmul.mubr.bf16.gmra.mrb[24].mxu1 %v586_v62  ;;  %v4129_v21 = vld [vmem:[#allocation2 + $0x200] ss:$8 sps:$4 sm:$0xff]  }
 0x142   : > { %v540_v7 = vadd.f32 %v539_v6, %v4620_v23  ;;  %1515 = vmatpush1.bf16.msra.mxu1 %v4129_v21  ;;  %v4132_v23 = vld [vmem:[#allocation2 + $0x210] ss:$8 sps:$4 sm:$0xff]  }
 0x143   : > { %v572_v9 = vmax.f32 %v538_v5, 0.0  ;;  %1516 = vmatprep.subr.bf16.mxu1 %v4134_v24 }
 0x144   : > { %v573_v11 = vmax.f32 %v540_v7, 0.0 }
 0x145   : > { %v588_v12 = vpack.c.bf16 %v572_v9, %v570_v8 }
 0x146   : > { %v589_v13 = vpack.c.bf16 %v573_v11, %v571_v10  ;;  %1517 = vmatpush1.bf16.msra.mxu1 %v4132_v23 }
 0x147   : > { %1518 = vmatprep.subr.bf16.mxu1 %v4137_v25 }
 0x148   : > { %892 = vmatprep.mubr.bf16.mxu1 %v589_v13 }
 0x149   : > { %893 = vmatmul.mubr.bf16.gmra.mrb[28].mxu1 %v588_v12 }
 0x14a   : > { %1519 = vmatpush1.bf16.msra.mxu1 %v4135_v26 }
 0x14b   : > { %1520 = vmatprep.subr.bf16.mxu1 %v4140_v27 }
 0x14e   : > { %1521 = vmatpush1.bf16.msra.mxu1 %v4138_v28 }
 0x14f   : > { %1522 = vmatprep.subr.bf16.mxu1 %v4143_v29 }
 0x152   : > { %1523 = vmatpush1.bf16.msra.mxu1 %v4141_v30 }
 0x153   : > { %1524 = vmatprep.subr.bf16.mxu1 %v4146_v31 }
 0x156   : > { %1525 = vmatpush1.bf16.msra.mxu1 %v4144_v32 }
 0x157   : > { %1526 = vmatprep.subr.bf16.mxu1 %v4149_v33 }
 0x15a   : > { %1527 = vmatpush1.bf16.msra.mxu1 %v4147_v34 }
 0x15b   : > { %1528 = vmatprep.subr.bf16.mxu1 %v4152_v35 }
 0x15e   : > { %1529 = vmatpush1.bf16.msra.mxu1 %v4150_v36 }
 0x15f   : > { %1530 = vmatprep.subr.bf16.mxu1 %v4155_v37 }
 0x162   : > { %1531 = vmatpush1.bf16.msra.mxu1 %v4153_v38 }
 0x163   : > { %1532 = vmatprep.subr.bf16.mxu1 %v4158_v39 }
 0x166   : > { %1533 = vmatpush1.bf16.msra.mxu1 %v4156_v40 }
 0x167   : > { %1534 = vmatprep.subr.bf16.mxu1 %v4161_v41 }
 0x16a   : > { %1535 = vmatpush1.bf16.msra.mxu1 %v4159_v42 }
 0x16b   : > { %1536 = vmatprep.subr.bf16.mxu1 %v4164_v43 }
 0x16e   : > { %1537 = vmatpush1.bf16.msra.mxu1 %v4162_v44 }
 0x16f   : > { %1538 = vmatprep.subr.bf16.mxu1 %v4167_v45 }
 0x172   : > { %1539 = vmatpush1.bf16.msra.mxu1 %v4165_v46 }
 0x173   : > { %1540 = vmatprep.subr.bf16.mxu1 %v4170_v47 }
 0x176   : > { %1541 = vmatpush1.bf16.msra.mxu1 %v4168_v48 }
 0x1e4   : > { %v824_v52 = vpop.f32.mrb[0].mxu1 }
 0x1e5   : > { %v825_v53 = vadd.f32 %v824_v52, %v4656_v50  ;;  %v826_v54 = vpop.f32.mrb[1].mxu1 }
 0x1e6   : > { %v827_v55 = vadd.f32 %v826_v54, %v4659_v51  ;;  %v828_v56 = vpop.f32.mrb[2].mxu1 }
 0x1e7   : > { %v829_v57 = vadd.f32 %v828_v56, %v4656_v50  ;;  %v830_v58 = vpop.f32.mrb[3].mxu1  ;;  %v903_v60 = vmax.f32 %v825_v53, 0.0 }
 0x1e8   : > { %v831_v59 = vadd.f32 %v830_v58, %v4659_v51  ;;  %v904_v62 = vmax.f32 %v827_v55, 0.0 }
 0x1e9   : > { %v905_v61 = vmax.f32 %v829_v57, 0.0 }
 0x1ea   : > { %v906_v63 = vmax.f32 %v831_v59, 0.0 }
 0x1eb   : > { %v935_v1 = vpack.c.bf16 %v905_v61, %v903_v60 }
 0x1ec   : > { %v936_v2 = vpack.c.bf16 %v906_v63, %v904_v62  ;;  %v834_v3 = vpop.f32.mrb[4].mxu1 }
 0x1ed   : > { %v835_v4 = vadd.f32 %v834_v3, %v4656_v50  ;;  %v836_v5 = vpop.f32.mrb[5].mxu1 }
 0x1ee   : > { %v837_v6 = vadd.f32 %v836_v5, %v4659_v51  ;;  %v838_v7 = vpop.f32.mrb[6].mxu1  ;;  %1184 = vmatprep.mubr.bf16.mxu0 %v936_v2 }
 0x1ef   : > { %v839_v8 = vadd.f32 %v838_v7, %v4656_v50  ;;  %v840_v9 = vpop.f32.mrb[7].mxu1  ;;  %1185 = vmatmul.mubr.bf16.vlgmr.msra.gmra.mrb[32].mxu0 %v935_v1  ;;  %v907_v11 = vmax.f32 %v835_v4, 0.0 }
 0x1f0   : > { %v841_v10 = vadd.f32 %v840_v9, %v4659_v51  ;;  %v908_v13 = vmax.f32 %v837_v6, 0.0 }
 0x1f1   : > { %v909_v12 = vmax.f32 %v839_v8, 0.0 }
 0x1f2   : > { %v910_v14 = vmax.f32 %v841_v10, 0.0 }
 0x1f3   : > { %v937_v15 = vpack.c.bf16 %v909_v12, %v907_v11 }
 0x1f4   : > { %v938_v17 = vpack.c.bf16 %v910_v14, %v908_v13  ;;  %v844_v18 = vpop.f32.mrb[8].mxu1 }
 0x1f5   : > { %v845_v21 = vadd.f32 %v844_v18, %v4656_v50  ;;  %v846_v22 = vpop.f32.mrb[9].mxu1 }
 0x1f6   : > { %v847_v24 = vadd.f32 %v846_v22, %v4659_v51  ;;  %v848_v23 = vpop.f32.mrb[10].mxu1  ;;  %1194 = vmatprep.mubr.bf16.mxu0 %v938_v17 }
 0x1f7   : > { %v849_v25 = vadd.f32 %v848_v23, %v4656_v50  ;;  %v850_v26 = vpop.f32.mrb[11].mxu1  ;;  %1195 = vmatmul.mubr.bf16.gmra.mrb[36].mxu0 %v937_v15  ;;  %v911_v28 = vmax.f32 %v845_v21, 0.0 }
 0x1f8   : > { %v851_v27 = vadd.f32 %v850_v26, %v4659_v51  ;;  %v912_v30 = vmax.f32 %v847_v24, 0.0 }
 0x1f9   : > { %v913_v29 = vmax.f32 %v849_v25, 0.0 }
 0x1fa   : > { %v914_v31 = vmax.f32 %v851_v27, 0.0 }
 0x1fb   : > { %v939_v32 = vpack.c.bf16 %v913_v29, %v911_v28 }
 0x1fc   : > { %v940_v33 = vpack.c.bf16 %v914_v31, %v912_v30  ;;  %v854_v34 = vpop.f32.mrb[12].mxu1 }
 0x1fd   : > { %v855_v35 = vadd.f32 %v854_v34, %v4656_v50  ;;  %v856_v36 = vpop.f32.mrb[13].mxu1 }
 0x1fe   : > { %v857_v37 = vadd.f32 %v856_v36, %v4659_v51  ;;  %v858_v38 = vpop.f32.mrb[14].mxu1  ;;  %1204 = vmatprep.mubr.bf16.mxu0 %v940_v33 }
 0x1ff   : > { %v859_v39 = vadd.f32 %v858_v38, %v4656_v50  ;;  %v860_v40 = vpop.f32.mrb[15].mxu1  ;;  %1205 = vmatmul.mubr.bf16.gmra.mrb[40].mxu0 %v939_v32  ;;  %v915_v42 = vmax.f32 %v855_v35, 0.0 }
 0x200   : > { %v861_v41 = vadd.f32 %v860_v40, %v4659_v51  ;;  %v916_v44 = vmax.f32 %v857_v37, 0.0 }
 0x201   : > { %v917_v43 = vmax.f32 %v859_v39, 0.0 }
 0x202   : > { %v918_v45 = vmax.f32 %v861_v41, 0.0 }
 0x203   : > { %v941_v46 = vpack.c.bf16 %v917_v43, %v915_v42 }
 0x204   : > { %v942_v47 = vpack.c.bf16 %v918_v45, %v916_v44  ;;  %v864_v48 = vpop.f32.mrb[16].mxu1 }
 0x205   : > { %v865_v49 = vadd.f32 %v864_v48, %v4656_v50  ;;  %v866_v52 = vpop.f32.mrb[17].mxu1  ;;  %v4176_v48 = vld [vmem:[#allocation2 + $0x2f4] ss:$8 sps:$4 sm:$0xff]  }
 0x206   : > { %v867_v53 = vadd.f32 %v866_v52, %v4659_v51  ;;  %v868_v54 = vpop.f32.mrb[18].mxu1  ;;  %1214 = vmatprep.mubr.bf16.mxu0 %v942_v47  ;;  %v4171_v47 = vld [vmem:[#allocation2 + $0x2e0] ss:$8 sps:$4 sm:$0xff]   ;;  %v4179_v52 = vld [vmem:[#allocation2 + $0x304] ss:$8 sps:$4 sm:$0xff]  }
 0x207   : > { %v869_v55 = vadd.f32 %v868_v54, %v4656_v50  ;;  %v870_v56 = vpop.f32.mrb[19].mxu1  ;;  %1215 = vmatmul.mubr.bf16.gmra.mrb[44].mxu0 %v941_v46  ;;  %v919_v58 = vmax.f32 %v865_v49, 0.0  ;;  %v4173_v46 = vld [vmem:[#allocation2 + $0x2e4] ss:$8 sps:$4 sm:$0xff]   ;;  %v4174_v49 = vld [vmem:[#allocation2 + $0x2f0] ss:$8 sps:$4 sm:$0xff]   ;;  %1876 = vmatprep.subr.bf16.mxu0 %v4179_v52 }
 0x208   : > { %v871_v57 = vadd.f32 %v870_v56, %v4659_v51  ;;  %v920_v60 = vmax.f32 %v867_v53, 0.0  ;;  %1542 = vmatprep.subr.bf16.mxu1 %v4173_v46  ;;  %v4182_v53 = vld [vmem:[#allocation2 + $0x314] ss:$8 sps:$4 sm:$0xff]   ;;  %v4185_v54 = vld [vmem:[#allocation2 + $0x324] ss:$8 sps:$4 sm:$0xff]  }
 0x209   : > { %v921_v59 = vmax.f32 %v869_v55, 0.0  ;;  %1543 = vmatpush1.bf16.msra.mxu1 %v4171_v47  ;;  %v4183_v55 = vld [vmem:[#allocation2 + $0x320] ss:$8 sps:$4 sm:$0xff]   ;;  %v4188_v56 = vld [vmem:[#allocation2 + $0x334] ss:$8 sps:$4 sm:$0xff]  }
 0x20a   : > { %v922_v61 = vmax.f32 %v871_v57, 0.0  ;;  %1544 = vmatprep.subr.bf16.mxu1 %v4176_v48  ;;  %v4186_v57 = vld [vmem:[#allocation2 + $0x330] ss:$8 sps:$4 sm:$0xff]  }
 0x20b   : > { %v943_v62 = vpack.c.bf16 %v921_v59, %v919_v58  ;;  %v4191_v58 = vld [vmem:[#allocation2 + $0x344] ss:$8 sps:$4 sm:$0xff]   ;;  %v4189_v59 = vld [vmem:[#allocation2 + $0x340] ss:$8 sps:$4 sm:$0xff]  }
 0x20c   : > { %v944_v63 = vpack.c.bf16 %v922_v61, %v920_v60  ;;  %v874_v1 = vpop.f32.mrb[20].mxu1  ;;  %v4194_v60 = vld [vmem:[#allocation2 + $0x354] ss:$8 sps:$4 sm:$0xff]   ;;  %v4192_v61 = vld [vmem:[#allocation2 + $0x350] ss:$8 sps:$4 sm:$0xff]  }
 0x20d   : > { %v875_v2 = vadd.f32 %v874_v1, %v4656_v50  ;;  %v876_v3 = vpop.f32.mrb[21].mxu1  ;;  %1545 = vmatpush1.bf16.msra.mxu1 %v4174_v49  ;;  %v4200_v1 = vld [vmem:[#allocation2 + $0x374] ss:$8 sps:$4 sm:$0xff]  }
 0x20e   : > { %v877_v4 = vadd.f32 %v876_v3, %v4659_v51  ;;  %v878_v5 = vpop.f32.mrb[22].mxu1  ;;  %1224 = vmatprep.mubr.bf16.mxu0 %v944_v63  ;;  %v4195_v63 = vld [vmem:[#allocation2 + $0x360] ss:$8 sps:$4 sm:$0xff]   ;;  %v4203_v3 = vld [vmem:[#allocation2 + $0x384] ss:$8 sps:$4 sm:$0xff]  }
 0x20f   : > { %v879_v6 = vadd.f32 %v878_v5, %v4656_v50  ;;  %v880_v7 = vpop.f32.mrb[23].mxu1  ;;  %1225 = vmatmul.mubr.bf16.gmra.mrb[48].mxu0 %v943_v62  ;;  %v923_v9 = vmax.f32 %v875_v2, 0.0  ;;  %v4197_v62 = vld [vmem:[#allocation2 + $0x364] ss:$8 sps:$4 sm:$0xff]   ;;  %v4198_v2 = vld [vmem:[#allocation2 + $0x370] ss:$8 sps:$4 sm:$0xff]  }
 0x210   : > { %v881_v8 = vadd.f32 %v880_v7, %v4659_v51  ;;  %v924_v11 = vmax.f32 %v877_v4, 0.0  ;;  %v4201_v4 = vld [vmem:[#allocation2 + $0x380] ss:$8 sps:$4 sm:$0xff]   ;;  %v4206_v5 = vld [vmem:[#allocation2 + $0x394] ss:$8 sps:$4 sm:$0xff]  }
 0x211   : > { %v925_v10 = vmax.f32 %v879_v6, 0.0  ;;  %v4204_v6 = vld [vmem:[#allocation2 + $0x390] ss:$8 sps:$4 sm:$0xff]   ;;  %v4209_v7 = vld [vmem:[#allocation2 + $0x3a4] ss:$8 sps:$4 sm:$0xff]  }
 0x212   : > { %v926_v12 = vmax.f32 %v881_v8, 0.0  ;;  %v4207_v8 = vld [vmem:[#allocation2 + $0x3a0] ss:$8 sps:$4 sm:$0xff]  }
 0x213   : > { %v945_v13 = vpack.c.bf16 %v925_v10, %v923_v9  ;;  %v4212_v9 = vld [vmem:[#allocation2 + $0x3b4] ss:$8 sps:$4 sm:$0xff]   ;;  %v4210_v10 = vld [vmem:[#allocation2 + $0x3b0] ss:$8 sps:$4 sm:$0xff]  }
 0x214   : > { %v946_v14 = vpack.c.bf16 %v926_v12, %v924_v11  ;;  %v884_v15 = vpop.f32.mrb[24].mxu1  ;;  %v4215_v11 = vld [vmem:[#allocation2 + $0x3c4] ss:$8 sps:$4 sm:$0xff]   ;;  %v4213_v12 = vld [vmem:[#allocation2 + $0x3c0] ss:$8 sps:$4 sm:$0xff]  }
 0x215   : > { %v885_v17 = vadd.f32 %v884_v15, %v4656_v50  ;;  %v886_v18 = vpop.f32.mrb[25].mxu1  ;;  %v986_v15 = vsub.s32 2, %v4603_v16 }
 0x216   : > { %v887_v21 = vadd.f32 %v886_v18, %v4659_v51  ;;  %v888_v22 = vpop.f32.mrb[26].mxu1  ;;  %1234 = vmatprep.mubr.bf16.mxu0 %v946_v14  ;;  %v4216_v14 = vld [vmem:[#allocation2 + $0x3d0] ss:$8 sps:$4 sm:$0xff]  }
 0x217   : > { %v889_v24 = vadd.f32 %v888_v22, %v4656_v50  ;;  %v890_v23 = vpop.f32.mrb[27].mxu1  ;;  %1235 = vmatmul.mubr.bf16.gmra.mrb[52].mxu0 %v945_v13  ;;  %v927_v26 = vmax.f32 %v885_v17, 0.0  ;;  %v4218_v13 = vld [vmem:[#allocation2 + $0x3d4] ss:$8 sps:$4 sm:$0xff]   ;;  %v4695_v17 = vrot.slane %v4609_v19, %v986_v15  ;;  %v4698_v18 = vrot.slane %v4614_v20, %v986_v15 }
 0x218   : > { %v891_v25 = vadd.f32 %v890_v23, %v4659_v51  ;;  %v928_v28 = vmax.f32 %v887_v21, 0.0 }
 0x219   : > { %v929_v27 = vmax.f32 %v889_v24, 0.0 }
 0x21a   : > { %v930_v29 = vmax.f32 %v891_v25, 0.0 }
 0x21b   : > { %v947_v30 = vpack.c.bf16 %v929_v27, %v927_v26 }
 0x21c   : > { %v948_v31 = vpack.c.bf16 %v930_v29, %v928_v28  ;;  %v894_v32 = vpop.f32.mrb[28].mxu1 }
 0x21d   : > { %v895_v33 = vadd.f32 %v894_v32, %v4656_v50  ;;  %v896_v34 = vpop.f32.mrb[29].mxu1 }
 0x21e   : > { %v897_v35 = vadd.f32 %v896_v34, %v4659_v51  ;;  %v898_v36 = vpop.f32.mrb[30].mxu1  ;;  %1244 = vmatprep.mubr.bf16.mxu0 %v948_v31 }
 0x21f   : > { %v899_v37 = vadd.f32 %v898_v36, %v4656_v50  ;;  %v900_v38 = vpop.f32.mrb[31].mxu1  ;;  %1245 = vmatmul.mubr.bf16.gmra.mrb[56].mxu0 %v947_v30  ;;  %v931_v40 = vmax.f32 %v895_v33, 0.0  ;;  %v4177_v50 = vld [vmem:[#allocation2 + $0x300] ss:$8 sps:$4 sm:$0xff]  }
 0x220   : > { %v901_v39 = vadd.f32 %v900_v38, %v4659_v51  ;;  %v932_v42 = vmax.f32 %v897_v35, 0.0  ;;  %1877 = vmatpush1.bf16.msra.mxu0 %v4177_v50  ;;  %v4180_v51 = vld [vmem:[#allocation2 + $0x310] ss:$8 sps:$4 sm:$0xff]  }
 0x221   : > { %v933_v41 = vmax.f32 %v899_v37, 0.0  ;;  %1878 = vmatprep.subr.bf16.mxu0 %v4182_v53 }
 0x222   : > { %v934_v43 = vmax.f32 %v901_v39, 0.0 }
 0x223   : > { %v949_v44 = vpack.c.bf16 %v933_v41, %v931_v40 }
 0x224   : > { %v950_v45 = vpack.c.bf16 %v934_v43, %v932_v42  ;;  %1879 = vmatpush1.bf16.msra.mxu0 %v4180_v51 }
 0x225   : > { %1880 = vmatprep.subr.bf16.mxu0 %v4185_v54 }
 0x226   : > { %1254 = vmatprep.mubr.bf16.mxu0 %v950_v45 }
 0x227   : > { %1255 = vmatmul.mubr.bf16.gmra.mrb[60].mxu0 %v949_v44 }
 0x228   : > { %1881 = vmatpush1.bf16.msra.mxu0 %v4183_v55 }
 0x229   : > { %1882 = vmatprep.subr.bf16.mxu0 %v4188_v56 }
 0x22c   : > { %1883 = vmatpush1.bf16.msra.mxu0 %v4186_v57 }
 0x22d   : > { %1884 = vmatprep.subr.bf16.mxu0 %v4191_v58 }
 0x230   : > { %1885 = vmatpush1.bf16.msra.mxu0 %v4189_v59 }
 0x231   : > { %1886 = vmatprep.subr.bf16.mxu0 %v4194_v60 }
 0x234   : > { %1887 = vmatpush1.bf16.msra.mxu0 %v4192_v61 }
 0x235   : > { %1888 = vmatprep.subr.bf16.mxu0 %v4197_v62 }
 0x238   : > { %1889 = vmatpush1.bf16.msra.mxu0 %v4195_v63 }
 0x239   : > { %1890 = vmatprep.subr.bf16.mxu0 %v4200_v1 }
 0x23c   : > { %1891 = vmatpush1.bf16.msra.mxu0 %v4198_v2 }
 0x23d   : > { %1892 = vmatprep.subr.bf16.mxu0 %v4203_v3 }
 0x240   : > { %1893 = vmatpush1.bf16.msra.mxu0 %v4201_v4 }
 0x241   : > { %1894 = vmatprep.subr.bf16.mxu0 %v4206_v5 }
 0x244   : > { %1895 = vmatpush1.bf16.msra.mxu0 %v4204_v6 }
 0x245   : > { %1896 = vmatprep.subr.bf16.mxu0 %v4209_v7 }
 0x248   : > { %1897 = vmatpush1.bf16.msra.mxu0 %v4207_v8 }
 0x249   : > { %1898 = vmatprep.subr.bf16.mxu0 %v4212_v9 }
 0x24c   : > { %1899 = vmatpush1.bf16.msra.mxu0 %v4210_v10 }
 0x24d   : > { %1900 = vmatprep.subr.bf16.mxu0 %v4215_v11 }
 0x250   : > { %1901 = vmatpush1.bf16.msra.mxu0 %v4213_v12 }
 0x251   : > { %1902 = vmatprep.subr.bf16.mxu0 %v4218_v13 }
 0x254   : > { %1903 = vmatpush1.bf16.msra.mxu0 %v4216_v14 }
 0x2c2   : > { %v1186_v21 = vpop.f32.mrb[32].mxu0 }
 0x2c3   : > { %v1187_v22 = vadd.f32 %v1186_v21, %v4695_v17  ;;  %v1188_v24 = vpop.f32.mrb[33].mxu0 }
 0x2c4   : > { %v1189_v23 = vadd.f32 %v1188_v24, %v4698_v18  ;;  %v1190_v25 = vpop.f32.mrb[34].mxu0 }
 0x2c5   : > { %v1191_v26 = vadd.f32 %v1190_v25, %v4695_v17  ;;  %v1192_v27 = vpop.f32.mrb[35].mxu0  ;;  %v1265_v29 = vmax.f32 %v1187_v22, 0.0 }
 0x2c6   : > { %v1193_v28 = vadd.f32 %v1192_v27, %v4698_v18  ;;  %v1266_v31 = vmax.f32 %v1189_v23, 0.0 }
 0x2c7   : > { %v1267_v30 = vmax.f32 %v1191_v26, 0.0 }
 0x2c8   : > { %v1268_v19 = vmax.f32 %v1193_v28, 0.0 }
 0x2c9   : > { %v1297_v32 = vpack.c.bf16 %v1267_v30, %v1265_v29 }
 0x2ca   : > { %v1298_v33 = vpack.c.bf16 %v1268_v19, %v1266_v31  ;;  %v1196_v20 = vpop.f32.mrb[36].mxu0 }
 0x2cb   : > { %v1197_v34 = vadd.f32 %v1196_v20, %v4695_v17  ;;  %v1198_v35 = vpop.f32.mrb[37].mxu0 }
 0x2cc   : > { %v1199_v36 = vadd.f32 %v1198_v35, %v4698_v18  ;;  %v1200_v37 = vpop.f32.mrb[38].mxu0  ;;  %1546 = vmatprep.mubr.bf16.mxu1 %v1298_v33 }
 0x2cd   : > { %v1201_v38 = vadd.f32 %v1200_v37, %v4695_v17  ;;  %v1202_v39 = vpop.f32.mrb[39].mxu0  ;;  %1547 = vmatmul.mubr.bf16.vlgmr.msra.gmra.mrb[32].mxu1 %v1297_v32  ;;  %v1269_v41 = vmax.f32 %v1197_v34, 0.0 }
 0x2ce   : > { %v1203_v40 = vadd.f32 %v1202_v39, %v4698_v18  ;;  %v1270_v43 = vmax.f32 %v1199_v36, 0.0 }
 0x2cf   : > { %v1271_v42 = vmax.f32 %v1201_v38, 0.0 }
 0x2d0   : > { %v1272_v44 = vmax.f32 %v1203_v40, 0.0 }
 0x2d1   : > { %v1299_v45 = vpack.c.bf16 %v1271_v42, %v1269_v41 }
 0x2d2   : > { %v1300_v46 = vpack.c.bf16 %v1272_v44, %v1270_v43  ;;  %v1206_v47 = vpop.f32.mrb[40].mxu0 }
 0x2d3   : > { %v1207_v48 = vadd.f32 %v1206_v47, %v4695_v17  ;;  %v1208_v49 = vpop.f32.mrb[41].mxu0 }
 0x2d4   : > { %v1209_v50 = vadd.f32 %v1208_v49, %v4698_v18  ;;  %v1210_v52 = vpop.f32.mrb[42].mxu0  ;;  %1556 = vmatprep.mubr.bf16.mxu1 %v1300_v46 }
 0x2d5   : > { %v1211_v53 = vadd.f32 %v1210_v52, %v4695_v17  ;;  %v1212_v51 = vpop.f32.mrb[43].mxu0  ;;  %1557 = vmatmul.mubr.bf16.gmra.mrb[36].mxu1 %v1299_v45  ;;  %v1273_v55 = vmax.f32 %v1207_v48, 0.0 }
 0x2d6   : > { %v1213_v54 = vadd.f32 %v1212_v51, %v4698_v18  ;;  %v1274_v57 = vmax.f32 %v1209_v50, 0.0 }
 0x2d7   : > { %v1275_v56 = vmax.f32 %v1211_v53, 0.0 }
 0x2d8   : > { %v1276_v58 = vmax.f32 %v1213_v54, 0.0 }
 0x2d9   : > { %v1301_v59 = vpack.c.bf16 %v1275_v56, %v1273_v55 }
 0x2da   : > { %v1302_v60 = vpack.c.bf16 %v1276_v58, %v1274_v57  ;;  %v1216_v61 = vpop.f32.mrb[44].mxu0 }
 0x2db   : > { %v1217_v62 = vadd.f32 %v1216_v61, %v4695_v17  ;;  %v1218_v63 = vpop.f32.mrb[45].mxu0 }
 0x2dc   : > { %v1219_v1 = vadd.f32 %v1218_v63, %v4698_v18  ;;  %v1220_v2 = vpop.f32.mrb[46].mxu0  ;;  %1566 = vmatprep.mubr.bf16.mxu1 %v1302_v60 }
 0x2dd   : > { %v1221_v3 = vadd.f32 %v1220_v2, %v4695_v17  ;;  %v1222_v4 = vpop.f32.mrb[47].mxu0  ;;  %1567 = vmatmul.mubr.bf16.gmra.mrb[40].mxu1 %v1301_v59  ;;  %v1277_v6 = vmax.f32 %v1217_v62, 0.0 }
 0x2de   : > { %v1223_v5 = vadd.f32 %v1222_v4, %v4698_v18  ;;  %v1278_v8 = vmax.f32 %v1219_v1, 0.0 }
 0x2df   : > { %v1279_v7 = vmax.f32 %v1221_v3, 0.0 }
 0x2e0   : > { %v1280_v9 = vmax.f32 %v1223_v5, 0.0 }
 0x2e1   : > { %v1303_v10 = vpack.c.bf16 %v1279_v7, %v1277_v6 }
 0x2e2   : > { %v1304_v11 = vpack.c.bf16 %v1280_v9, %v1278_v8  ;;  %v1226_v12 = vpop.f32.mrb[48].mxu0  ;;  %v4221_v8 = vld [vmem:[#allocation2 + $0x3e4] ss:$8 sps:$4 sm:$0xff]   ;;  %v4219_v9 = vld [vmem:[#allocation2 + $0x3e0] ss:$8 sps:$4 sm:$0xff]  }
 0x2e3   : > { %v1227_v13 = vadd.f32 %v1226_v12, %v4695_v17  ;;  %v1228_v14 = vpop.f32.mrb[49].mxu0  ;;  %1904 = vmatprep.subr.bf16.mxu0 %v4221_v8  ;;  %v4227_v12 = vld [vmem:[#allocation2 + $0x404] ss:$8 sps:$4 sm:$0xff]  }
 0x2e4   : > { %v1229_v15 = vadd.f32 %v1228_v14, %v4698_v18  ;;  %v1230_v21 = vpop.f32.mrb[50].mxu0  ;;  %1576 = vmatprep.mubr.bf16.mxu1 %v1304_v11  ;;  %1905 = vmatpush1.bf16.msra.mxu0 %v4219_v9  ;;  %v4222_v11 = vld [vmem:[#allocation2 + $0x3f0] ss:$8 sps:$4 sm:$0xff]   ;;  %v4231_v14 = vld [vmem:[#allocation2 + $0x414] ss:$8 sps:$4 sm:$0xff]  }
 0x2e5   : > { %v1231_v22 = vadd.f32 %v1230_v21, %v4695_v17  ;;  %v1232_v24 = vpop.f32.mrb[51].mxu0  ;;  %1577 = vmatmul.mubr.bf16.gmra.mrb[44].mxu1 %v1303_v10  ;;  %v1281_v25 = vmax.f32 %v1227_v13, 0.0  ;;  %v4224_v10 = vld [vmem:[#allocation2 + $0x3f4] ss:$8 sps:$4 sm:$0xff]   ;;  %2238 = vmatprep.subr.bf16.mxu1 %v4227_v12  ;;  %v4234_v21 = vld [vmem:[#allocation2 + $0x424] ss:$8 sps:$4 sm:$0xff]  }
 0x2e6   : > { %v1233_v23 = vadd.f32 %v1232_v24, %v4698_v18  ;;  %v1282_v27 = vmax.f32 %v1229_v15, 0.0  ;;  %1906 = vmatprep.subr.bf16.mxu0 %v4224_v10  ;;  %v4229_v15 = vld [vmem:[#allocation2 + $0x410] ss:$8 sps:$4 sm:$0xff]   ;;  %v4237_v24 = vld [vmem:[#allocation2 + $0x434] ss:$8 sps:$4 sm:$0xff]  }
 0x2e7   : > { %v1283_v26 = vmax.f32 %v1231_v22, 0.0  ;;  %v4232_v22 = vld [vmem:[#allocation2 + $0x420] ss:$8 sps:$4 sm:$0xff]  }
 0x2e8   : > { %v1284_v28 = vmax.f32 %v1233_v23, 0.0  ;;  %1907 = vmatpush1.bf16.msra.mxu0 %v4222_v11  ;;  %v4235_v23 = vld [vmem:[#allocation2 + $0x430] ss:$8 sps:$4 sm:$0xff]  }
 0x2e9   : > { %v1305_v29 = vpack.c.bf16 %v1283_v26, %v1281_v25  ;;  %v4240_v25 = vld [vmem:[#allocation2 + $0x444] ss:$8 sps:$4 sm:$0xff]   ;;  %v4238_v26 = vld [vmem:[#allocation2 + $0x440] ss:$8 sps:$4 sm:$0xff]  }
 0x2ea   : > { %v1306_v30 = vpack.c.bf16 %v1284_v28, %v1282_v27  ;;  %v1236_v31 = vpop.f32.mrb[52].mxu0  ;;  %v4243_v27 = vld [vmem:[#allocation2 + $0x454] ss:$8 sps:$4 sm:$0xff]   ;;  %v4241_v28 = vld [vmem:[#allocation2 + $0x450] ss:$8 sps:$4 sm:$0xff]  }
 0x2eb   : > { %v1237_v19 = vadd.f32 %v1236_v31, %v4695_v17  ;;  %v1238_v32 = vpop.f32.mrb[53].mxu0  ;;  %v4249_v31 = vld [vmem:[#allocation2 + $0x474] ss:$8 sps:$4 sm:$0xff]  }
 0x2ec   : > { %v1239_v33 = vadd.f32 %v1238_v32, %v4698_v18  ;;  %v1240_v20 = vpop.f32.mrb[54].mxu0  ;;  %1586 = vmatprep.mubr.bf16.mxu1 %v1306_v30  ;;  %v4244_v30 = vld [vmem:[#allocation2 + $0x460] ss:$8 sps:$4 sm:$0xff]   ;;  %v4252_v32 = vld [vmem:[#allocation2 + $0x484] ss:$8 sps:$4 sm:$0xff]  }
 0x2ed   : > { %v1241_v34 = vadd.f32 %v1240_v20, %v4695_v17  ;;  %v1242_v35 = vpop.f32.mrb[55].mxu0  ;;  %1587 = vmatmul.mubr.bf16.gmra.mrb[48].mxu1 %v1305_v29  ;;  %v1285_v37 = vmax.f32 %v1237_v19, 0.0  ;;  %v4246_v29 = vld [vmem:[#allocation2 + $0x464] ss:$8 sps:$4 sm:$0xff]   ;;  %v4247_v19 = vld [vmem:[#allocation2 + $0x470] ss:$8 sps:$4 sm:$0xff]  }
 0x2ee   : > { %v1243_v36 = vadd.f32 %v1242_v35, %v4698_v18  ;;  %v1286_v39 = vmax.f32 %v1239_v33, 0.0  ;;  %v4250_v33 = vld [vmem:[#allocation2 + $0x480] ss:$8 sps:$4 sm:$0xff]   ;;  %v4255_v20 = vld [vmem:[#allocation2 + $0x494] ss:$8 sps:$4 sm:$0xff]  }
 0x2ef   : > { %v1287_v38 = vmax.f32 %v1241_v34, 0.0  ;;  %v4253_v34 = vld [vmem:[#allocation2 + $0x490] ss:$8 sps:$4 sm:$0xff]   ;;  %v4258_v35 = vld [vmem:[#allocation2 + $0x4a4] ss:$8 sps:$4 sm:$0xff]  }
 0x2f0   : > { %v1288_v40 = vmax.f32 %v1243_v36, 0.0  ;;  %v4256_v36 = vld [vmem:[#allocation2 + $0x4a0] ss:$8 sps:$4 sm:$0xff]  }
 0x2f1   : > { %v1307_v41 = vpack.c.bf16 %v1287_v38, %v1285_v37  ;;  %v4261_v37 = vld [vmem:[#allocation2 + $0x4b4] ss:$8 sps:$4 sm:$0xff]   ;;  %v4259_v38 = vld [vmem:[#allocation2 + $0x4b0] ss:$8 sps:$4 sm:$0xff]  }
 0x2f2   : > { %v1308_v42 = vpack.c.bf16 %v1288_v40, %v1286_v39  ;;  %v1246_v43 = vpop.f32.mrb[56].mxu0  ;;  %v4264_v39 = vld [vmem:[#allocation2 + $0x4c4] ss:$8 sps:$4 sm:$0xff]   ;;  %v4262_v40 = vld [vmem:[#allocation2 + $0x4c0] ss:$8 sps:$4 sm:$0xff]  }
 0x2f3   : > { %v1247_v44 = vadd.f32 %v1246_v43, %v4695_v17  ;;  %v1248_v45 = vpop.f32.mrb[57].mxu0  ;;  %v1348_v43 = vsub.s32 3, %v4603_v16 }
 0x2f4   : > { %v1249_v46 = vadd.f32 %v1248_v45, %v4698_v18  ;;  %v1250_v47 = vpop.f32.mrb[58].mxu0  ;;  %1596 = vmatprep.mubr.bf16.mxu1 %v1308_v42  ;;  %v4265_v42 = vld [vmem:[#allocation2 + $0x4d0] ss:$8 sps:$4 sm:$0xff]  }
 0x2f5   : > { %v1251_v48 = vadd.f32 %v1250_v47, %v4695_v17  ;;  %v1252_v49 = vpop.f32.mrb[59].mxu0  ;;  %1597 = vmatmul.mubr.bf16.gmra.mrb[52].mxu1 %v1307_v41  ;;  %v1289_v52 = vmax.f32 %v1247_v44, 0.0  ;;  %v4267_v41 = vld [vmem:[#allocation2 + $0x4d4] ss:$8 sps:$4 sm:$0xff]   ;;  %v4744_v44 = vld [vmem:[%s5232_s4] sm:$0xff] }
 0x2f6   : > { %v1253_v50 = vadd.f32 %v1252_v49, %v4698_v18  ;;  %v1290_v51 = vmax.f32 %v1249_v46, 0.0  ;;  %v4747_v45 = vrot.slane %v4744_v44, %v1348_v43  ;;  %v4752_v46 = vld [vmem:[%s5232_s4 + $0x8] sm:$0xff] }
 0x2f7   : > { %v1291_v53 = vmax.f32 %v1251_v48, 0.0  ;;  %v4755_v47 = vrot.slane %v4752_v46, %v1348_v43 }
 0x2f8   : > { %v1292_v54 = vmax.f32 %v1253_v50, 0.0 }
 0x2f9   : > { %v1309_v55 = vpack.c.bf16 %v1291_v53, %v1289_v52 }
 0x2fa   : > { %v1310_v56 = vpack.c.bf16 %v1292_v54, %v1290_v51  ;;  %v1256_v57 = vpop.f32.mrb[60].mxu0 }
 0x2fb   : > { %v1257_v58 = vadd.f32 %v1256_v57, %v4695_v17  ;;  %v1258_v59 = vpop.f32.mrb[61].mxu0 }
 0x2fc   : > { %v1259_v60 = vadd.f32 %v1258_v59, %v4698_v18  ;;  %v1260_v61 = vpop.f32.mrb[62].mxu0  ;;  %1606 = vmatprep.mubr.bf16.mxu1 %v1310_v56 }
 0x2fd   : > { %v1261_v62 = vadd.f32 %v1260_v61, %v4695_v17  ;;  %v1262_v63 = vpop.f32.mrb[63].mxu0  ;;  %1607 = vmatmul.mubr.bf16.gmra.mrb[56].mxu1 %v1309_v55  ;;  %v1293_v2 = vmax.f32 %v1257_v58, 0.0  ;;  %v4225_v17 = vld [vmem:[#allocation2 + $0x400] ss:$8 sps:$4 sm:$0xff]  }
 0x2fe   : > { %v1263_v1 = vadd.f32 %v1262_v63, %v4698_v18  ;;  %v1294_v4 = vmax.f32 %v1259_v60, 0.0  ;;  %v4735_v18 = vld [vmem:[%s5230_s2] sm:$0x77]  ;;  %2239 = vmatpush1.bf16.msra.mxu1 %v4225_v17 }
 0x2ff   : > { %v1295_v3 = vmax.f32 %v1261_v62, 0.0  ;;  %v2353_v13 = vcombine.high %v4735_v18, %v4735_v18  ;;  %2240 = vmatprep.subr.bf16.mxu1 %v4231_v14 }
 0x300   : > { %v1296_v5 = vmax.f32 %v1263_v1, 0.0 }
 0x301   : > { %v1311_v6 = vpack.c.bf16 %v1295_v3, %v1293_v2  ;;  %3829 = vmatprep.subr.msk.mxu0 %vm376_vm0, %v2353_v13 }
 0x302   : > { %v1312_v7 = vpack.c.bf16 %v1296_v5, %v1294_v4  ;;  %2241 = vmatpush1.bf16.msra.mxu1 %v4229_v15 }
 0x303   : > { %2242 = vmatprep.subr.bf16.mxu1 %v4234_v21 }
 0x304   : > { %1616 = vmatprep.mubr.bf16.mxu1 %v1312_v7 }
 0x305   : > { %1617 = vmatmul.mubr.bf16.gmra.mrb[60].mxu1 %v1311_v6 }
 0x306   : > { %2243 = vmatpush1.bf16.msra.mxu1 %v4232_v22 }
 0x307   : > { %2244 = vmatprep.subr.bf16.mxu1 %v4237_v24 }
 0x30a   : > { %2245 = vmatpush1.bf16.msra.mxu1 %v4235_v23 }
 0x30b   : > { %2246 = vmatprep.subr.bf16.mxu1 %v4240_v25 }
 0x30e   : > { %2247 = vmatpush1.bf16.msra.mxu1 %v4238_v26 }
 0x30f   : > { %2248 = vmatprep.subr.bf16.mxu1 %v4243_v27 }
 0x312   : > { %2249 = vmatpush1.bf16.msra.mxu1 %v4241_v28 }
 0x313   : > { %2250 = vmatprep.subr.bf16.mxu1 %v4246_v29 }
 0x316   : > { %2251 = vmatpush1.bf16.msra.mxu1 %v4244_v30 }
 0x317   : > { %2252 = vmatprep.subr.bf16.mxu1 %v4249_v31 }
 0x31a   : > { %2253 = vmatpush1.bf16.msra.mxu1 %v4247_v19 }
 0x31b   : > { %2254 = vmatprep.subr.bf16.mxu1 %v4252_v32 }
 0x31e   : > { %2255 = vmatpush1.bf16.msra.mxu1 %v4250_v33 }
 0x31f   : > { %2256 = vmatprep.subr.bf16.mxu1 %v4255_v20 }
 0x322   : > { %2257 = vmatpush1.bf16.msra.mxu1 %v4253_v34 }
 0x323   : > { %2258 = vmatprep.subr.bf16.mxu1 %v4258_v35 }
 0x326   : > { %2259 = vmatpush1.bf16.msra.mxu1 %v4256_v36 }
 0x327   : > { %2260 = vmatprep.subr.bf16.mxu1 %v4261_v37 }
 0x32a   : > { %2261 = vmatpush1.bf16.msra.mxu1 %v4259_v38 }
 0x32b   : > { %2262 = vmatprep.subr.bf16.mxu1 %v4264_v39 }
 0x32e   : > { %2263 = vmatpush1.bf16.msra.mxu1 %v4262_v40 }
 0x32f   : > { %2264 = vmatprep.subr.bf16.mxu1 %v4267_v41 }
 0x332   : > { %2265 = vmatpush1.bf16.msra.mxu1 %v4265_v42 }
 0x3a0   : > { %v1548_v48 = vpop.f32.mrb[32].mxu1 }
 0x3a1   : > { %v1549_v49 = vadd.f32 %v1548_v48, %v4747_v45  ;;  %v1550_v50 = vpop.f32.mrb[33].mxu1 }
 0x3a2   : > { %v1551_v52 = vadd.f32 %v1550_v50, %v4755_v47  ;;  %v1552_v53 = vpop.f32.mrb[34].mxu1 }
 0x3a3   : > { %v1553_v51 = vadd.f32 %v1552_v53, %v4747_v45  ;;  %v1554_v54 = vpop.f32.mrb[35].mxu1  ;;  %v1627_v56 = vmax.f32 %v1549_v49, 0.0 }
 0x3a4   : > { %v1555_v55 = vadd.f32 %v1554_v54, %v4755_v47  ;;  %v1628_v58 = vmax.f32 %v1551_v52, 0.0 }
 0x3a5   : > { %v1629_v57 = vmax.f32 %v1553_v51, 0.0 }
 0x3a6   : > { %v1630_v59 = vmax.f32 %v1555_v55, 0.0 }
 0x3a7   : > { %v1659_v60 = vpack.c.bf16 %v1629_v57, %v1627_v56 }
 0x3a8   : > { %v1660_v61 = vpack.c.bf16 %v1630_v59, %v1628_v58  ;;  %v1558_v62 = vpop.f32.mrb[36].mxu1 }
 0x3a9   : > { %v1559_v63 = vadd.f32 %v1558_v62, %v4747_v45  ;;  %v1560_v1 = vpop.f32.mrb[37].mxu1 }
 0x3aa   : > { %v1561_v2 = vadd.f32 %v1560_v1, %v4755_v47  ;;  %v1562_v3 = vpop.f32.mrb[38].mxu1  ;;  %1908 = vmatprep.mubr.bf16.mxu0 %v1660_v61 }
 0x3ab   : > { %v1563_v4 = vadd.f32 %v1562_v3, %v4747_v45  ;;  %v1564_v5 = vpop.f32.mrb[39].mxu1  ;;  %1909 = vmatmul.mubr.bf16.vlgmr.msra.gmra.mrb[64].mxu0 %v1659_v60  ;;  %v1631_v7 = vmax.f32 %v1559_v63, 0.0 }
 0x3ac   : > { %v1565_v6 = vadd.f32 %v1564_v5, %v4755_v47  ;;  %3830 = vmatpush1.msk.msra.mxu0 %vm376_vm0, %v4735_v18  ;;  %v1632_v9 = vmax.f32 %v1561_v2, 0.0 }
 0x3ad   : > { %v1633_v8 = vmax.f32 %v1563_v4, 0.0 }
 0x3ae   : > { %v1634_v10 = vmax.f32 %v1565_v6, 0.0 }
 0x3af   : > { %v1661_v11 = vpack.c.bf16 %v1633_v8, %v1631_v7 }
 0x3b0   : > { %v1662_v17 = vpack.c.bf16 %v1634_v10, %v1632_v9  ;;  %v1568_v12 = vpop.f32.mrb[40].mxu1 }
 0x3b1   : > { %v1569_v13 = vadd.f32 %v1568_v12, %v4747_v45  ;;  %v1570_v14 = vpop.f32.mrb[41].mxu1 }
 0x3b2   : > { %v1571_v15 = vadd.f32 %v1570_v14, %v4755_v47  ;;  %v1572_v21 = vpop.f32.mrb[42].mxu1  ;;  %1918 = vmatprep.mubr.bf16.mxu0 %v1662_v17 }
 0x3b3   : > { %v1573_v22 = vadd.f32 %v1572_v21, %v4747_v45  ;;  %v1574_v24 = vpop.f32.mrb[43].mxu1  ;;  %1919 = vmatmul.mubr.bf16.gmra.mrb[68].mxu0 %v1661_v11  ;;  %v1635_v23 = vmax.f32 %v1569_v13, 0.0 }
 0x3b4   : > { %v1575_v18 = vadd.f32 %v1574_v24, %v4755_v47  ;;  %v1636_v26 = vmax.f32 %v1571_v15, 0.0 }
 0x3b5   : > { %v1637_v25 = vmax.f32 %v1573_v22, 0.0 }
 0x3b6   : > { %v1638_v27 = vmax.f32 %v1575_v18, 0.0 }
 0x3b7   : > { %v1663_v28 = vpack.c.bf16 %v1637_v25, %v1635_v23 }
 0x3b8   : > { %v1664_v29 = vpack.c.bf16 %v1638_v27, %v1636_v26  ;;  %v1578_v30 = vpop.f32.mrb[44].mxu1 }
 0x3b9   : > { %v1579_v31 = vadd.f32 %v1578_v30, %v4747_v45  ;;  %v1580_v19 = vpop.f32.mrb[45].mxu1 }
 0x3ba   : > { %v1581_v32 = vadd.f32 %v1580_v19, %v4755_v47  ;;  %v1582_v33 = vpop.f32.mrb[46].mxu1  ;;  %1928 = vmatprep.mubr.bf16.mxu0 %v1664_v29 }
 0x3bb   : > { %v1583_v20 = vadd.f32 %v1582_v33, %v4747_v45  ;;  %v1584_v34 = vpop.f32.mrb[47].mxu1  ;;  %1929 = vmatmul.mubr.bf16.gmra.mrb[72].mxu0 %v1663_v28  ;;  %v1639_v36 = vmax.f32 %v1579_v31, 0.0 }
 0x3bc   : > { %v1585_v35 = vadd.f32 %v1584_v34, %v4755_v47  ;;  %v1640_v38 = vmax.f32 %v1581_v32, 0.0 }
 0x3bd   : > { %v1641_v37 = vmax.f32 %v1583_v20, 0.0 }
 0x3be   : > { %v1642_v39 = vmax.f32 %v1585_v35, 0.0 }
 0x3bf   : > { %v1665_v40 = vpack.c.bf16 %v1641_v37, %v1639_v36 }
 0x3c0   : > { %v1666_v41 = vpack.c.bf16 %v1642_v39, %v1640_v38  ;;  %v1588_v42 = vpop.f32.mrb[48].mxu1 }
 0x3c1   : > { %v1589_v43 = vadd.f32 %v1588_v42, %v4747_v45  ;;  %v1590_v48 = vpop.f32.mrb[49].mxu1  ;;  %v4392_v42 = vld [vmem:[%s4549_s26 + $0x20] sm:$0xff] }
 0x3c2   : > { %v1591_v49 = vadd.f32 %v1590_v48, %v4755_v47  ;;  %v1592_v50 = vpop.f32.mrb[50].mxu1  ;;  %1938 = vmatprep.mubr.bf16.mxu0 %v1666_v41  ;;  %v4391_v41 = vld [vmem:[%s4549_s26 + $0x18] sm:$0xff]  ;;  %v4393_v48 = vld [vmem:[%s4549_s26 + $0x28] sm:$0xff] }
 0x3c3   : > { %v1593_v52 = vadd.f32 %v1592_v50, %v4747_v45  ;;  %v1594_v53 = vpop.f32.mrb[51].mxu1  ;;  %1939 = vmatmul.mubr.bf16.gmra.mrb[76].mxu0 %v1665_v40  ;;  %v1643_v54 = vmax.f32 %v1589_v43, 0.0  ;;  %v4388_v40 = vld [vmem:[%s4549_s26] sm:$0xff]  ;;  %v4273_v50 = vld [vmem:[#allocation2 + $0x4f4] ss:$8 sps:$4 sm:$0xff]  }
 0x3c4   : > { %v1595_v51 = vadd.f32 %v1594_v53, %v4755_v47  ;;  %v1644_v56 = vmax.f32 %v1591_v49, 0.0  ;;  %v4270_v43 = vld [vmem:[#allocation2 + $0x4e4] ss:$8 sps:$4 sm:$0xff]   ;;  %v4268_v49 = vld [vmem:[#allocation2 + $0x4e0] ss:$8 sps:$4 sm:$0xff]  }
 0x3c5   : > { %v1645_v55 = vmax.f32 %v1593_v52, 0.0  ;;  %2266 = vmatprep.subr.bf16.mxu1 %v4270_v43  ;;  %v4394_v52 = vld [vmem:[%s4549_s26 + $0x30] sm:$0xff] }
 0x3c6   : > { %v1646_v57 = vmax.f32 %v1595_v51, 0.0  ;;  %2267 = vmatpush1.bf16.msra.mxu1 %v4268_v49  ;;  %v4271_v53 = vld [vmem:[#allocation2 + $0x4f0] ss:$8 sps:$4 sm:$0xff]  }
 0x3c7   : > { %v1667_v58 = vpack.c.bf16 %v1645_v55, %v1643_v54  ;;  %2268 = vmatprep.subr.bf16.mxu1 %v4273_v50  ;;  %v4395_v51 = vld [vmem:[%s4549_s26 + $0x38] sm:$0xff]  ;;  %v4396_v54 = vld [vmem:[%s4549_s26 + $0x40] sm:$0xff]  ;;  %v4397_v55 = vld [vmem:[%s4549_s26 + $0x48] sm:$0xff] }
 0x3c8   : > { %v1668_v59 = vpack.c.bf16 %v1646_v57, %v1644_v56  ;;  %v1598_v60 = vpop.f32.mrb[52].mxu1  ;;  %v4398_v56 = vld [vmem:[%s4549_s26 + $0x50] sm:$0xff]  ;;  %v4399_v57 = vld [vmem:[%s4549_s26 + $0x58] sm:$0xff]  ;;  %v4288_v50 = vld [vmem:[#allocation2 + $0x544] ss:$8 sps:$4 sm:$0xff]  }
 0x3c9   : > { %v1599_v61 = vadd.f32 %v1598_v60, %v4747_v45  ;;  %v1600_v62 = vpop.f32.mrb[53].mxu1  ;;  %v4402_v60 = vld [vmem:[%s4549_s26 + $0x70] sm:$0xff] }
 0x3ca   : > { %v1601_v63 = vadd.f32 %v1600_v62, %v4755_v47  ;;  %v1602_v1 = vpop.f32.mrb[54].mxu1  ;;  %1948 = vmatprep.mubr.bf16.mxu0 %v1668_v59  ;;  %2269 = vmatpush1.bf16.msra.mxu1 %v4271_v53  ;;  %v4401_v59 = vld [vmem:[%s4549_s26 + $0x68] sm:$0xff]  ;;  %v4283_v43 = vld [vmem:[#allocation2 + $0x530] ss:$8 sps:$4 sm:$0xff]  }
 0x3cb   : > { %v1603_v2 = vadd.f32 %v1602_v1, %v4747_v45  ;;  %v1604_v3 = vpop.f32.mrb[55].mxu1  ;;  %1949 = vmatmul.mubr.bf16.gmra.mrb[80].mxu0 %v1667_v58  ;;  %v1647_v5 = vmax.f32 %v1599_v61, 0.0  ;;  %v4400_v58 = vld [vmem:[%s4549_s26 + $0x60] sm:$0xff]  ;;  %v4403_v61 = vld [vmem:[%s4549_s26 + $0x78] sm:$0xff] }
 0x3cc   : > { %v1605_v4 = vadd.f32 %v1604_v3, %v4755_v47  ;;  %v1648_v7 = vmax.f32 %v1601_v63, 0.0  ;;  %v4276_v62 = vld [vmem:[#allocation2 + $0x504] ss:$8 sps:$4 sm:$0xff]   ;;  %v1710_v63 = vsub.s32 4, %v4603_v16 }
 0x3cd   : > { %v1649_v6 = vmax.f32 %v1603_v2, 0.0  ;;  %2800 = vmatprep.subr.bf16.mxu1 %v4276_v62 }
 0x3ce   : > { %v1650_v8 = vmax.f32 %v1605_v4, 0.0  ;;  %v4841_v1 = vrot.slane %v4744_v44, %v1710_v63  ;;  %v4844_v2 = vrot.slane %v4752_v46, %v1710_v63 }
 0x3cf   : > { %v1669_v9 = vpack.c.bf16 %v1649_v6, %v1647_v5 }
 0x3d0   : > { %v1670_v10 = vpack.c.bf16 %v1650_v8, %v1648_v7  ;;  %v1608_v11 = vpop.f32.mrb[56].mxu1 }
 0x3d1   : > { %v1609_v17 = vadd.f32 %v1608_v11, %v4747_v45  ;;  %v1610_v12 = vpop.f32.mrb[57].mxu1 }
 0x3d2   : > { %v1611_v13 = vadd.f32 %v1610_v12, %v4755_v47  ;;  %v1612_v14 = vpop.f32.mrb[58].mxu1  ;;  %1958 = vmatprep.mubr.bf16.mxu0 %v1670_v10 }
 0x3d3   : > { %v1613_v15 = vadd.f32 %v1612_v14, %v4747_v45  ;;  %v1614_v21 = vpop.f32.mrb[59].mxu1  ;;  %1959 = vmatmul.mubr.bf16.gmra.mrb[84].mxu0 %v1669_v9  ;;  %v1651_v24 = vmax.f32 %v1609_v17, 0.0 }
 0x3d4   : > { %v1615_v22 = vadd.f32 %v1614_v21, %v4755_v47  ;;  %v1652_v23 = vmax.f32 %v1611_v13, 0.0  ;;  %v4274_v21 = vld [vmem:[#allocation2 + $0x500] ss:$8 sps:$4 sm:$0xff]  }
 0x3d5   : > { %v1653_v18 = vmax.f32 %v1613_v15, 0.0 }
 0x3d6   : > { %v1654_v25 = vmax.f32 %v1615_v22, 0.0 }
 0x3d7   : > { %v1671_v26 = vpack.c.bf16 %v1653_v18, %v1651_v24  ;;  %v4279_v18 = vld [vmem:[#allocation2 + $0x514] ss:$8 sps:$4 sm:$0xff]  }
 0x3d8   : > { %v1672_v27 = vpack.c.bf16 %v1654_v25, %v1652_v23  ;;  %v1618_v28 = vpop.f32.mrb[60].mxu1 }
 0x3d9   : > { %v1619_v29 = vadd.f32 %v1618_v28, %v4747_v45  ;;  %v1620_v30 = vpop.f32.mrb[61].mxu1 }
 0x3da   : > { %v1621_v31 = vadd.f32 %v1620_v30, %v4755_v47  ;;  %v1622_v19 = vpop.f32.mrb[62].mxu1  ;;  %1968 = vmatprep.mubr.bf16.mxu0 %v1672_v27 }
 0x3db   : > { %v1623_v32 = vadd.f32 %v1622_v19, %v4747_v45  ;;  %v1624_v33 = vpop.f32.mrb[63].mxu1  ;;  %1969 = vmatmul.mubr.bf16.gmra.mrb[88].mxu0 %v1671_v26  ;;  %v1655_v34 = vmax.f32 %v1619_v29, 0.0  ;;  %v4389_v45 = vld [vmem:[%s4549_s26 + $0x8] sm:$0xff]  ;;  %v4277_v29 = vld [vmem:[#allocation2 + $0x510] ss:$8 sps:$4 sm:$0xff]  }
 0x3dc   : > { %v1625_v20 = vadd.f32 %v1624_v33, %v4755_v47  ;;  %v1656_v36 = vmax.f32 %v1621_v31, 0.0  ;;  %v4390_v47 = vld [vmem:[%s4549_s26 + $0x10] sm:$0xff]  ;;  %v4282_v19 = vld [vmem:[#allocation2 + $0x524] ss:$8 sps:$4 sm:$0xff]  }
 0x3dd   : > { %v1657_v35 = vmax.f32 %v1623_v32, 0.0 }
 0x3de   : > { %v1658_v37 = vmax.f32 %v1625_v20, 0.0 }
 0x3df   : > { %v1673_v38 = vpack.c.bf16 %v1657_v35, %v1655_v34 }
 0x3e0   : > { %v1674_v39 = vpack.c.bf16 %v1658_v37, %v1656_v36  ;;  %v4280_v36 = vld [vmem:[#allocation2 + $0x520] ss:$8 sps:$4 sm:$0xff]  }
 0x3e2   : > { %1978 = vmatprep.mubr.bf16.mxu0 %v1674_v39  ;;  %v4285_v39 = vld [vmem:[#allocation2 + $0x534] ss:$8 sps:$4 sm:$0xff]  }
 0x3e3   : > { %1979 = vmatmul.mubr.bf16.gmra.mrb[92].mxu0 %v1673_v38 }
 0x3e4   : > { %2422 = vmatprep.mubr.f32.mxu0 %v4449_v0 }
 0x3eb   : > { %3831 = vmatmul.mubr.msk.f32.vlgmr.msra.gmra.mrb[96].mxu0 %vm327_vm1, %v4388_v40 }
 0x3ec   : > { %2428 = vmatprep.mubr.f32.mxu0 %v4449_v0 }
 0x3ef   : > { %3832 = vmatmul.mubr.msk.f32.gmra.mrb[98].mxu0 %vm327_vm1, %v4389_v45 }
 0x3f0   : > { %2434 = vmatprep.mubr.f32.mxu0 %v4449_v0 }
 0x3f3   : > { %3833 = vmatmul.mubr.msk.f32.gmra.mrb[100].mxu0 %vm327_vm1, %v4390_v47 }
 0x3f4   : > { %2440 = vmatprep.mubr.f32.mxu0 %v4449_v0 }
 0x3f7   : > { %3834 = vmatmul.mubr.msk.f32.gmra.mrb[102].mxu0 %vm327_vm1, %v4391_v41 }
 0x3f8   : > { %2446 = vmatprep.mubr.f32.mxu0 %v4449_v0 }
 0x3fb   : > { %3835 = vmatmul.mubr.msk.f32.gmra.mrb[104].mxu0 %vm327_vm1, %v4392_v42 }
 0x3fc   : > { %2452 = vmatprep.mubr.f32.mxu0 %v4449_v0 }
 0x3ff   : > { %3836 = vmatmul.mubr.msk.f32.gmra.mrb[106].mxu0 %vm327_vm1, %v4393_v48 }
 0x400   : > { %2458 = vmatprep.mubr.f32.mxu0 %v4449_v0 }
 0x403   : > { %3837 = vmatmul.mubr.msk.f32.gmra.mrb[108].mxu0 %vm327_vm1, %v4394_v52 }
 0x404   : > { %2464 = vmatprep.mubr.f32.mxu0 %v4449_v0 }
 0x407   : > { %3838 = vmatmul.mubr.msk.f32.gmra.mrb[110].mxu0 %vm327_vm1, %v4395_v51 }
 0x408   : > { %2470 = vmatprep.mubr.f32.mxu0 %v4449_v0 }
 0x40b   : > { %3839 = vmatmul.mubr.msk.f32.gmra.mrb[112].mxu0 %vm327_vm1, %v4396_v54 }
 0x40c   : > { %2476 = vmatprep.mubr.f32.mxu0 %v4449_v0 }
 0x40f   : > { %3840 = vmatmul.mubr.msk.f32.gmra.mrb[114].mxu0 %vm327_vm1, %v4397_v55 }
 0x410   : > { %2482 = vmatprep.mubr.f32.mxu0 %v4449_v0 }
 0x413   : > { %3841 = vmatmul.mubr.msk.f32.gmra.mrb[116].mxu0 %vm327_vm1, %v4398_v56  ;;  %v4286_v56 = vld [vmem:[#allocation2 + $0x540] ss:$8 sps:$4 sm:$0xff]  }
 0x414   : > { %2488 = vmatprep.mubr.f32.mxu0 %v4449_v0 }
 0x417   : > { %3842 = vmatmul.mubr.msk.f32.gmra.mrb[118].mxu0 %vm327_vm1, %v4399_v57 }
 0x418   : > { %2494 = vmatprep.mubr.f32.mxu0 %v4449_v0 }
 0x41b   : > { %3843 = vmatmul.mubr.msk.f32.gmra.mrb[120].mxu0 %vm327_vm1, %v4400_v58 }
 0x41c   : > { %2500 = vmatprep.mubr.f32.mxu0 %v4449_v0 }
 0x41f   : > { %3844 = vmatmul.mubr.msk.f32.gmra.mrb[122].mxu0 %vm327_vm1, %v4401_v59  ;;  %v4291_v59 = vld [vmem:[#allocation2 + $0x554] ss:$8 sps:$4 sm:$0xff]  }
 0x420   : > { %2506 = vmatprep.mubr.f32.mxu0 %v4449_v0 }
 0x423   : > { %3845 = vmatmul.mubr.msk.f32.gmra.mrb[124].mxu0 %vm327_vm1, %v4402_v60 }
 0x424   : > { %2512 = vmatprep.mubr.f32.mxu0 %v4449_v0 }
 0x427   : > { %3846 = vmatmul.mubr.msk.f32.gmra.mrb[126].mxu0 %vm327_vm1, %v4403_v61 }
 0x47e   : > { %v1910_v3 = vpop.f32.mrb[64].mxu0 }
 0x47f   : > { %v1911_v4 = vadd.f32 %v1910_v3, %v4841_v1  ;;  %v1912_v5 = vpop.f32.mrb[65].mxu0 }
 0x480   : > { %v1913_v6 = vadd.f32 %v1912_v5, %v4844_v2  ;;  %v1914_v0 = vpop.f32.mrb[66].mxu0 }
 0x481   : > { %v1915_v7 = vadd.f32 %v1914_v0, %v4841_v1  ;;  %v1916_v8 = vpop.f32.mrb[67].mxu0  ;;  %v1989_v10 = vmax.f32 %v1911_v4, 0.0  ;;  %v4289_v4 = vld [vmem:[#allocation2 + $0x550] ss:$8 sps:$4 sm:$0xff]   ;;  %v4294_v0 = vld [vmem:[#allocation2 + $0x564] ss:$8 sps:$4 sm:$0xff]  }
 0x482   : > { %v1917_v9 = vadd.f32 %v1916_v8, %v4844_v2  ;;  %v1990_v17 = vmax.f32 %v1913_v6, 0.0 }
 0x483   : > { %v1991_v11 = vmax.f32 %v1915_v7, 0.0 }
 0x484   : > { %v1992_v12 = vmax.f32 %v1917_v9, 0.0 }
 0x485   : > { %v2021_v13 = vpack.c.bf16 %v1991_v11, %v1989_v10 }
 0x486   : > { %v2022_v14 = vpack.c.bf16 %v1992_v12, %v1990_v17  ;;  %v1920_v15 = vpop.f32.mrb[68].mxu0  ;;  %v4292_v17 = vld [vmem:[#allocation2 + $0x560] ss:$8 sps:$4 sm:$0xff]  }
 0x487   : > { %v1921_v22 = vadd.f32 %v1920_v15, %v4841_v1  ;;  %v1922_v24 = vpop.f32.mrb[69].mxu0 }
 0x488   : > { %v1923_v23 = vadd.f32 %v1922_v24, %v4844_v2  ;;  %v1924_v25 = vpop.f32.mrb[70].mxu0  ;;  %2270 = vmatprep.mubr.bf16.mxu1 %v2022_v14  ;;  %v4297_v14 = vld [vmem:[#allocation2 + $0x574] ss:$8 sps:$4 sm:$0xff]  }
 0x489   : > { %v1925_v26 = vadd.f32 %v1924_v25, %v4841_v1  ;;  %v1926_v27 = vpop.f32.mrb[71].mxu0  ;;  %2271 = vmatmul.mubr.bf16.vlgmr.msra.gmra.mrb[64].mxu1 %v2021_v13  ;;  %v1993_v30 = vmax.f32 %v1921_v22, 0.0 }
 0x48a   : > { %v1927_v28 = vadd.f32 %v1926_v27, %v4844_v2  ;;  %2801 = vmatpush1.bf16.msra.mxu1 %v4274_v21  ;;  %v1994_v32 = vmax.f32 %v1923_v23, 0.0  ;;  %v4295_v23 = vld [vmem:[#allocation2 + $0x570] ss:$8 sps:$4 sm:$0xff]   ;;  %v4300_v27 = vld [vmem:[#allocation2 + $0x584] ss:$8 sps:$4 sm:$0xff]  }
 0x48b   : > { %v1995_v31 = vmax.f32 %v1925_v26, 0.0  ;;  %2802 = vmatprep.subr.bf16.mxu1 %v4279_v18 }
 0x48c   : > { %v1996_v33 = vmax.f32 %v1927_v28, 0.0 }
 0x48d   : > { %v2023_v20 = vpack.c.bf16 %v1995_v31, %v1993_v30 }
 0x48e   : > { %v2024_v34 = vpack.c.bf16 %v1996_v33, %v1994_v32  ;;  %v1930_v35 = vpop.f32.mrb[72].mxu0  ;;  %2803 = vmatpush1.bf16.msra.mxu1 %v4277_v29  ;;  %v4298_v32 = vld [vmem:[#allocation2 + $0x580] ss:$8 sps:$4 sm:$0xff]  }
 0x48f   : > { %v1931_v37 = vadd.f32 %v1930_v35, %v4841_v1  ;;  %v1932_v38 = vpop.f32.mrb[73].mxu0  ;;  %2804 = vmatprep.subr.bf16.mxu1 %v4282_v19 }
 0x490   : > { %v1933_v40 = vadd.f32 %v1932_v38, %v4844_v2  ;;  %v1934_v45 = vpop.f32.mrb[74].mxu0  ;;  %2280 = vmatprep.mubr.bf16.mxu1 %v2024_v34  ;;  %v4303_v34 = vld [vmem:[#allocation2 + $0x594] ss:$8 sps:$4 sm:$0xff]  }
 0x491   : > { %v1935_v47 = vadd.f32 %v1934_v45, %v4841_v1  ;;  %v1936_v41 = vpop.f32.mrb[75].mxu0  ;;  %2281 = vmatmul.mubr.bf16.gmra.mrb[68].mxu1 %v2023_v20  ;;  %v1997_v48 = vmax.f32 %v1931_v37, 0.0 }
 0x492   : > { %v1937_v42 = vadd.f32 %v1936_v41, %v4844_v2  ;;  %2805 = vmatpush1.bf16.msra.mxu1 %v4280_v36  ;;  %v1998_v52 = vmax.f32 %v1933_v40, 0.0  ;;  %v4301_v40 = vld [vmem:[#allocation2 + $0x590] ss:$8 sps:$4 sm:$0xff]   ;;  %v4306_v41 = vld [vmem:[#allocation2 + $0x5a4] ss:$8 sps:$4 sm:$0xff]  }
 0x493   : > { %v1999_v49 = vmax.f32 %v1935_v47, 0.0  ;;  %2806 = vmatprep.subr.bf16.mxu1 %v4285_v39 }
 0x494   : > { %v2000_v53 = vmax.f32 %v1937_v42, 0.0 }
 0x495   : > { %v2025_v51 = vpack.c.bf16 %v1999_v49, %v1997_v48 }
 0x496   : > { %v2026_v54 = vpack.c.bf16 %v2000_v53, %v1998_v52  ;;  %v1940_v55 = vpop.f32.mrb[76].mxu0  ;;  %2807 = vmatpush1.bf16.msra.mxu1 %v4283_v43  ;;  %v4304_v52 = vld [vmem:[#allocation2 + $0x5a0] ss:$8 sps:$4 sm:$0xff]  }
 0x497   : > { %v1941_v57 = vadd.f32 %v1940_v55, %v4841_v1  ;;  %v1942_v58 = vpop.f32.mrb[77].mxu0  ;;  %2808 = vmatprep.subr.bf16.mxu1 %v4288_v50 }
 0x498   : > { %v1943_v60 = vadd.f32 %v1942_v58, %v4844_v2  ;;  %v1944_v61 = vpop.f32.mrb[78].mxu0  ;;  %2290 = vmatprep.mubr.bf16.mxu1 %v2026_v54  ;;  %v4309_v54 = vld [vmem:[#allocation2 + $0x5b4] ss:$8 sps:$4 sm:$0xff]  }
 0x499   : > { %v1945_v62 = vadd.f32 %v1944_v61, %v4841_v1  ;;  %v1946_v63 = vpop.f32.mrb[79].mxu0  ;;  %2291 = vmatmul.mubr.bf16.gmra.mrb[72].mxu1 %v2025_v51  ;;  %v2001_v5 = vmax.f32 %v1941_v57, 0.0 }
 0x49a   : > { %v1947_v3 = vadd.f32 %v1946_v63, %v4844_v2  ;;  %2809 = vmatpush1.bf16.msra.mxu1 %v4286_v56  ;;  %v2002_v7 = vmax.f32 %v1943_v60, 0.0  ;;  %v4307_v60 = vld [vmem:[#allocation2 + $0x5b0] ss:$8 sps:$4 sm:$0xff]   ;;  %v4312_v63 = vld [vmem:[#allocation2 + $0x5c4] ss:$8 sps:$4 sm:$0xff]  }
 0x49b   : > { %v2003_v6 = vmax.f32 %v1945_v62, 0.0  ;;  %2810 = vmatprep.subr.bf16.mxu1 %v4291_v59 }
 0x49c   : > { %v2004_v8 = vmax.f32 %v1947_v3, 0.0 }
 0x49d   : > { %v2027_v9 = vpack.c.bf16 %v2003_v6, %v2001_v5 }
 0x49e   : > { %v2028_v10 = vpack.c.bf16 %v2004_v8, %v2002_v7  ;;  %v1950_v11 = vpop.f32.mrb[80].mxu0  ;;  %2811 = vmatpush1.bf16.msra.mxu1 %v4289_v4  ;;  %v4310_v7 = vld [vmem:[#allocation2 + $0x5c0] ss:$8 sps:$4 sm:$0xff]  }
 0x49f   : > { %v1951_v12 = vadd.f32 %v1950_v11, %v4841_v1  ;;  %v1952_v13 = vpop.f32.mrb[81].mxu0  ;;  %2812 = vmatprep.subr.bf16.mxu1 %v4294_v0 }
 0x4a0   : > { %v1953_v15 = vadd.f32 %v1952_v13, %v4844_v2  ;;  %v1954_v21 = vpop.f32.mrb[82].mxu0  ;;  %2300 = vmatprep.mubr.bf16.mxu1 %v2028_v10 }
 0x4a1   : > { %v1955_v22 = vadd.f32 %v1954_v21, %v4841_v1  ;;  %v1956_v24 = vpop.f32.mrb[83].mxu0  ;;  %2301 = vmatmul.mubr.bf16.gmra.mrb[76].mxu1 %v2027_v9  ;;  %v2005_v25 = vmax.f32 %v1951_v12, 0.0 }
 0x4a2   : > { %v1957_v18 = vadd.f32 %v1956_v24, %v4844_v2  ;;  %2813 = vmatpush1.bf16.msra.mxu1 %v4292_v17  ;;  %v2006_v28 = vmax.f32 %v1953_v15, 0.0 }
 0x4a3   : > { %v2007_v26 = vmax.f32 %v1955_v22, 0.0  ;;  %2814 = vmatprep.subr.bf16.mxu1 %v4297_v14 }
 0x4a4   : > { %v2008_v29 = vmax.f32 %v1957_v18, 0.0 }
 0x4a5   : > { %v2029_v30 = vpack.c.bf16 %v2007_v26, %v2005_v25  ;;  %v4315_v25 = vld [vmem:[#allocation2 + $0x5d4] ss:$8 sps:$4 sm:$0xff]  }
 0x4a6   : > { %v2030_v31 = vpack.c.bf16 %v2008_v29, %v2006_v28  ;;  %v1960_v19 = vpop.f32.mrb[84].mxu0  ;;  %2815 = vmatpush1.bf16.msra.mxu1 %v4295_v23  ;;  %v4316_v29 = vld [vmem:[#allocation2 + $0x5e0] ss:$8 sps:$4 sm:$0xff]  }
 0x4a7   : > { %v1961_v33 = vadd.f32 %v1960_v19, %v4841_v1  ;;  %v1962_v20 = vpop.f32.mrb[85].mxu0  ;;  %2816 = vmatprep.subr.bf16.mxu1 %v4300_v27  ;;  %v4313_v27 = vld [vmem:[#allocation2 + $0x5d0] ss:$8 sps:$4 sm:$0xff]  }
 0x4a8   : > { %v1963_v35 = vadd.f32 %v1962_v20, %v4844_v2  ;;  %v1964_v36 = vpop.f32.mrb[86].mxu0  ;;  %2310 = vmatprep.mubr.bf16.mxu1 %v2030_v31  ;;  %v4321_v31 = vld [vmem:[#allocation2 + $0x5f4] ss:$8 sps:$4 sm:$0xff]  }
 0x4a9   : > { %v1965_v37 = vadd.f32 %v1964_v36, %v4841_v1  ;;  %v1966_v38 = vpop.f32.mrb[87].mxu0  ;;  %2311 = vmatmul.mubr.bf16.gmra.mrb[80].mxu1 %v2029_v30  ;;  %v2009_v45 = vmax.f32 %v1961_v33, 0.0 }
 0x4aa   : > { %v1967_v39 = vadd.f32 %v1966_v38, %v4844_v2  ;;  %2817 = vmatpush1.bf16.msra.mxu1 %v4298_v32  ;;  %v2010_v42 = vmax.f32 %v1963_v35, 0.0  ;;  %v4319_v32 = vld [vmem:[#allocation2 + $0x5f0] ss:$8 sps:$4 sm:$0xff]  }
 0x4ab   : > { %v2011_v47 = vmax.f32 %v1965_v37, 0.0  ;;  %2818 = vmatprep.subr.bf16.mxu1 %v4303_v34 }
 0x4ac   : > { %v2012_v43 = vmax.f32 %v1967_v39, 0.0 }
 0x4ad   : > { %v2031_v48 = vpack.c.bf16 %v2011_v47, %v2009_v45 }
 0x4ae   : > { %v2032_v49 = vpack.c.bf16 %v2012_v43, %v2010_v42  ;;  %v1970_v50 = vpop.f32.mrb[88].mxu0  ;;  %2819 = vmatpush1.bf16.msra.mxu1 %v4301_v40 }
 0x4af   : > { %v1971_v53 = vadd.f32 %v1970_v50, %v4841_v1  ;;  %v1972_v51 = vpop.f32.mrb[89].mxu0  ;;  %2820 = vmatprep.subr.bf16.mxu1 %v4306_v41 }
 0x4b0   : > { %v1973_v55 = vadd.f32 %v1972_v51, %v4844_v2  ;;  %v1974_v56 = vpop.f32.mrb[90].mxu0  ;;  %2320 = vmatprep.mubr.bf16.mxu1 %v2032_v49 }
 0x4b1   : > { %v1975_v57 = vadd.f32 %v1974_v56, %v4841_v1  ;;  %v1976_v58 = vpop.f32.mrb[91].mxu0  ;;  %2321 = vmatmul.mubr.bf16.gmra.mrb[84].mxu1 %v2031_v48  ;;  %v2013_v61 = vmax.f32 %v1971_v53, 0.0 }
 0x4b2   : > { %v1977_v59 = vadd.f32 %v1976_v58, %v4844_v2  ;;  %2821 = vmatpush1.bf16.msra.mxu1 %v4304_v52  ;;  %v2014_v3 = vmax.f32 %v1973_v55, 0.0 }
 0x4b3   : > { %v2015_v62 = vmax.f32 %v1975_v57, 0.0  ;;  %2822 = vmatprep.subr.bf16.mxu1 %v4309_v54 }
 0x4b4   : > { %v2016_v4 = vmax.f32 %v1977_v59, 0.0 }
 0x4b5   : > { %v2033_v5 = vpack.c.bf16 %v2015_v62, %v2013_v61  ;;  %v4324_v61 = vld [vmem:[#allocation2 + $0x604] ss:$8 sps:$4 sm:$0xff]   ;;  %v4327_v62 = vld [vmem:[#allocation2 + $0x614] ss:$8 sps:$4 sm:$0xff]  }
 0x4b6   : > { %v2034_v6 = vpack.c.bf16 %v2016_v4, %v2014_v3  ;;  %v1980_v0 = vpop.f32.mrb[92].mxu0  ;;  %2823 = vmatpush1.bf16.msra.mxu1 %v4307_v60  ;;  %v4322_v60 = vld [vmem:[#allocation2 + $0x600] ss:$8 sps:$4 sm:$0xff]   ;;  %3162 = vmatprep.subr.bf16.mxu0 %v4324_v61  ;;  %v4330_v3 = vld [vmem:[#allocation2 + $0x624] ss:$8 sps:$4 sm:$0xff]  }
 0x4b7   : > { %v1981_v8 = vadd.f32 %v1980_v0, %v4841_v1  ;;  %v1982_v9 = vpop.f32.mrb[93].mxu0  ;;  %2824 = vmatprep.subr.bf16.mxu1 %v4312_v63  ;;  %3163 = vmatpush1.bf16.msra.mxu0 %v4322_v60  ;;  %v4325_v63 = vld [vmem:[#allocation2 + $0x610] ss:$8 sps:$4 sm:$0xff]   ;;  %v4328_v4 = vld [vmem:[#allocation2 + $0x620] ss:$8 sps:$4 sm:$0xff]  }
 0x4b8   : > { %v1983_v10 = vadd.f32 %v1982_v9, %v4844_v2  ;;  %v1984_v11 = vpop.f32.mrb[94].mxu0  ;;  %2330 = vmatprep.mubr.bf16.mxu1 %v2034_v6  ;;  %3164 = vmatprep.subr.bf16.mxu0 %v4327_v62  ;;  %v4331_v6 = vld [vmem:[#allocation2 + $0x630] ss:$8 sps:$4 sm:$0xff]   ;;  %v4336_v0 = vld [vmem:[#allocation2 + $0x644] ss:$8 sps:$4 sm:$0xff]  }
 0x4b9   : > { %v1985_v17 = vadd.f32 %v1984_v11, %v4841_v1  ;;  %v1986_v12 = vpop.f32.mrb[95].mxu0  ;;  %2331 = vmatmul.mubr.bf16.gmra.mrb[88].mxu1 %v2033_v5  ;;  %v2017_v14 = vmax.f32 %v1981_v8, 0.0  ;;  %v4333_v5 = vld [vmem:[#allocation2 + $0x634] ss:$8 sps:$4 sm:$0xff]   ;;  %v4337_v9 = vld [vmem:[#allocation2 + $0x650] ss:$8 sps:$4 sm:$0xff]  }
 0x4ba   : > { %v1987_v13 = vadd.f32 %v1986_v12, %v4844_v2  ;;  %2825 = vmatpush1.bf16.msra.mxu1 %v4310_v7  ;;  %v2018_v21 = vmax.f32 %v1983_v10, 0.0  ;;  %v4318_v2 = vld [vmem:[#allocation2 + $0x5e4] ss:$8 sps:$4 sm:$0xff]   ;;  %v4334_v7 = vld [vmem:[#allocation2 + $0x640] ss:$8 sps:$4 sm:$0xff]  }
 0x4bb   : > { %v2019_v15 = vmax.f32 %v1985_v17, 0.0  ;;  %2826 = vmatprep.subr.bf16.mxu1 %v4315_v25  ;;  %3165 = vmatpush1.bf16.msra.mxu0 %v4325_v63  ;;  %v4339_v8 = vld [vmem:[#allocation2 + $0x654] ss:$8 sps:$4 sm:$0xff]   ;;  %v4342_v10 = vld [vmem:[#allocation2 + $0x664] ss:$8 sps:$4 sm:$0xff]  }
 0x4bc   : > { %v2020_v22 = vmax.f32 %v1987_v13, 0.0  ;;  %3166 = vmatprep.subr.bf16.mxu0 %v4330_v3  ;;  %v4340_v11 = vld [vmem:[#allocation2 + $0x660] ss:$8 sps:$4 sm:$0xff]   ;;  %v4345_v17 = vld [vmem:[#allocation2 + $0x674] ss:$8 sps:$4 sm:$0xff]  }
 0x4bd   : > { %v2035_v24 = vpack.c.bf16 %v2019_v15, %v2017_v14  ;;  %v4343_v12 = vld [vmem:[#allocation2 + $0x670] ss:$8 sps:$4 sm:$0xff]   ;;  %v4348_v13 = vld [vmem:[#allocation2 + $0x684] ss:$8 sps:$4 sm:$0xff]   ;;  %v4346_v14 = vld [vmem:[#allocation2 + $0x680] ss:$8 sps:$4 sm:$0xff]  }
 0x4be   : > { %v2036_v18 = vpack.c.bf16 %v2020_v22, %v2018_v21  ;;  %v4878_v23 = vpop.f32.mrb[96].mxu0  ;;  %2827 = vmatpush1.bf16.msra.mxu1 %v4313_v27  ;;  %v4351_v15 = vld [vmem:[#allocation2 + $0x694] ss:$8 sps:$4 sm:$0xff]   ;;  %v4349_v21 = vld [vmem:[#allocation2 + $0x690] ss:$8 sps:$4 sm:$0xff]  }
 0x4bf   : > { %v4880_v26 = vpop.f32.mrb[97].mxu0  ;;  %2828 = vmatprep.subr.bf16.mxu1 %v4318_v2  ;;  %3167 = vmatpush1.bf16.msra.mxu0 %v4328_v4  ;;  %v4354_v22 = vld [vmem:[#allocation2 + $0x6a4] ss:$8 sps:$4 sm:$0xff]   ;;  %v4355_v25 = vld [vmem:[#allocation2 + $0x6b0] ss:$8 sps:$4 sm:$0xff]  }
 0x4c0   : > { %2340 = vmatprep.mubr.bf16.mxu1 %v2036_v18  ;;  %3168 = vmatprep.subr.bf16.mxu0 %v4333_v5  ;;  %v4357_v18 = vld [vmem:[#allocation2 + $0x6b4] ss:$8 sps:$4 sm:$0xff]   ;;  %v4360_v27 = vld [vmem:[#allocation2 + $0x6c4] ss:$8 sps:$4 sm:$0xff]   ;;  %v4358_v2 = vld [vmem:[#allocation2 + $0x6c0] ss:$8 sps:$4 sm:$0xff]  }
 0x4c1   : > { %2341 = vmatmul.mubr.bf16.gmra.mrb[92].mxu1 %v2035_v24  ;;  %v4352_v24 = vld [vmem:[#allocation2 + $0x6a0] ss:$8 sps:$4 sm:$0xff]  }
 0x4c2   : > { %v4882_v1 = vpop.f32.mrb[98].mxu0  ;;  %2829 = vmatpush1.bf16.msra.mxu1 %v4316_v29  ;;  %v4363_v29 = vld [vmem:[#allocation2 + $0x6d4] ss:$8 sps:$4 sm:$0xff]  }
 0x4c3   : > { %v4884_v28 = vpop.f32.mrb[99].mxu0  ;;  %2830 = vmatprep.subr.bf16.mxu1 %v4321_v31  ;;  %3169 = vmatpush1.bf16.msra.mxu0 %v4331_v6  ;;  %v4361_v31 = vld [vmem:[#allocation2 + $0x6d0] ss:$8 sps:$4 sm:$0xff]  }
 0x4c4   : > { %3170 = vmatprep.subr.bf16.mxu0 %v4336_v0 }
 0x4c6   : > { %v4886_v30 = vpop.f32.mrb[100].mxu0  ;;  %2831 = vmatpush1.bf16.msra.mxu1 %v4319_v32  ;;  %v2072_v32 = vsub.s32 5, %v4603_v16 }
 0x4c7   : > { %v4888_v19 = vpop.f32.mrb[101].mxu0  ;;  %3171 = vmatpush1.bf16.msra.mxu0 %v4334_v7 }
 0x4c8   : > { %3172 = vmatprep.subr.bf16.mxu0 %v4339_v8  ;;  %v4944_v60 = vrot.slane %v4744_v44, %v2072_v32  ;;  %v4947_v61 = vrot.slane %v4752_v46, %v2072_v32 }
 0x4ca   : > { %v4890_v33 = vpop.f32.mrb[102].mxu0 }
 0x4cb   : > { %v4892_v20 = vpop.f32.mrb[103].mxu0  ;;  %3173 = vmatpush1.bf16.msra.mxu0 %v4337_v9 }
 0x4cc   : > { %3174 = vmatprep.subr.bf16.mxu0 %v4342_v10 }
 0x4ce   : > { %v4894_v34 = vpop.f32.mrb[104].mxu0 }
 0x4cf   : > { %v4896_v35 = vpop.f32.mrb[105].mxu0  ;;  %3175 = vmatpush1.bf16.msra.mxu0 %v4340_v11 }
 0x4d0   : > { %3176 = vmatprep.subr.bf16.mxu0 %v4345_v17 }
 0x4d2   : > { %v4898_v36 = vpop.f32.mrb[106].mxu0 }
 0x4d3   : > { %v4900_v37 = vpop.f32.mrb[107].mxu0  ;;  %3177 = vmatpush1.bf16.msra.mxu0 %v4343_v12 }
 0x4d4   : > { %3178 = vmatprep.subr.bf16.mxu0 %v4348_v13 }
 0x4d6   : > { %v4902_v38 = vpop.f32.mrb[108].mxu0 }
 0x4d7   : > { %v4904_v39 = vpop.f32.mrb[109].mxu0  ;;  %3179 = vmatpush1.bf16.msra.mxu0 %v4346_v14 }
 0x4d8   : > { %3180 = vmatprep.subr.bf16.mxu0 %v4351_v15 }
 0x4da   : > { %v4906_v40 = vpop.f32.mrb[110].mxu0 }
 0x4db   : > { %v4908_v45 = vpop.f32.mrb[111].mxu0  ;;  %3181 = vmatpush1.bf16.msra.mxu0 %v4349_v21 }
 0x4dc   : > { %3182 = vmatprep.subr.bf16.mxu0 %v4354_v22 }
 0x4de   : > { %v4910_v47 = vpop.f32.mrb[112].mxu0 }
 0x4df   : > { %v4912_v41 = vpop.f32.mrb[113].mxu0  ;;  %3183 = vmatpush1.bf16.msra.mxu0 %v4352_v24 }
 0x4e0   : > { %3184 = vmatprep.subr.bf16.mxu0 %v4357_v18 }
 0x4e2   : > { %v4914_v42 = vpop.f32.mrb[114].mxu0 }
 0x4e3   : > { %v4916_v43 = vpop.f32.mrb[115].mxu0  ;;  %3185 = vmatpush1.bf16.msra.mxu0 %v4355_v25 }
 0x4e4   : > { %3186 = vmatprep.subr.bf16.mxu0 %v4360_v27 }
 0x4e6   : > { %v4918_v48 = vpop.f32.mrb[116].mxu0 }
 0x4e7   : > { %v4920_v49 = vpop.f32.mrb[117].mxu0  ;;  %3187 = vmatpush1.bf16.msra.mxu0 %v4358_v2 }
 0x4e8   : > { %3188 = vmatprep.subr.bf16.mxu0 %v4363_v29 }
 0x4ea   : > { %v4922_v50 = vpop.f32.mrb[118].mxu0 }
 0x4eb   : > { %v4924_v52 = vpop.f32.mrb[119].mxu0  ;;  %3189 = vmatpush1.bf16.msra.mxu0 %v4361_v31 }
 0x4ee   : > { %v4926_v53 = vpop.f32.mrb[120].mxu0 }
 0x4ef   : > { %v4928_v51 = vpop.f32.mrb[121].mxu0 }
 0x4f2   : > { %v4930_v54 = vpop.f32.mrb[122].mxu0 }
 0x4f3   : > { %v4932_v55 = vpop.f32.mrb[123].mxu0 }
 0x4f6   : > { %v4934_v56 = vpop.f32.mrb[124].mxu0 }
 0x4f7   : > { %v4936_v57 = vpop.f32.mrb[125].mxu0 }
 0x4fa   : > { %v4938_v58 = vpop.f32.mrb[126].mxu0 }
 0x4fb   : > { %v4940_v59 = vpop.f32.mrb[127].mxu0 }
 0x55c   : > { %v2272_v62 = vpop.f32.mrb[64].mxu1 }
 0x55d   : > { %v2273_v63 = vadd.f32 %v2272_v62, %v4944_v60  ;;  %v2274_v3 = vpop.f32.mrb[65].mxu1 }
 0x55e   : > { %v2275_v4 = vadd.f32 %v2274_v3, %v4947_v61  ;;  %v2276_v5 = vpop.f32.mrb[66].mxu1 }
 0x55f   : > { %v2519_v6 = vadd.f32 %v4878_v23, %v2273_v63  ;;  %v2277_v0 = vadd.f32 %v2276_v5, %v4944_v60  ;;  %v2278_v7 = vpop.f32.mrb[67].mxu1 }
 0x560   : > { %v2520_v8 = vadd.f32 %v4880_v26, %v2275_v4  ;;  %v2279_v44 = vadd.f32 %v2278_v7, %v4947_v61 }
 0x561   : > { %v2521_v9 = vadd.f32 %v4882_v1, %v2277_v0  ;;  %v2551_v10 = vmax.f32 %v2519_v6, 0.0 }
 0x562   : > { %v2522_v46 = vadd.f32 %v4884_v28, %v2279_v44  ;;  %v2552_v17 = vmax.f32 %v2520_v8, 0.0 }
 0x563   : > { %v2553_v11 = vmax.f32 %v2521_v9, 0.0 }
 0x564   : > { %v2554_v12 = vmax.f32 %v2522_v46, 0.0  ;;  %v2282_v13 = vpop.f32.mrb[68].mxu1 }
 0x565   : > { %v2583_v14 = vpack.c.bf16 %v2553_v11, %v2551_v10  ;;  %v2283_v15 = vadd.f32 %v2282_v13, %v4944_v60  ;;  %v2284_v23 = vpop.f32.mrb[69].mxu1 }
 0x566   : > { %v2584_v21 = vpack.c.bf16 %v2554_v12, %v2552_v17  ;;  %v2285_v22 = vadd.f32 %v2284_v23, %v4947_v61  ;;  %v2286_v24 = vpop.f32.mrb[70].mxu1 }
 0x567   : > { %v2523_v26 = vadd.f32 %v4886_v30, %v2283_v15  ;;  %v2287_v18 = vadd.f32 %v2286_v24, %v4944_v60  ;;  %v2288_v1 = vpop.f32.mrb[71].mxu1 }
 0x568   : > { %v2524_v28 = vadd.f32 %v4888_v19, %v2285_v22  ;;  %v2289_v25 = vadd.f32 %v2288_v1, %v4947_v61  ;;  %2832 = vmatprep.mubr.bf16.mxu1 %v2584_v21 }
 0x569   : > { %v2525_v27 = vadd.f32 %v4890_v33, %v2287_v18  ;;  %2833 = vmatmul.mubr.bf16.vlgmr.msra.gmra.mrb[96].mxu1 %v2583_v14  ;;  %v2555_v29 = vmax.f32 %v2523_v26, 0.0 }
 0x56a   : > { %v2526_v2 = vadd.f32 %v4892_v20, %v2289_v25  ;;  %v2556_v32 = vmax.f32 %v2524_v28, 0.0 }
 0x56b   : > { %v2557_v31 = vmax.f32 %v2525_v27, 0.0 }
 0x56c   : > { %v2558_v62 = vmax.f32 %v2526_v2, 0.0  ;;  %v2292_v63 = vpop.f32.mrb[72].mxu1 }
 0x56d   : > { %v2585_v3 = vpack.c.bf16 %v2557_v31, %v2555_v29  ;;  %v2293_v30 = vadd.f32 %v2292_v63, %v4944_v60  ;;  %v2294_v4 = vpop.f32.mrb[73].mxu1 }
 0x56e   : > { %v2586_v5 = vpack.c.bf16 %v2558_v62, %v2556_v32  ;;  %v2295_v19 = vadd.f32 %v2294_v4, %v4947_v61  ;;  %v2296_v6 = vpop.f32.mrb[74].mxu1 }
 0x56f   : > { %v2527_v0 = vadd.f32 %v4894_v34, %v2293_v30  ;;  %v2297_v33 = vadd.f32 %v2296_v6, %v4944_v60  ;;  %v2298_v7 = vpop.f32.mrb[75].mxu1 }
 0x570   : > { %v2528_v20 = vadd.f32 %v4896_v35, %v2295_v19  ;;  %v2299_v8 = vadd.f32 %v2298_v7, %v4947_v61  ;;  %2842 = vmatprep.mubr.bf16.mxu1 %v2586_v5 }
 0x571   : > { %v2529_v44 = vadd.f32 %v4898_v36, %v2297_v33  ;;  %2843 = vmatmul.mubr.bf16.gmra.mrb[100].mxu1 %v2585_v3  ;;  %v2559_v46 = vmax.f32 %v2527_v0, 0.0 }
 0x572   : > { %v2530_v9 = vadd.f32 %v4900_v37, %v2299_v8  ;;  %v2560_v11 = vmax.f32 %v2528_v20, 0.0 }
 0x573   : > { %v2561_v10 = vmax.f32 %v2529_v44, 0.0 }
 0x574   : > { %v2562_v17 = vmax.f32 %v2530_v9, 0.0  ;;  %v2302_v12 = vpop.f32.mrb[76].mxu1 }
 0x575   : > { %v2587_v13 = vpack.c.bf16 %v2561_v10, %v2559_v46  ;;  %v2303_v34 = vadd.f32 %v2302_v12, %v4944_v60  ;;  %v2304_v14 = vpop.f32.mrb[77].mxu1 }
 0x576   : > { %v2588_v15 = vpack.c.bf16 %v2562_v17, %v2560_v11  ;;  %v2305_v35 = vadd.f32 %v2304_v14, %v4947_v61  ;;  %v2306_v23 = vpop.f32.mrb[78].mxu1 }
 0x577   : > { %v2531_v21 = vadd.f32 %v4902_v38, %v2303_v34  ;;  %v2307_v36 = vadd.f32 %v2306_v23, %v4944_v60  ;;  %v2308_v22 = vpop.f32.mrb[79].mxu1 }
 0x578   : > { %v2532_v37 = vadd.f32 %v4904_v39, %v2305_v35  ;;  %v2309_v24 = vadd.f32 %v2308_v22, %v4947_v61  ;;  %2852 = vmatprep.mubr.bf16.mxu1 %v2588_v15 }
 0x579   : > { %v2533_v26 = vadd.f32 %v4906_v40, %v2307_v36  ;;  %2853 = vmatmul.mubr.bf16.gmra.mrb[104].mxu1 %v2587_v13  ;;  %v2563_v1 = vmax.f32 %v2531_v21, 0.0 }
 0x57a   : > { %v2534_v18 = vadd.f32 %v4908_v45, %v2309_v24  ;;  %v2564_v25 = vmax.f32 %v2532_v37, 0.0 }
 0x57b   : > { %v2565_v28 = vmax.f32 %v2533_v26, 0.0 }
 0x57c   : > { %v2566_v27 = vmax.f32 %v2534_v18, 0.0  ;;  %v2312_v2 = vpop.f32.mrb[80].mxu1 }
 0x57d   : > { %v2589_v29 = vpack.c.bf16 %v2565_v28, %v2563_v1  ;;  %v2313_v38 = vadd.f32 %v2312_v2, %v4944_v60  ;;  %v2314_v31 = vpop.f32.mrb[81].mxu1 }
 0x57e   : > { %v2590_v32 = vpack.c.bf16 %v2566_v27, %v2564_v25  ;;  %v2315_v39 = vadd.f32 %v2314_v31, %v4947_v61  ;;  %v2316_v62 = vpop.f32.mrb[82].mxu1 }
 0x57f   : > { %v2535_v63 = vadd.f32 %v4910_v47, %v2313_v38  ;;  %v2317_v40 = vadd.f32 %v2316_v62, %v4944_v60  ;;  %v2318_v3 = vpop.f32.mrb[83].mxu1 }
 0x580   : > { %v2536_v45 = vadd.f32 %v4912_v41, %v2315_v39  ;;  %v2319_v30 = vadd.f32 %v2318_v3, %v4947_v61  ;;  %2862 = vmatprep.mubr.bf16.mxu1 %v2590_v32 }
 0x581   : > { %v2537_v4 = vadd.f32 %v4914_v42, %v2317_v40  ;;  %2863 = vmatmul.mubr.bf16.gmra.mrb[108].mxu1 %v2589_v29  ;;  %v2567_v19 = vmax.f32 %v2535_v63, 0.0 }
 0x582   : > { %v2538_v5 = vadd.f32 %v4916_v43, %v2319_v30  ;;  %v2568_v0 = vmax.f32 %v2536_v45, 0.0 }
 0x583   : > { %v2569_v6 = vmax.f32 %v2537_v4, 0.0 }
 0x584   : > { %v2570_v33 = vmax.f32 %v2538_v5, 0.0  ;;  %v2322_v7 = vpop.f32.mrb[84].mxu1 }
 0x585   : > { %v2591_v20 = vpack.c.bf16 %v2569_v6, %v2567_v19  ;;  %v2323_v47 = vadd.f32 %v2322_v7, %v4944_v60  ;;  %v2324_v8 = vpop.f32.mrb[85].mxu1  ;;  %v4373_v7 = vld [vmem:[%s5233_s5 + $0x8] sm:$0xff]  }
 0x586   : > { %v2592_v44 = vpack.c.bf16 %v2570_v33, %v2568_v0  ;;  %v2325_v41 = vadd.f32 %v2324_v8, %v4947_v61  ;;  %v2326_v9 = vpop.f32.mrb[86].mxu1  ;;  %v4372_v33 = vld [vmem:[%s5233_s5 + $0x48] sm:$0xff]   ;;  %v4376_v8 = vld [vmem:[%s5233_s5 + $0x58] sm:$0xff]  }
 0x587   : > { %v2539_v46 = vadd.f32 %v4918_v48, %v2323_v47  ;;  %v2327_v42 = vadd.f32 %v2326_v9, %v4944_v60  ;;  %v2328_v10 = vpop.f32.mrb[87].mxu1  ;;  %v4375_v47 = vld [vmem:[%s5233_s5 + $0x10] sm:$0xff]   ;;  %v5049_v9 = vld [vmem:[%s5233_s5 + $0x20] sm:$0xff]  }
 0x588   : > { %v2540_v43 = vadd.f32 %v4920_v49, %v2325_v41  ;;  %v2329_v11 = vadd.f32 %v2328_v10, %v4947_v61  ;;  %2872 = vmatprep.mubr.bf16.mxu1 %v2592_v44  ;;  %v5037_v44 = vld [vmem:[%s5233_s5 + $0x18] sm:$0xff]   ;;  %v5042_v41 = vld [vmem:[%s5233_s5 + $0x60] sm:$0xff]  }
 0x589   : > { %v2541_v17 = vadd.f32 %v4922_v50, %v2327_v42  ;;  %2873 = vmatmul.mubr.bf16.gmra.mrb[112].mxu1 %v2591_v20  ;;  %v2571_v13 = vmax.f32 %v2539_v46, 0.0  ;;  %v4374_v20 = vld [vmem:[%s5233_s5 + $0x50] sm:$0xff]   ;;  %v5054_v46 = vld [vmem:[%s5233_s5 + $0x68] sm:$0xff]   ;;  %v2634_v42 = vsub.s32 6, %v4603_v16  ;;  %v5062_v10 = vld [vmem:[%s5232_s4] sm:$0xff] }
 0x58a   : > { %v2542_v12 = vadd.f32 %v4924_v52, %v2329_v11  ;;  %v2572_v14 = vmax.f32 %v2540_v43, 0.0  ;;  %v5070_v11 = vld [vmem:[%s5232_s4 + $0x8] sm:$0xff] }
 0x58b   : > { %v2573_v34 = vmax.f32 %v2541_v17, 0.0  ;;  %v5065_v43 = vrot.slane %v5062_v10, %v2634_v42  ;;  %v5073_v17 = vrot.slane %v5070_v11, %v2634_v42 }
 0x58c   : > { %v2574_v15 = vmax.f32 %v2542_v12, 0.0  ;;  %v2332_v35 = vpop.f32.mrb[88].mxu1 }
 0x58d   : > { %v2593_v23 = vpack.c.bf16 %v2573_v34, %v2571_v13  ;;  %v2333_v48 = vadd.f32 %v2332_v35, %v4944_v60  ;;  %v2334_v21 = vpop.f32.mrb[89].mxu1 }
 0x58e   : > { %v2594_v36 = vpack.c.bf16 %v2574_v15, %v2572_v14  ;;  %v2335_v49 = vadd.f32 %v2334_v21, %v4947_v61  ;;  %v2336_v22 = vpop.f32.mrb[90].mxu1 }
 0x58f   : > { %v2543_v37 = vadd.f32 %v4926_v53, %v2333_v48  ;;  %v2337_v50 = vadd.f32 %v2336_v22, %v4944_v60  ;;  %v2338_v24 = vpop.f32.mrb[91].mxu1 }
 0x590   : > { %v2544_v52 = vadd.f32 %v4928_v51, %v2335_v49  ;;  %v2339_v26 = vadd.f32 %v2338_v24, %v4947_v61  ;;  %2882 = vmatprep.mubr.bf16.mxu1 %v2594_v36 }
 0x591   : > { %v2545_v18 = vadd.f32 %v4930_v54, %v2337_v50  ;;  %2883 = vmatmul.mubr.bf16.gmra.mrb[116].mxu1 %v2593_v23  ;;  %v2575_v28 = vmax.f32 %v2543_v37, 0.0 }
 0x592   : > { %v2546_v1 = vadd.f32 %v4932_v55, %v2339_v26  ;;  %v2576_v27 = vmax.f32 %v2544_v52, 0.0 }
 0x593   : > { %v2577_v25 = vmax.f32 %v2545_v18, 0.0 }
 0x594   : > { %v2578_v2 = vmax.f32 %v2546_v1, 0.0  ;;  %v2342_v29 = vpop.f32.mrb[92].mxu1 }
 0x595   : > { %v2595_v38 = vpack.c.bf16 %v2577_v25, %v2575_v28  ;;  %v2343_v53 = vadd.f32 %v2342_v29, %v4944_v60  ;;  %v2344_v31 = vpop.f32.mrb[93].mxu1 }
 0x596   : > { %v2596_v32 = vpack.c.bf16 %v2578_v2, %v2576_v27  ;;  %v2345_v51 = vadd.f32 %v2344_v31, %v4947_v61  ;;  %v2346_v39 = vpop.f32.mrb[94].mxu1 }
 0x597   : > { %v2547_v62 = vadd.f32 %v4934_v56, %v2343_v53  ;;  %v2347_v54 = vadd.f32 %v2346_v39, %v4944_v60  ;;  %v2348_v63 = vpop.f32.mrb[95].mxu1  ;;  %v4366_v56 = vld [vmem:[#allocation2 + $0x6e4] ss:$8 sps:$4 sm:$0xff]   ;;  %v4364_v60 = vld [vmem:[#allocation2 + $0x6e0] ss:$8 sps:$4 sm:$0xff]  }
 0x598   : > { %v2548_v55 = vadd.f32 %v4936_v57, %v2345_v51  ;;  %v2349_v40 = vadd.f32 %v2348_v63, %v4947_v61  ;;  %2892 = vmatprep.mubr.bf16.mxu1 %v2596_v32  ;;  %3190 = vmatprep.subr.bf16.mxu0 %v4366_v56  ;;  %v4369_v57 = vld [vmem:[#allocation2 + $0x6f4] ss:$8 sps:$4 sm:$0xff]   ;;  %v4367_v61 = vld [vmem:[#allocation2 + $0x6f0] ss:$8 sps:$4 sm:$0xff]  }
 0x599   : > { %v2549_v3 = vadd.f32 %v4938_v58, %v2347_v54  ;;  %2893 = vmatmul.mubr.bf16.gmra.mrb[120].mxu1 %v2595_v38  ;;  %v2579_v30 = vmax.f32 %v2547_v62, 0.0  ;;  %3191 = vmatpush1.bf16.msra.mxu0 %v4364_v60  ;;  %v4370_v58 = vld [vmem:[%s5233_s5 + $0x40] sm:$0xff]  }
 0x59a   : > { %v2550_v45 = vadd.f32 %v4940_v59, %v2349_v40  ;;  %v2580_v5 = vmax.f32 %v2548_v55, 0.0  ;;  %3192 = vmatprep.subr.bf16.mxu0 %v4369_v57  ;;  %v4371_v59 = vld [vmem:[%s5233_s5] sm:$0xff]   ;;  %3994 = vmatprep.subr.bf16.mxu1 %v4370_v58 }
 0x59b   : > { %v2581_v4 = vmax.f32 %v2549_v3, 0.0  ;;  %4002 = vmatpush3.bf16.msra.mxu1 %v4371_v59 }
 0x59c   : > { %v2582_v19 = vmax.f32 %v2550_v45, 0.0  ;;  %3995 = vmatprep.subr.bf16.mxu1 %v4372_v33 }
 0x59d   : > { %v2597_v6 = vpack.c.bf16 %v2581_v4, %v2579_v30  ;;  %3193 = vmatpush1.bf16.msra.mxu0 %v4367_v61 }
 0x59e   : > { %v2598_v0 = vpack.c.bf16 %v2582_v19, %v2580_v5  ;;  %3930 = vmatprep.subr.bf16.mxu0 %v4370_v58 }
 0x59f   : > { %4003 = vmatpush3.bf16.msra.mxu1 %v4373_v7 }
 0x5a0   : > { %2902 = vmatprep.mubr.bf16.mxu1 %v2598_v0  ;;  %3996 = vmatprep.subr.bf16.mxu1 %v4374_v20 }
 0x5a1   : > { %2903 = vmatmul.mubr.bf16.gmra.mrb[124].mxu1 %v2597_v6 }
 0x5a3   : > { %4004 = vmatpush3.bf16.msra.mxu1 %v4375_v47 }
 0x5a4   : > { %3997 = vmatprep.subr.bf16.mxu1 %v4376_v8 }
 0x5a7   : > { %4005 = vmatpush3.bf16.msra.mxu1 %v5037_v44 }
 0x5a8   : > { %3998 = vmatprep.subr.bf16.mxu1 %v5042_v41 }
 0x5ab   : > { %4006 = vmatpush3.bf16.msra.mxu1 %v5049_v9 }
 0x5ac   : > { %3999 = vmatprep.subr.bf16.mxu1 %v5054_v46 }
 0x63c   : > { %v2834_v12 = vpop.f32.mrb[96].mxu1 }
 0x63d   : > { %v2835_v13 = vadd.f32 %v2834_v12, %v5065_v43  ;;  %v2836_v34 = vpop.f32.mrb[97].mxu1 }
 0x63e   : > { %v2837_v14 = vadd.f32 %v2836_v34, %v5073_v17  ;;  %v2838_v15 = vpop.f32.mrb[98].mxu1 }
 0x63f   : > { %v2839_v35 = vadd.f32 %v2838_v15, %v5065_v43  ;;  %v2840_v23 = vpop.f32.mrb[99].mxu1  ;;  %v2913_v21 = vmax.f32 %v2835_v13, 0.0 }
 0x640   : > { %v2841_v48 = vadd.f32 %v2840_v23, %v5073_v17  ;;  %v2914_v49 = vmax.f32 %v2837_v14, 0.0 }
 0x641   : > { %v2915_v36 = vmax.f32 %v2839_v35, 0.0 }
 0x642   : > { %v2916_v22 = vmax.f32 %v2841_v48, 0.0 }
 0x643   : > { %v2945_v37 = vpack.c.bf16 %v2915_v36, %v2913_v21 }
 0x644   : > { %v2946_v50 = vpack.c.bf16 %v2916_v22, %v2914_v49  ;;  %v2844_v24 = vpop.f32.mrb[100].mxu1 }
 0x645   : > { %v2845_v52 = vadd.f32 %v2844_v24, %v5065_v43  ;;  %v2846_v26 = vpop.f32.mrb[101].mxu1 }
 0x646   : > { %v2847_v18 = vadd.f32 %v2846_v26, %v5073_v17  ;;  %v2848_v1 = vpop.f32.mrb[102].mxu1  ;;  %3194 = vmatprep.mubr.bf16.mxu0 %v2946_v50 }
 0x647   : > { %v2849_v28 = vadd.f32 %v2848_v1, %v5065_v43  ;;  %v2850_v25 = vpop.f32.mrb[103].mxu1  ;;  %3195 = vmatmul.mubr.bf16.vlgmr.msra.gmra.mrb[128].mxu0 %v2945_v37  ;;  %v2917_v2 = vmax.f32 %v2845_v52, 0.0 }
 0x648   : > { %v2851_v27 = vadd.f32 %v2850_v25, %v5073_v17  ;;  %3931 = vmatpush3.bf16.msra.mxu0 %v4371_v59  ;;  %v2918_v38 = vmax.f32 %v2847_v18, 0.0 }
 0x649   : > { %v2919_v29 = vmax.f32 %v2849_v28, 0.0  ;;  %3932 = vmatprep.subr.bf16.mxu0 %v4372_v33 }
 0x64a   : > { %v2920_v53 = vmax.f32 %v2851_v27, 0.0 }
 0x64b   : > { %v2947_v31 = vpack.c.bf16 %v2919_v29, %v2917_v2 }
 0x64c   : > { %v2948_v32 = vpack.c.bf16 %v2920_v53, %v2918_v38  ;;  %v2854_v51 = vpop.f32.mrb[104].mxu1  ;;  %3933 = vmatpush3.bf16.msra.mxu0 %v4373_v7 }
 0x64d   : > { %v2855_v39 = vadd.f32 %v2854_v51, %v5065_v43  ;;  %v2856_v62 = vpop.f32.mrb[105].mxu1  ;;  %3934 = vmatprep.subr.bf16.mxu0 %v4374_v20 }
 0x64e   : > { %v2857_v54 = vadd.f32 %v2856_v62, %v5073_v17  ;;  %v2858_v63 = vpop.f32.mrb[106].mxu1  ;;  %3204 = vmatprep.mubr.bf16.mxu0 %v2948_v32 }
 0x64f   : > { %v2859_v55 = vadd.f32 %v2858_v63, %v5065_v43  ;;  %v2860_v40 = vpop.f32.mrb[107].mxu1  ;;  %3205 = vmatmul.mubr.bf16.gmra.mrb[132].mxu0 %v2947_v31  ;;  %v2921_v45 = vmax.f32 %v2855_v39, 0.0 }
 0x650   : > { %v2861_v3 = vadd.f32 %v2860_v40, %v5073_v17  ;;  %3935 = vmatpush3.bf16.msra.mxu0 %v4375_v47  ;;  %v2922_v4 = vmax.f32 %v2857_v54, 0.0 }
 0x651   : > { %v2923_v30 = vmax.f32 %v2859_v55, 0.0  ;;  %3936 = vmatprep.subr.bf16.mxu0 %v4376_v8 }
 0x652   : > { %v2924_v5 = vmax.f32 %v2861_v3, 0.0 }
 0x653   : > { %v2949_v19 = vpack.c.bf16 %v2923_v30, %v2921_v45 }
 0x654   : > { %v2950_v6 = vpack.c.bf16 %v2924_v5, %v2922_v4  ;;  %v2864_v0 = vpop.f32.mrb[108].mxu1  ;;  %3937 = vmatpush3.bf16.msra.mxu0 %v5037_v44 }
 0x655   : > { %v2865_v56 = vadd.f32 %v2864_v0, %v5065_v43  ;;  %v2866_v60 = vpop.f32.mrb[109].mxu1  ;;  %3938 = vmatprep.subr.bf16.mxu0 %v5042_v41 }
 0x656   : > { %v2867_v57 = vadd.f32 %v2866_v60, %v5073_v17  ;;  %v2868_v61 = vpop.f32.mrb[110].mxu1  ;;  %3214 = vmatprep.mubr.bf16.mxu0 %v2950_v6 }
 0x657   : > { %v2869_v58 = vadd.f32 %v2868_v61, %v5065_v43  ;;  %v2870_v59 = vpop.f32.mrb[111].mxu1  ;;  %3215 = vmatmul.mubr.bf16.gmra.mrb[136].mxu0 %v2949_v19  ;;  %v2925_v7 = vmax.f32 %v2865_v56, 0.0 }
 0x658   : > { %v2871_v33 = vadd.f32 %v2870_v59, %v5073_v17  ;;  %3939 = vmatpush3.bf16.msra.mxu0 %v5049_v9  ;;  %v2926_v47 = vmax.f32 %v2867_v57, 0.0 }
 0x659   : > { %v2927_v20 = vmax.f32 %v2869_v58, 0.0  ;;  %3940 = vmatprep.subr.bf16.mxu0 %v5054_v46 }
 0x65a   : > { %v2928_v8 = vmax.f32 %v2871_v33, 0.0 }
 0x65b   : > { %v2951_v44 = vpack.c.bf16 %v2927_v20, %v2925_v7 }
 0x65c   : > { %v2952_v41 = vpack.c.bf16 %v2928_v8, %v2926_v47  ;;  %v2874_v42 = vpop.f32.mrb[112].mxu1  ;;  %v4381_v8 = vld [vmem:[%s5233_s5 + $0x28] sm:$0xff]  }
 0x65d   : > { %v2875_v12 = vadd.f32 %v2874_v42, %v5065_v43  ;;  %v2876_v13 = vpop.f32.mrb[113].mxu1  ;;  %3941 = vmatpush3.bf16.msra.mxu0 %v4381_v8  ;;  %4007 = vmatpush3.bf16.msra.mxu1 %v4381_v8  ;;  %v2996_v42 = vsub.s32 7, %v4603_v16 }
 0x65e   : > { %v2877_v34 = vadd.f32 %v2876_v13, %v5073_v17  ;;  %v2878_v14 = vpop.f32.mrb[114].mxu1  ;;  %3224 = vmatprep.mubr.bf16.mxu0 %v2952_v41  ;;  %v4385_v41 = vld [vmem:[%s5233_s5 + $0x38] sm:$0xff]  }
 0x65f   : > { %v2879_v15 = vadd.f32 %v2878_v14, %v5065_v43  ;;  %v2880_v35 = vpop.f32.mrb[115].mxu1  ;;  %3225 = vmatmul.mubr.bf16.gmra.mrb[140].mxu0 %v2951_v44  ;;  %v2929_v23 = vmax.f32 %v2875_v12, 0.0  ;;  %v4384_v44 = vld [vmem:[%s5233_s5 + $0x78] sm:$0xff]   ;;  %v5128_v12 = vrot.slane %v5062_v10, %v2996_v42  ;;  %v5131_v13 = vrot.slane %v5070_v11, %v2996_v42 }
 0x660   : > { %v2881_v9 = vadd.f32 %v2880_v35, %v5073_v17  ;;  %v2930_v48 = vmax.f32 %v2877_v34, 0.0 }
 0x661   : > { %v2931_v46 = vmax.f32 %v2879_v15, 0.0 }
 0x662   : > { %v2932_v21 = vmax.f32 %v2881_v9, 0.0 }
 0x663   : > { %v2953_v36 = vpack.c.bf16 %v2931_v46, %v2929_v23 }
 0x664   : > { %v2954_v49 = vpack.c.bf16 %v2932_v21, %v2930_v48  ;;  %v2884_v22 = vpop.f32.mrb[116].mxu1 }
 0x665   : > { %v2885_v37 = vadd.f32 %v2884_v22, %v5065_v43  ;;  %v2886_v50 = vpop.f32.mrb[117].mxu1 }
 0x666   : > { %v2887_v24 = vadd.f32 %v2886_v50, %v5073_v17  ;;  %v2888_v52 = vpop.f32.mrb[118].mxu1  ;;  %3234 = vmatprep.mubr.bf16.mxu0 %v2954_v49 }
 0x667   : > { %v2889_v26 = vadd.f32 %v2888_v52, %v5065_v43  ;;  %v2890_v18 = vpop.f32.mrb[119].mxu1  ;;  %3235 = vmatmul.mubr.bf16.gmra.mrb[144].mxu0 %v2953_v36  ;;  %v2933_v28 = vmax.f32 %v2885_v37, 0.0 }
 0x668   : > { %v2891_v1 = vadd.f32 %v2890_v18, %v5073_v17  ;;  %v2934_v27 = vmax.f32 %v2887_v24, 0.0 }
 0x669   : > { %v2935_v25 = vmax.f32 %v2889_v26, 0.0 }
 0x66a   : > { %v2936_v2 = vmax.f32 %v2891_v1, 0.0 }
 0x66b   : > { %v2955_v29 = vpack.c.bf16 %v2935_v25, %v2933_v28 }
 0x66c   : > { %v2956_v38 = vpack.c.bf16 %v2936_v2, %v2934_v27  ;;  %v2894_v53 = vpop.f32.mrb[120].mxu1 }
 0x66d   : > { %v2895_v31 = vadd.f32 %v2894_v53, %v5065_v43  ;;  %v2896_v32 = vpop.f32.mrb[121].mxu1 }
 0x66e   : > { %v2897_v51 = vadd.f32 %v2896_v32, %v5073_v17  ;;  %v2898_v39 = vpop.f32.mrb[122].mxu1  ;;  %3244 = vmatprep.mubr.bf16.mxu0 %v2956_v38 }
 0x66f   : > { %v2899_v62 = vadd.f32 %v2898_v39, %v5065_v43  ;;  %v2900_v54 = vpop.f32.mrb[123].mxu1  ;;  %3245 = vmatmul.mubr.bf16.gmra.mrb[148].mxu0 %v2955_v29  ;;  %v2937_v55 = vmax.f32 %v2895_v31, 0.0 }
 0x670   : > { %v2901_v63 = vadd.f32 %v2900_v54, %v5073_v17  ;;  %v2938_v3 = vmax.f32 %v2897_v51, 0.0 }
 0x671   : > { %v2939_v40 = vmax.f32 %v2899_v62, 0.0 }
 0x672   : > { %v2940_v45 = vmax.f32 %v2901_v63, 0.0 }
 0x673   : > { %v2957_v30 = vpack.c.bf16 %v2939_v40, %v2937_v55 }
 0x674   : > { %v2958_v4 = vpack.c.bf16 %v2940_v45, %v2938_v3  ;;  %v2904_v5 = vpop.f32.mrb[124].mxu1 }
 0x675   : > { %v2905_v19 = vadd.f32 %v2904_v5, %v5065_v43  ;;  %v2906_v6 = vpop.f32.mrb[125].mxu1 }
 0x676   : > { %v2907_v0 = vadd.f32 %v2906_v6, %v5073_v17  ;;  %v2908_v56 = vpop.f32.mrb[126].mxu1  ;;  %3254 = vmatprep.mubr.bf16.mxu0 %v2958_v4 }
 0x677   : > { %v2909_v60 = vadd.f32 %v2908_v56, %v5065_v43  ;;  %v2910_v57 = vpop.f32.mrb[127].mxu1  ;;  %3255 = vmatmul.mubr.bf16.gmra.mrb[152].mxu0 %v2957_v30  ;;  %v2941_v58 = vmax.f32 %v2905_v19, 0.0  ;;  %v4382_v43 = vld [vmem:[%s5233_s5 + $0x70] sm:$0xff]  }
 0x678   : > { %v2911_v61 = vadd.f32 %v2910_v57, %v5073_v17  ;;  %v2942_v33 = vmax.f32 %v2907_v0, 0.0  ;;  %v4383_v17 = vld [vmem:[%s5233_s5 + $0x30] sm:$0xff]   ;;  %3942 = vmatprep.subr.bf16.mxu0 %v4382_v43  ;;  %4000 = vmatprep.subr.bf16.mxu1 %v4382_v43 }
 0x679   : > { %v2943_v59 = vmax.f32 %v2909_v60, 0.0  ;;  %3943 = vmatpush3.bf16.msra.mxu0 %v4383_v17  ;;  %4008 = vmatpush3.bf16.msra.mxu1 %v4383_v17 }
 0x67a   : > { %v2944_v7 = vmax.f32 %v2911_v61, 0.0  ;;  %3944 = vmatprep.subr.bf16.mxu0 %v4384_v44  ;;  %4001 = vmatprep.subr.bf16.mxu1 %v4384_v44 }
 0x67b   : > { %v2959_v20 = vpack.c.bf16 %v2943_v59, %v2941_v58 }
 0x67c   : > { %v2960_v47 = vpack.c.bf16 %v2944_v7, %v2942_v33 }
 0x67d   : > { %3945 = vmatpush3.bf16.msra.mxu0 %v4385_v41  ;;  %4009 = vmatpush3.bf16.msra.mxu1 %v4385_v41 }
 0x67e   : > { %3264 = vmatprep.mubr.bf16.mxu0 %v2960_v47 }
 0x67f   : > { %3265 = vmatmul.mubr.bf16.gmra.mrb[156].mxu0 %v2959_v20 }
 0x71a   : > { %v3196_v34 = vpop.f32.mrb[128].mxu0 }
 0x71b   : > { %v3197_v14 = vadd.f32 %v3196_v34, %v5128_v12  ;;  %v3198_v15 = vpop.f32.mrb[129].mxu0 }
 0x71c   : > { %v3199_v35 = vadd.f32 %v3198_v15, %v5131_v13  ;;  %v3200_v9 = vpop.f32.mrb[130].mxu0 }
 0x71d   : > { %v3201_v23 = vadd.f32 %v3200_v9, %v5128_v12  ;;  %v3202_v46 = vpop.f32.mrb[131].mxu0  ;;  %v3275_v21 = vmax.f32 %v3197_v14, 0.0 }
 0x71e   : > { %v3203_v48 = vadd.f32 %v3202_v46, %v5131_v13  ;;  %v3276_v36 = vmax.f32 %v3199_v35, 0.0 }
 0x71f   : > { %v3277_v16 = vmax.f32 %v3201_v23, 0.0 }
 0x720   : > { %v3278_v10 = vmax.f32 %v3203_v48, 0.0 }
 0x721   : > { %v3307_v49 = vpack.c.bf16 %v3277_v16, %v3275_v21 }
 0x722   : > { %v3308_v22 = vpack.c.bf16 %v3278_v10, %v3276_v36  ;;  %v3206_v11 = vpop.f32.mrb[132].mxu0 }
 0x723   : > { %v3207_v37 = vadd.f32 %v3206_v11, %v5128_v12  ;;  %v3208_v50 = vpop.f32.mrb[133].mxu0 }
 0x724   : > { %v3209_v24 = vadd.f32 %v3208_v50, %v5131_v13  ;;  %v3210_v52 = vpop.f32.mrb[134].mxu0  ;;  %3490 = vmatprep.mubr.bf16.mxu0 %v3308_v22 }
 0x725   : > { %v3211_v26 = vadd.f32 %v3210_v52, %v5128_v12  ;;  %v3212_v18 = vpop.f32.mrb[135].mxu0  ;;  %3491 = vmatmul.mubr.bf16.vlgmr.msra.gmra.mrb[160].mxu0 %v3307_v49  ;;  %v3279_v28 = vmax.f32 %v3207_v37, 0.0 }
 0x726   : > { %v3213_v1 = vadd.f32 %v3212_v18, %v5131_v13  ;;  %v3280_v27 = vmax.f32 %v3209_v24, 0.0 }
 0x727   : > { %v3281_v25 = vmax.f32 %v3211_v26, 0.0 }
 0x728   : > { %v3282_v2 = vmax.f32 %v3213_v1, 0.0 }
 0x729   : > { %v3309_v29 = vpack.c.bf16 %v3281_v25, %v3279_v28 }
 0x72a   : > { %v3310_v38 = vpack.c.bf16 %v3282_v2, %v3280_v27  ;;  %v3216_v53 = vpop.f32.mrb[136].mxu0 }
 0x72b   : > { %v3217_v31 = vadd.f32 %v3216_v53, %v5128_v12  ;;  %v3218_v32 = vpop.f32.mrb[137].mxu0 }
 0x72c   : > { %v3219_v51 = vadd.f32 %v3218_v32, %v5131_v13  ;;  %v3220_v39 = vpop.f32.mrb[138].mxu0  ;;  %3498 = vmatprep.mubr.bf16.mxu0 %v3310_v38 }
 0x72d   : > { %v3221_v62 = vadd.f32 %v3220_v39, %v5128_v12  ;;  %v3222_v54 = vpop.f32.mrb[139].mxu0  ;;  %3499 = vmatmul.mubr.bf16.gmra.mrb[164].mxu0 %v3309_v29  ;;  %v3283_v55 = vmax.f32 %v3217_v31, 0.0 }
 0x72e   : > { %v3223_v63 = vadd.f32 %v3222_v54, %v5131_v13  ;;  %v3284_v3 = vmax.f32 %v3219_v51, 0.0 }
 0x72f   : > { %v3285_v40 = vmax.f32 %v3221_v62, 0.0 }
 0x730   : > { %v3286_v45 = vmax.f32 %v3223_v63, 0.0 }
 0x731   : > { %v3311_v30 = vpack.c.bf16 %v3285_v40, %v3283_v55 }
 0x732   : > { %v3312_v4 = vpack.c.bf16 %v3286_v45, %v3284_v3  ;;  %v3226_v5 = vpop.f32.mrb[140].mxu0 }
 0x733   : > { %v3227_v19 = vadd.f32 %v3226_v5, %v5128_v12  ;;  %v3228_v6 = vpop.f32.mrb[141].mxu0 }
 0x734   : > { %v3229_v0 = vadd.f32 %v3228_v6, %v5131_v13  ;;  %v3230_v56 = vpop.f32.mrb[142].mxu0  ;;  %3506 = vmatprep.mubr.bf16.mxu0 %v3312_v4 }
 0x735   : > { %v3231_v60 = vadd.f32 %v3230_v56, %v5128_v12  ;;  %v3232_v57 = vpop.f32.mrb[143].mxu0  ;;  %3507 = vmatmul.mubr.bf16.gmra.mrb[168].mxu0 %v3311_v30  ;;  %v3287_v58 = vmax.f32 %v3227_v19, 0.0 }
 0x736   : > { %v3233_v61 = vadd.f32 %v3232_v57, %v5131_v13  ;;  %v3288_v33 = vmax.f32 %v3229_v0, 0.0 }
 0x737   : > { %v3289_v59 = vmax.f32 %v3231_v60, 0.0 }
 0x738   : > { %v3290_v7 = vmax.f32 %v3233_v61, 0.0 }
 0x739   : > { %v3313_v20 = vpack.c.bf16 %v3289_v59, %v3287_v58  ;;  %v5168_v59 = vld [vmem:[%s5234_s6] ss:$0 sm:$0xff] }
 0x73a   : > { %v3314_v47 = vpack.c.bf16 %v3290_v7, %v3288_v33  ;;  %v3236_v8 = vpop.f32.mrb[144].mxu0 }
 0x73b   : > { %v3237_v43 = vadd.f32 %v3236_v8, %v5128_v12  ;;  %v3238_v17 = vpop.f32.mrb[145].mxu0 }
 0x73c   : > { %v3239_v44 = vadd.f32 %v3238_v17, %v5131_v13  ;;  %v3240_v41 = vpop.f32.mrb[146].mxu0  ;;  %3514 = vmatprep.mubr.bf16.mxu1 %v3314_v47 }
 0x73d   : > { %v3241_v42 = vadd.f32 %v3240_v41, %v5128_v12  ;;  %v3242_v34 = vpop.f32.mrb[147].mxu0  ;;  %3515 = vmatmul.mubr.bf16.vlgmr.msra.gmra.mrb[128].mxu1 %v3313_v20  ;;  %v3291_v15 = vmax.f32 %v3237_v43, 0.0 }
 0x73e   : > { %v3243_v14 = vadd.f32 %v3242_v34, %v5131_v13  ;;  %v3292_v9 = vmax.f32 %v3239_v44, 0.0 }
 0x73f   : > { %v3293_v35 = vmax.f32 %v3241_v42, 0.0 }
 0x740   : > { %v3294_v23 = vmax.f32 %v3243_v14, 0.0 }
 0x741   : > { %v3315_v46 = vpack.c.bf16 %v3293_v35, %v3291_v15 }
 0x742   : > { %v3316_v48 = vpack.c.bf16 %v3294_v23, %v3292_v9  ;;  %v3246_v21 = vpop.f32.mrb[148].mxu0 }
 0x743   : > { %v3247_v16 = vadd.f32 %v3246_v21, %v5128_v12  ;;  %v3248_v36 = vpop.f32.mrb[149].mxu0 }
 0x744   : > { %v3249_v10 = vadd.f32 %v3248_v36, %v5131_v13  ;;  %v3250_v49 = vpop.f32.mrb[150].mxu0  ;;  %3522 = vmatprep.mubr.bf16.mxu1 %v3316_v48 }
 0x745   : > { %v3251_v22 = vadd.f32 %v3250_v49, %v5128_v12  ;;  %v3252_v11 = vpop.f32.mrb[151].mxu0  ;;  %3523 = vmatmul.mubr.bf16.gmra.mrb[132].mxu1 %v3315_v46  ;;  %v3295_v50 = vmax.f32 %v3247_v16, 0.0 }
 0x746   : > { %v3253_v37 = vadd.f32 %v3252_v11, %v5131_v13  ;;  %v3296_v52 = vmax.f32 %v3249_v10, 0.0 }
 0x747   : > { %v3297_v24 = vmax.f32 %v3251_v22, 0.0 }
 0x748   : > { %v3298_v26 = vmax.f32 %v3253_v37, 0.0 }
 0x749   : > { %v3317_v18 = vpack.c.bf16 %v3297_v24, %v3295_v50 }
 0x74a   : > { %v3318_v1 = vpack.c.bf16 %v3298_v26, %v3296_v52  ;;  %v3256_v28 = vpop.f32.mrb[152].mxu0 }
 0x74b   : > { %v3257_v25 = vadd.f32 %v3256_v28, %v5128_v12  ;;  %v3258_v27 = vpop.f32.mrb[153].mxu0 }
 0x74c   : > { %v3259_v2 = vadd.f32 %v3258_v27, %v5131_v13  ;;  %v3260_v29 = vpop.f32.mrb[154].mxu0  ;;  %3530 = vmatprep.mubr.bf16.mxu1 %v3318_v1 }
 0x74d   : > { %v3261_v38 = vadd.f32 %v3260_v29, %v5128_v12  ;;  %v3262_v53 = vpop.f32.mrb[155].mxu0  ;;  %3531 = vmatmul.mubr.bf16.gmra.mrb[136].mxu1 %v3317_v18  ;;  %v3299_v32 = vmax.f32 %v3257_v25, 0.0 }
 0x74e   : > { %v3263_v31 = vadd.f32 %v3262_v53, %v5131_v13  ;;  %v3300_v39 = vmax.f32 %v3259_v2, 0.0 }
 0x74f   : > { %v3301_v51 = vmax.f32 %v3261_v38, 0.0 }
 0x750   : > { %v3302_v62 = vmax.f32 %v3263_v31, 0.0 }
 0x751   : > { %v3319_v54 = vpack.c.bf16 %v3301_v51, %v3299_v32 }
 0x752   : > { %v3320_v63 = vpack.c.bf16 %v3302_v62, %v3300_v39  ;;  %v3266_v55 = vpop.f32.mrb[156].mxu0 }
 0x753   : > { %v3267_v40 = vadd.f32 %v3266_v55, %v5128_v12  ;;  %v3268_v3 = vpop.f32.mrb[157].mxu0 }
 0x754   : > { %v3269_v45 = vadd.f32 %v3268_v3, %v5131_v13  ;;  %v3270_v30 = vpop.f32.mrb[158].mxu0  ;;  %3538 = vmatprep.mubr.bf16.mxu1 %v3320_v63 }
 0x755   : > { %v3271_v4 = vadd.f32 %v3270_v30, %v5128_v12  ;;  %v3272_v5 = vpop.f32.mrb[159].mxu0  ;;  %3539 = vmatmul.mubr.bf16.gmra.mrb[140].mxu1 %v3319_v54  ;;  %v3303_v6 = vmax.f32 %v3267_v40, 0.0 }
 0x756   : > { %v3273_v19 = vadd.f32 %v3272_v5, %v5131_v13  ;;  %v3304_v56 = vmax.f32 %v3269_v45, 0.0 }
 0x757   : > { %v3305_v0 = vmax.f32 %v3271_v4, 0.0 }
 0x758   : > { %v3306_v60 = vmax.f32 %v3273_v19, 0.0 }
 0x759   : > { %v3321_v57 = vpack.c.bf16 %v3305_v0, %v3303_v6 }
 0x75a   : > { %v3322_v61 = vpack.c.bf16 %v3306_v60, %v3304_v56 }
 0x75c   : > { %3546 = vmatprep.mubr.bf16.mxu1 %v3322_v61 }
 0x75d   : > { %3547 = vmatmul.mubr.bf16.gmra.mrb[144].mxu1 %v3321_v57 }
 0x7f8   : > { %v3946_v58 = vpop.f32.mrb[160].mxu0 }
 0x7f9   : > { %v3947_v12 = vpop.f32.mrb[161].mxu0 }
 0x7fa   : > { %v3948_v33 = vadd.f32 %v3947_v12, %v3946_v58  ;;  %v3949_v7 = vpop.f32.mrb[162].mxu0 }
 0x7fb   : > { %v3950_v13 = vpop.f32.mrb[163].mxu0 }
 0x7fc   : > { %v3493_v20 = vadd.f32 %v3948_v33, %v5168_v59  ;;  %v3951_v47 = vadd.f32 %v3950_v13, %v3949_v7 }
 0x7fe   : > { %3556 = vst.msk [vmem:[%s5175_s15] sm:$0xff] %vm3555_vm2, %v3493_v20  ;;  %v3496_v8 = vadd.f32 %v3951_v47, %v5168_v59 }
 0x800   : > { %3557 = vst.msk [vmem:[%s5175_s15 + $0x8] sm:$0xff] %vm3555_vm2, %v3496_v8  ;;  %v3952_v43 = vpop.f32.mrb[164].mxu0 }
 0x801   : > { %v3953_v17 = vpop.f32.mrb[165].mxu0 }
 0x802   : > { %v3954_v44 = vadd.f32 %v3953_v17, %v3952_v43  ;;  %v3955_v41 = vpop.f32.mrb[166].mxu0 }
 0x803   : > { %v3956_v42 = vpop.f32.mrb[167].mxu0 }
 0x804   : > { %v3501_v34 = vadd.f32 %v3954_v44, %v5168_v59  ;;  %v3957_v14 = vadd.f32 %v3956_v42, %v3955_v41 }
 0x806   : > { %3558 = vst.msk [vmem:[%s5175_s15 + $0x10] sm:$0xff] %vm3555_vm2, %v3501_v34  ;;  %v3504_v15 = vadd.f32 %v3957_v14, %v5168_v59 }
 0x808   : > { %3559 = vst.msk [vmem:[%s5175_s15 + $0x18] sm:$0xff] %vm3555_vm2, %v3504_v15  ;;  %v3958_v35 = vpop.f32.mrb[168].mxu0 }
 0x809   : > { %v3959_v9 = vpop.f32.mrb[169].mxu0 }
 0x80a   : > { %v3960_v23 = vadd.f32 %v3959_v9, %v3958_v35  ;;  %v3961_v46 = vpop.f32.mrb[170].mxu0 }
 0x80b   : > { %v3962_v48 = vpop.f32.mrb[171].mxu0 }
 0x80c   : > { %v3509_v21 = vadd.f32 %v3960_v23, %v5168_v59  ;;  %v3963_v16 = vadd.f32 %v3962_v48, %v3961_v46 }
 0x80e   : > { %3560 = vst.msk [vmem:[%s5175_s15 + $0x20] sm:$0xff] %vm3555_vm2, %v3509_v21  ;;  %v3512_v36 = vadd.f32 %v3963_v16, %v5168_v59 }
 0x810   : > { %3561 = vst.msk [vmem:[%s5175_s15 + $0x28] sm:$0xff] %vm3555_vm2, %v3512_v36  ;;  %v3964_v10 = vpop.f32.mrb[128].mxu1 }
 0x811   : > { %v3965_v49 = vpop.f32.mrb[129].mxu1 }
 0x812   : > { %v3966_v22 = vadd.f32 %v3965_v49, %v3964_v10  ;;  %v3967_v11 = vpop.f32.mrb[130].mxu1 }
 0x813   : > { %v3968_v37 = vpop.f32.mrb[131].mxu1 }
 0x814   : > { %v3517_v50 = vadd.f32 %v3966_v22, %v5168_v59  ;;  %v3969_v24 = vadd.f32 %v3968_v37, %v3967_v11 }
 0x816   : > { %3562 = vst.msk [vmem:[%s5175_s15 + $0x30] sm:$0xff] %vm3555_vm2, %v3517_v50  ;;  %v3520_v52 = vadd.f32 %v3969_v24, %v5168_v59 }
 0x818   : > { %3563 = vst.msk [vmem:[%s5175_s15 + $0x38] sm:$0xff] %vm3555_vm2, %v3520_v52  ;;  %v3970_v26 = vpop.f32.mrb[132].mxu1 }
 0x819   : > { %v3971_v18 = vpop.f32.mrb[133].mxu1 }
 0x81a   : > { %v3972_v1 = vadd.f32 %v3971_v18, %v3970_v26  ;;  %v3973_v28 = vpop.f32.mrb[134].mxu1 }
 0x81b   : > { %v3974_v25 = vpop.f32.mrb[135].mxu1 }
 0x81c   : > { %v3525_v27 = vadd.f32 %v3972_v1, %v5168_v59  ;;  %v3975_v2 = vadd.f32 %v3974_v25, %v3973_v28 }
 0x81e   : > { %3564 = vst.msk [vmem:[%s5175_s15 + $0x40] sm:$0xff] %vm3555_vm2, %v3525_v27  ;;  %v3528_v29 = vadd.f32 %v3975_v2, %v5168_v59 }
 0x820   : > { %3565 = vst.msk [vmem:[%s5175_s15 + $0x48] sm:$0xff] %vm3555_vm2, %v3528_v29  ;;  %v3976_v38 = vpop.f32.mrb[136].mxu1 }
 0x821   : > { %v3977_v53 = vpop.f32.mrb[137].mxu1 }
 0x822   : > { %v3978_v31 = vadd.f32 %v3977_v53, %v3976_v38  ;;  %v3979_v32 = vpop.f32.mrb[138].mxu1 }
 0x823   : > { %v3980_v51 = vpop.f32.mrb[139].mxu1 }
 0x824   : > { %v3533_v39 = vadd.f32 %v3978_v31, %v5168_v59  ;;  %v3981_v62 = vadd.f32 %v3980_v51, %v3979_v32 }
 0x826   : > { %3566 = vst.msk [vmem:[%s5175_s15 + $0x50] sm:$0xff] %vm3555_vm2, %v3533_v39  ;;  %v3536_v54 = vadd.f32 %v3981_v62, %v5168_v59 }
 0x828   : > { %3567 = vst.msk [vmem:[%s5175_s15 + $0x58] sm:$0xff] %vm3555_vm2, %v3536_v54  ;;  %v3982_v63 = vpop.f32.mrb[140].mxu1 }
 0x829   : > { %v3983_v55 = vpop.f32.mrb[141].mxu1 }
 0x82a   : > { %v3984_v40 = vadd.f32 %v3983_v55, %v3982_v63  ;;  %v3985_v3 = vpop.f32.mrb[142].mxu1 }
 0x82b   : > { %v3986_v45 = vpop.f32.mrb[143].mxu1 }
 0x82c   : > { %v3541_v30 = vadd.f32 %v3984_v40, %v5168_v59  ;;  %v3987_v4 = vadd.f32 %v3986_v45, %v3985_v3 }
 0x82e   : > { %3568 = vst.msk [vmem:[%s5175_s15 + $0x60] sm:$0xff] %vm3555_vm2, %v3541_v30  ;;  %v3544_v5 = vadd.f32 %v3987_v4, %v5168_v59 }
 0x830   : > { %3569 = vst.msk [vmem:[%s5175_s15 + $0x68] sm:$0xff] %vm3555_vm2, %v3544_v5  ;;  %v3988_v19 = vpop.f32.mrb[144].mxu1 }
 0x831   : > { %v3989_v6 = vpop.f32.mrb[145].mxu1 }
 0x832   : > { %v3990_v0 = vadd.f32 %v3989_v6, %v3988_v19  ;;  %v3991_v56 = vpop.f32.mrb[146].mxu1 }
 0x833   : > { %v3992_v60 = vpop.f32.mrb[147].mxu1 }
 0x834   : > { %v3549_v57 = vadd.f32 %v3990_v0, %v5168_v59  ;;  %v3993_v61 = vadd.f32 %v3992_v60, %v3991_v56 }
 0x836   : > { %3570 = vst.msk [vmem:[%s5175_s15 + $0x70] sm:$0xff] %vm3555_vm2, %v3549_v57  ;;  %v3552_v58 = vadd.f32 %v3993_v61, %v5168_v59 }
 0x838   : > { %3571 = vst.msk [vmem:[%s5175_s15 + $0x78] sm:$0xff] %vm3555_vm2, %v3552_v58 }
 0x839 PF: > { %s18_s24 = sadd.s32 1, %s4444_s24  }
 0x83a   : > { %p15_p3 = scmp.ge.s32.totalorder %s18_s24, 4  }
 0x83c   :  { %17 = sbr.rel (!%p15_p3) target bundleno = 1 (0x1), region = 89 }
 0x843   :  { %3594 = vsyncpa [#allocation3], 1 }
 0x844   :  { %3596 = vsyncpa [#allocation3 + $0x1], 1 }

</bundles_post_ra>
